<compile_context>
chip_gen: v7x
topology: tpu7x:2x2x1
jax: 0.10.0
libtpu: 0.0.40
codegen_flags: <defaults>
</compile_context>

<pallas_src>
import functools

import jax
import jax.numpy as jnp
import numpy as np
from jax import lax
from jax.experimental import pallas as pl
from jax.experimental.pallas import tpu as pltpu

EPS = 1e-5


# ------------------------------ kernels ------------------------------------

def _conv1_pool_kernel(xpp_ref, w_ref, y_ref, pool_ref, stats_ref,
                       *, ho, wo, cin, cout):
    """Stride-2 3x3 conv + 2x2 maxpool residual for a block of images, plus
    per-step partial BN1 batch statistics.

    xpp_ref  : (B, 4*hq, wq, cin) bf16  polyphase of the zero-padded images
               (phase p=2a+b occupies rows [p*hq,(p+1)*hq)), so every conv tap
               and every pool tap is a contiguous in-kernel slice.
    w_ref    : (9*cin, cout)      bf16  fused 3x3 weights (resident).
    y_ref    : (B, ho*wo, cout)   bf16  raw conv1 output (pre-BN).
    pool_ref : (B, ho*wo, cin)    bf16  maxpool2x2(x) residual.
    stats_ref: (1, 2, cout)       f32   this grid step's [sum; sum_sq].
    """
    hq = ho + 1
    b = xpp_ref.shape[0]
    m = ho * wo
    x = xpp_ref[...]                                   # (B, 4*hq, wq, cin) bf16

    # conv1: nine accumulated bf16 matmuls, f32 accumulation (no patch scratch).
    acc = jnp.zeros((b * m, cout), jnp.float32)
    for kh in range(3):
        for kw in range(3):
            p = 2 * (kh % 2) + (kw % 2)                # polyphase component
            r0 = p * hq + kh // 2
            c0 = kw // 2
            k = kh * 3 + kw
            tap = x[:, r0:r0 + ho, c0:c0 + wo, :].reshape(b * m, cin)
            acc = acc + jnp.dot(tap, w_ref[k * cin:(k + 1) * cin, :],
                                preferred_element_type=jnp.float32)
    y_ref[...] = acc.reshape(b, m, cout).astype(y_ref.dtype)

    # 2x2 maxpool residual from the same resident block; bf16 max is exact for
    # bf16 inputs, so no full-block f32 cast.
    def win(a, bb, r0, c0):
        p = 2 * a + bb
        return x[:, p * hq + r0:p * hq + r0 + ho, c0:c0 + wo, :]
    # x[2*oh+dh, 2*ow+dw] == phase(1-dh, 1-dw)[oh+dh, ow+dw]
    pool = jnp.maximum(jnp.maximum(win(1, 1, 0, 0), win(1, 0, 0, 1)),
                       jnp.maximum(win(0, 1, 1, 0), win(0, 0, 1, 1)))
    pool_ref[...] = pool.reshape(b, m, cin)

    # per-step partial stats (reduced in the wrapper -> 'parallel' grid is safe)
    stats_ref[0, 0:1, :] = jnp.sum(acc, axis=0, keepdims=True)
    stats_ref[0, 1:2, :] = jnp.sum(acc * acc, axis=0, keepdims=True)


def _bn1_conv2_kernel(y1_ref, w_ref, scale_ref, shift_ref, y2_ref, stats_ref,
                      h1pad_ref, *, ho, wo, cout):
    """relu(bn1(conv1)) fused with the stride-1 3x3 conv2 (block of images)
    plus per-step partial BN2 statistics.  The bn1 activation never returns to
    HBM: it lands (bf16) in a padded VMEM scratch whose 1-pixel border is
    zeroed every step (cheap, and correct under megacore 'parallel' sharding);
    conv2 is again nine accumulated bf16 matmuls."""
    b = y1_ref.shape[0]
    m = ho * wo
    h1 = jnp.maximum(
        y1_ref[...].astype(jnp.float32) * scale_ref[...] + shift_ref[...], 0.0)

    zrow = jnp.zeros((b, 1, wo + 2, cout), h1pad_ref.dtype)
    zcol = jnp.zeros((b, ho, 1, cout), h1pad_ref.dtype)
    h1pad_ref[:, 0:1, :, :] = zrow
    h1pad_ref[:, ho + 1:ho + 2, :, :] = zrow
    h1pad_ref[:, 1:ho + 1, 0:1, :] = zcol
    h1pad_ref[:, 1:ho + 1, wo + 1:wo + 2, :] = zcol
    h1pad_ref[:, 1:ho + 1, 1:wo + 1, :] = (
        h1.astype(h1pad_ref.dtype).reshape(b, ho, wo, cout))

    hp = h1pad_ref[...]                                # (B, ho+2, wo+2, cout)
    acc = jnp.zeros((b * m, cout), jnp.float32)
    for kh in range(3):
        for kw in range(3):
            k = kh * 3 + kw
            tap = hp[:, kh:kh + ho, kw:kw + wo, :].reshape(b * m, cout)
            acc = acc + jnp.dot(tap, w_ref[k * cout:(k + 1) * cout, :],
                                preferred_element_type=jnp.float32)
    y2_ref[...] = acc.reshape(b, m, cout).astype(y2_ref.dtype)

    stats_ref[0, 0:1, :] = jnp.sum(acc, axis=0, keepdims=True)
    stats_ref[0, 1:2, :] = jnp.sum(acc * acc, axis=0, keepdims=True)


def _bn2_residual_kernel(y2_ref, pool_ref, scale_ref, shift_ref, out_ref):
    """out = relu(bn2(conv2) + maxpool2x2(x)); pure elementwise, reads only
    the (1x-sized) pooled residual produced by pass 1."""
    y = y2_ref[...].astype(jnp.float32) * scale_ref[...] + shift_ref[...]
    out_ref[...] = jnp.maximum(y + pool_ref[...].astype(jnp.float32), 0.0)


# ------------------------------ wrapper -------------------------------------

def _polyphase_pad(x_nhwc):
    """Zero-pad H,W by 1 and stack the 4 polyphase components along rows:
    (N,H,W,C) -> (N, 4*hq, wq, C), hq=(H+2)//2, wq=(W+2)//2 (~1x input bytes)."""
    xp = jnp.pad(x_nhwc, ((0, 0), (1, 1), (1, 1), (0, 0)))
    comps = [xp[:, a::2, b::2, :] for a in (0, 1) for b in (0, 1)]
    return jnp.concatenate(comps, axis=1)


def _bn_affine(partials, gamma, beta, m_tot):
    """Reduce per-grid-step [sum, sum_sq] partials -> per-channel scale/shift."""
    stats = jnp.sum(partials, axis=0)                  # (2, C)
    mean = stats[0] / m_tot
    var = stats[1] / m_tot - mean * mean
    scale = gamma * lax.rsqrt(var + EPS)
    shift = beta - mean * scale
    return (scale.reshape(1, -1).astype(jnp.float32),
            shift.reshape(1, -1).astype(jnp.float32))


def _pick_batch_block(n, per_image_bytes, budget_bytes=24 << 20):
    """Largest divisor of n whose per-step VMEM footprint fits the budget."""
    cap = max(1, int(budget_bytes // max(per_image_bytes, 1)))
    for b in range(min(n, cap), 0, -1):
        if n % b == 0:
            return b
    return 1


def _vmem_limit(block_bytes, scratch_bytes=0):
    """Per-pass scoped-VMEM limit: double-buffered blocks + scratch + headroom,
    capped well under v7x's 64 MiB physical VMEM (fine on v5e/v6e too)."""
    need = 2 * block_bytes + scratch_bytes + (8 << 20)
    return int(min(max(need, 16 << 20), 48 << 20))


def resblock_forward(x_nchw, params, stride=2):
    w1, g1, b1, w2, g2, b2 = params                    # w*: (3,3,Cin,Cout) HWIO
    n, cin, h, w = x_nchw.shape
    cout = w1.shape[-1]
    assert stride == 2 and cin == cout and h % 2 == 0 and w % 2 == 0, \
        "module only exercises its stride!=1 path with Cin==Cout and even H,W"
    ho, wo = h // 2, w // 2
    hq, wq = ho + 1, wo + 1
    m_img = ho * wo
    m_tot = n * m_img

    # NCHW -> NHWC; one polyphase decomposition of the zero-padded input makes
    # every conv1 tap and pool tap a contiguous in-kernel slice (no im2col /
    # pool tensors in HBM, no strided in-kernel reads).
    # TODO(synk): keep activations NHWC across layers to drop these transposes.
    x_nhwc = jnp.transpose(x_nchw, (0, 2, 3, 1))
    xpp = _polyphase_pad(x_nhwc).astype(jnp.bfloat16)  # (N, 4*hq, wq, C)
    w1f = w1.reshape(9 * cin, cout).astype(jnp.bfloat16)
    w2f = w2.reshape(9 * cout, cout).astype(jnp.bfloat16)

    # Batch block: as many images per grid step as fit a conservative VMEM
    # budget (bigger DMAs, bigger matmul M), always a divisor of N.
    xpp_img = 4 * hq * wq * cin * 2
    y_img = m_img * cout * 2
    acc_img = m_img * cout * 4
    h1pad_img = (ho + 2) * (wo + 2) * cout * 2
    per_img = 2 * xpp_img + 6 * y_img + 6 * acc_img + 2 * h1pad_img
    bblk = _pick_batch_block(n, per_img)
    g = n // bblk

    # ---- pass 1: conv1 (stride 2) + maxpool residual + BN1 partial stats ---
    blk1 = bblk * (xpp_img + 2 * y_img) + w1f.size * 2 + 2 * cout * 4
    y1, pool, st1 = pl.pallas_call(
        functools.partial(_conv1_pool_kernel, ho=ho, wo=wo, cin=cin, cout=cout),
        grid=(g,),
        in_specs=[pl.BlockSpec((bblk, 4 * hq, wq, cin), lambda i: (i, 0, 0, 0)),
                  pl.BlockSpec((9 * cin, cout), lambda i: (0, 0))],
        out_specs=[pl.BlockSpec((bblk, m_img, cout), lambda i: (i, 0, 0)),
                   pl.BlockSpec((bblk, m_img, cin), lambda i: (i, 0, 0)),
                   pl.BlockSpec((1, 2, cout), lambda i: (i, 0, 0))],
        out_shape=[jax.ShapeDtypeStruct((n, m_img, cout), jnp.bfloat16),
                   jax.ShapeDtypeStruct((n, m_img, cin), jnp.bfloat16),
                   jax.ShapeDtypeStruct((g, 2, cout), jnp.float32)],
        compiler_params=pltpu.CompilerParams(
            dimension_semantics=("parallel",),
            vmem_limit_bytes=_vmem_limit(blk1, scratch_bytes=4 * bblk * acc_img)),
    )(xpp, w1f)
    scale1, shift1 = _bn_affine(st1, g1, b1, m_tot)

    # ---- pass 2: bn1+relu (kept in VMEM) -> conv2 + BN2 partial stats ------
    blk2 = bblk * 2 * y_img + w2f.size * 2 + 4 * cout * 4 + 2 * cout * 4
    y2, st2 = pl.pallas_call(
        functools.partial(_bn1_conv2_kernel, ho=ho, wo=wo, cout=cout),
        grid=(g,),
        in_specs=[pl.BlockSpec((bblk, m_img, cout), lambda i: (i, 0, 0)),
                  pl.BlockSpec((9 * cout, cout), lambda i: (0, 0)),
                  pl.BlockSpec((1, cout), lambda i: (0, 0)),
                  pl.BlockSpec((1, cout), lambda i: (0, 0))],
        out_specs=[pl.BlockSpec((bblk, m_img, cout), lambda i: (i, 0, 0)),
                   pl.BlockSpec((1, 2, cout), lambda i: (i, 0, 0))],
        out_shape=[jax.ShapeDtypeStruct((n, m_img, cout), jnp.bfloat16),
                   jax.ShapeDtypeStruct((g, 2, cout), jnp.float32)],
        scratch_shapes=[pltpu.VMEM((bblk, ho + 2, wo + 2, cout), jnp.bfloat16)],
        compiler_params=pltpu.CompilerParams(
            dimension_semantics=("parallel",),
            vmem_limit_bytes=_vmem_limit(
                blk2, scratch_bytes=bblk * (h1pad_img + 4 * acc_img))),
    )(y1, w2f, scale1, shift1)
    scale2, shift2 = _bn_affine(st2, g2, b2, m_tot)

    # ---- pass 3: bn2 + pooled residual + relu (elementwise) -----------------
    blk3 = bblk * (2 * y_img + m_img * cout * 4) + 4 * cout * 4
    out = pl.pallas_call(
        _bn2_residual_kernel,
        grid=(g,),
        in_specs=[pl.BlockSpec((bblk, m_img, cout), lambda i: (i, 0, 0)),
                  pl.BlockSpec((bblk, m_img, cin), lambda i: (i, 0, 0)),
                  pl.BlockSpec((1, cout), lambda i: (0, 0)),
                  pl.BlockSpec((1, cout), lambda i: (0, 0))],
        out_specs=pl.BlockSpec((bblk, m_img, cout), lambda i: (i, 0, 0)),
        out_shape=jax.ShapeDtypeStruct((n, m_img, cout), jnp.float32),
        compiler_params=pltpu.CompilerParams(
            dimension_semantics=("parallel",),
            vmem_limit_bytes=_vmem_limit(blk3)),
    )(y2, pool, scale2, shift2)

    return out.reshape(n, ho, wo, cout).transpose(0, 3, 1, 2)   # back to NCHW


# ---------------- pure-JAX reference (for correctness check) ---------------
def resblock_reference(x_nchw, params, stride=2):
    w1, g1, b1, w2, g2, b2 = params

    def conv(x, w, s):
        return lax.conv_general_dilated(
            x, w, window_strides=(s, s), padding=((1, 1), (1, 1)),
            dimension_numbers=('NCHW', 'HWIO', 'NCHW'),
            precision=lax.Precision.HIGHEST)

    def bn(x, g, b):
        mean = jnp.mean(x, axis=(0, 2, 3), keepdims=True)
        var = jnp.mean((x - mean) ** 2, axis=(0, 2, 3), keepdims=True)
        return ((x - mean) * lax.rsqrt(var + EPS) * g.reshape(1, -1, 1, 1)
                + b.reshape(1, -1, 1, 1))

    out = jnp.maximum(bn(conv(x_nchw, w1, stride), g1, b1), 0.0)
    out = bn(conv(out, w2, 1), g2, b2)
    identity = lax.reduce_window(x_nchw, -jnp.inf, lax.max,
                                 (1, 1, 2, 2), (1, 1, 2, 2), 'VALID')
    return jnp.maximum(out + identity, 0.0)


if __name__ == "__main__":
    N, C, H, W = 2, 8, 16, 16
    STRIDE = 2

    key = jax.random.PRNGKey(0)
    ks = jax.random.split(key, 7)
    x = jax.random.normal(ks[0], (N, C, H, W), jnp.float32)
    fan_in = C * 9
    w1 = jax.random.normal(ks[1], (3, 3, C, C), jnp.float32) / np.sqrt(fan_in)
    w2 = jax.random.normal(ks[2], (3, 3, C, C), jnp.float32) / np.sqrt(fan_in)
    g1 = 1.0 + 0.1 * jax.random.normal(ks[3], (C,), jnp.float32)
    b1 = 0.1 * jax.random.normal(ks[4], (C,), jnp.float32)
    g2 = 1.0 + 0.1 * jax.random.normal(ks[5], (C,), jnp.float32)
    b2 = 0.1 * jax.random.normal(ks[6], (C,), jnp.float32)
    params = (w1, g1, b1, w2, g2, b2)

    fwd = jax.jit(functools.partial(resblock_forward, stride=STRIDE))
    out = jax.block_until_ready(fwd(x, params))

    ref = resblock_reference(x, params, stride=STRIDE)
    assert out.shape == (N, C, H // 2, W // 2), out.shape
    err = float(jnp.max(jnp.abs(out - ref)))
    assert err < 5e-2, f"max abs error vs reference: {err}"
    print("KERNEL_OK")
</pallas_src>

<mosaic_0001>
module attributes {stable_mosaic.version = 11 : i64} {
  func.func @_bn2_residual_kernel(%arg0: i32, %arg1: memref<2x64x8xbf16, #tpu.memory_space<vmem>>, %arg2: memref<2x64x8xbf16, #tpu.memory_space<vmem>>, %arg3: memref<1x8xf32, #tpu.memory_space<vmem>>, %arg4: memref<1x8xf32, #tpu.memory_space<vmem>>, %arg5: memref<2x64x8xf32, #tpu.memory_space<vmem>>) attributes {dimension_semantics = [#tpu.dimension_semantics<parallel>], iteration_bounds = array<i64: 1>, scalar_prefetch = 0 : i64, scratch_operands = 0 : i64, tpu.core_type = #tpu.core_type<tc>, window_params = [{transform_indices = @transform_0, window_bounds = array<i64: 2, 64, 8>}, {transform_indices = @transform_1, window_bounds = array<i64: 2, 64, 8>}, {pipeline_mode = #tpu.pipeline_mode<synchronous>, transform_indices = @transform_2, window_bounds = array<i64: 1, 8>}, {pipeline_mode = #tpu.pipeline_mode<synchronous>, transform_indices = @transform_3, window_bounds = array<i64: 1, 8>}, {transform_indices = @transform_4, window_bounds = array<i64: 2, 64, 8>}]} {
    %c0 = arith.constant 0 : index
    %c0_0 = arith.constant 0 : index
    %c0_1 = arith.constant 0 : index
    %0 = vector.load %arg1[%c0, %c0_0, %c0_1] : memref<2x64x8xbf16, #tpu.memory_space<vmem>>, vector<2x64x8xbf16>
    %1 = arith.extf %0 : vector<2x64x8xbf16> to vector<2x64x8xf32>
    %c0_2 = arith.constant 0 : index
    %c0_3 = arith.constant 0 : index
    %2 = vector.load %arg3[%c0_2, %c0_3] : memref<1x8xf32, #tpu.memory_space<vmem>>, vector<1x8xf32>
    %3 = vector.shape_cast %2 : vector<1x8xf32> to vector<1x1x8xf32>
    %4 = vector.broadcast %3 : vector<1x1x8xf32> to vector<2x64x8xf32>
    %5 = arith.mulf %1, %4 : vector<2x64x8xf32>
    %c0_4 = arith.constant 0 : index
    %c0_5 = arith.constant 0 : index
    %6 = vector.load %arg4[%c0_4, %c0_5] : memref<1x8xf32, #tpu.memory_space<vmem>>, vector<1x8xf32>
    %7 = vector.shape_cast %6 : vector<1x8xf32> to vector<1x1x8xf32>
    %8 = vector.broadcast %7 : vector<1x1x8xf32> to vector<2x64x8xf32>
    %9 = arith.addf %5, %8 : vector<2x64x8xf32>
    %c0_6 = arith.constant 0 : index
    %c0_7 = arith.constant 0 : index
    %c0_8 = arith.constant 0 : index
    %10 = vector.load %arg2[%c0_6, %c0_7, %c0_8] : memref<2x64x8xbf16, #tpu.memory_space<vmem>>, vector<2x64x8xbf16>
    %11 = arith.extf %10 : vector<2x64x8xbf16> to vector<2x64x8xf32>
    %12 = arith.addf %9, %11 : vector<2x64x8xf32>
    %cst = arith.constant 0.000000e+00 : f32
    %13 = vector.broadcast %cst : f32 to vector<2x64x8xf32>
    %14 = arith.maximumf %12, %13 : vector<2x64x8xf32>
    %c0_9 = arith.constant 0 : index
    %c0_10 = arith.constant 0 : index
    %c0_11 = arith.constant 0 : index
    %15 = vector.load %arg5[%c0_9, %c0_10, %c0_11] : memref<2x64x8xf32, #tpu.memory_space<vmem>>, vector<2x64x8xf32>
    tpu.vector_store %arg5[%c0_9, %c0_10, %c0_11], %14 {strides = array<i32>} : memref<2x64x8xf32, #tpu.memory_space<vmem>>, vector<2x64x8xf32>,
    return
  }
  func.func @transform_0(%arg0: i32) -> (i32, i32, i32) {
    %c0_i32 = arith.constant 0 : i32
    %c0_i32_0 = arith.constant 0 : i32
    %c0_i32_1 = arith.constant 0 : i32
    return %arg0, %c0_i32, %c0_i32_0 : i32, i32, i32
  }
  func.func @transform_1(%arg0: i32) -> (i32, i32, i32) {
    %c0_i32 = arith.constant 0 : i32
    %c0_i32_0 = arith.constant 0 : i32
    %c0_i32_1 = arith.constant 0 : i32
    return %arg0, %c0_i32, %c0_i32_0 : i32, i32, i32
  }
  func.func @transform_2(%arg0: i32) -> (i32, i32) {
    %c0_i32 = arith.constant 0 : i32
    %c0_i32_0 = arith.constant 0 : i32
    %c0_i32_1 = arith.constant 0 : i32
    return %c0_i32, %c0_i32_0 : i32, i32
  }
  func.func @transform_3(%arg0: i32) -> (i32, i32) {
    %c0_i32 = arith.constant 0 : i32
    %c0_i32_0 = arith.constant 0 : i32
    %c0_i32_1 = arith.constant 0 : i32
    return %c0_i32, %c0_i32_0 : i32, i32
  }
  func.func @transform_4(%arg0: i32) -> (i32, i32, i32) {
    %c0_i32 = arith.constant 0 : i32
    %c0_i32_0 = arith.constant 0 : i32
    %c0_i32_1 = arith.constant 0 : i32
    return %arg0, %c0_i32, %c0_i32_0 : i32, i32, i32
  }
}

module attributes {stable_mosaic.version = 11 : i64} {
  func.func @_conv1_pool_kernel(%arg0: i32, %arg1: memref<2x36x9x8xbf16, #tpu.memory_space<vmem>>, %arg2: memref<72x8xbf16, #tpu.memory_space<vmem>>, %arg3: memref<2x64x8xbf16, #tpu.memory_space<vmem>>, %arg4: memref<2x64x8xbf16, #tpu.memory_space<vmem>>, %arg5: memref<1x2x8xf32, #tpu.memory_space<vmem>>) attributes {dimension_semantics = [#tpu.dimension_semantics<parallel>], iteration_bounds = array<i64: 1>, scalar_prefetch = 0 : i64, scratch_operands = 0 : i64, tpu.core_type = #tpu.core_type<tc>, window_params = [{transform_indices = @transform_0, window_bounds = array<i64: 2, 36, 9, 8>}, {pipeline_mode = #tpu.pipeline_mode<synchronous>, transform_indices = @transform_1, window_bounds = array<i64: 72, 8>}, {transform_indices = @transform_2, window_bounds = array<i64: 2, 64, 8>}, {transform_indices = @transform_3, window_bounds = array<i64: 2, 64, 8>}, {transform_indices = @transform_4, window_bounds = array<i64: 1, 2, 8>}]} {
    %c0 = arith.constant 0 : index
    %c0_0 = arith.constant 0 : index
    %c0_1 = arith.constant 0 : index
    %c0_2 = arith.constant 0 : index
    %0 = vector.load %arg1[%c0, %c0_0, %c0_1, %c0_2] : memref<2x36x9x8xbf16, #tpu.memory_space<vmem>>, vector<2x36x9x8xbf16>
    %cst = arith.constant 0.000000e+00 : f32
    %1 = vector.broadcast %cst : f32 to vector<128x8xf32>
    %2 = vector.extract_strided_slice %0 {offsets = [0, 0, 0, 0], sizes = [2, 8, 8, 8], strides = [1, 1, 1, 1]} : vector<2x36x9x8xbf16> to vector<2x8x8x8xbf16>
    %3 = vector.shape_cast %2 : vector<2x8x8x8xbf16> to vector<128x8xbf16>
    %c0_3 = arith.constant 0 : index
    %c0_4 = arith.constant 0 : index
    %4 = vector.load %arg2[%c0_3, %c0_4] : memref<72x8xbf16, #tpu.memory_space<vmem>>, vector<8x8xbf16>
    %cst_5 = arith.constant dense<0.000000e+00> : vector<128x8xf32>
    %5 = tpu.matmul %3, %4, %cst_5 {dimension_numbers = #tpu.dot_dimension_numbers<[1], [0], [0], [1], [0, 0, 1, 1], [], []>} : vector<128x8xbf16>, vector<8x8xbf16>, vector<128x8xf32> -> vector<128x8xf32>
    %6 = arith.addf %1, %5 : vector<128x8xf32>
    %7 = vector.extract_strided_slice %0 {offsets = [0, 9, 0, 0], sizes = [2, 8, 8, 8], strides = [1, 1, 1, 1]} : vector<2x36x9x8xbf16> to vector<2x8x8x8xbf16>
    %8 = vector.shape_cast %7 : vector<2x8x8x8xbf16> to vector<128x8xbf16>
    %c8 = arith.constant 8 : index
    %c0_6 = arith.constant 0 : index
    %9 = vector.load %arg2[%c8, %c0_6] : memref<72x8xbf16, #tpu.memory_space<vmem>>, vector<8x8xbf16>
    %cst_7 = arith.constant dense<0.000000e+00> : vector<128x8xf32>
    %10 = tpu.matmul %8, %9, %cst_7 {dimension_numbers = #tpu.dot_dimension_numbers<[1], [0], [0], [1], [0, 0, 1, 1], [], []>} : vector<128x8xbf16>, vector<8x8xbf16>, vector<128x8xf32> -> vector<128x8xf32>
    %11 = arith.addf %6, %10 : vector<128x8xf32>
    %12 = vector.extract_strided_slice %0 {offsets = [0, 0, 1, 0], sizes = [2, 8, 8, 8], strides = [1, 1, 1, 1]} : vector<2x36x9x8xbf16> to vector<2x8x8x8xbf16>
    %13 = vector.shape_cast %12 : vector<2x8x8x8xbf16> to vector<128x8xbf16>
    %c16 = arith.constant 16 : index
    %c0_8 = arith.constant 0 : index
    %14 = vector.load %arg2[%c16, %c0_8] : memref<72x8xbf16, #tpu.memory_space<vmem>>, vector<8x8xbf16>
    %cst_9 = arith.constant dense<0.000000e+00> : vector<128x8xf32>
    %15 = tpu.matmul %13, %14, %cst_9 {dimension_numbers = #tpu.dot_dimension_numbers<[1], [0], [0], [1], [0, 0, 1, 1], [], []>} : vector<128x8xbf16>, vector<8x8xbf16>, vector<128x8xf32> -> vector<128x8xf32>
    %16 = arith.addf %11, %15 : vector<128x8xf32>
    %17 = vector.extract_strided_slice %0 {offsets = [0, 18, 0, 0], sizes = [2, 8, 8, 8], strides = [1, 1, 1, 1]} : vector<2x36x9x8xbf16> to vector<2x8x8x8xbf16>
    %18 = vector.shape_cast %17 : vector<2x8x8x8xbf16> to vector<128x8xbf16>
    %c24 = arith.constant 24 : index
    %c0_10 = arith.constant 0 : index
    %19 = vector.load %arg2[%c24, %c0_10] : memref<72x8xbf16, #tpu.memory_space<vmem>>, vector<8x8xbf16>
    %cst_11 = arith.constant dense<0.000000e+00> : vector<128x8xf32>
    %20 = tpu.matmul %18, %19, %cst_11 {dimension_numbers = #tpu.dot_dimension_numbers<[1], [0], [0], [1], [0, 0, 1, 1], [], []>} : vector<128x8xbf16>, vector<8x8xbf16>, vector<128x8xf32> -> vector<128x8xf32>
    %21 = arith.addf %16, %20 : vector<128x8xf32>
    %22 = vector.extract_strided_slice %0 {offsets = [0, 27, 0, 0], sizes = [2, 8, 8, 8], strides = [1, 1, 1, 1]} : vector<2x36x9x8xbf16> to vector<2x8x8x8xbf16>
    %23 = vector.shape_cast %22 : vector<2x8x8x8xbf16> to vector<128x8xbf16>
    %c32 = arith.constant 32 : index
    %c0_12 = arith.constant 0 : index
    %24 = vector.load %arg2[%c32, %c0_12] : memref<72x8xbf16, #tpu.memory_space<vmem>>, vector<8x8xbf16>
    %cst_13 = arith.constant dense<0.000000e+00> : vector<128x8xf32>
    %25 = tpu.matmul %23, %24, %cst_13 {dimension_numbers = #tpu.dot_dimension_numbers<[1], [0], [0], [1], [0, 0, 1, 1], [], []>} : vector<128x8xbf16>, vector<8x8xbf16>, vector<128x8xf32> -> vector<128x8xf32>
    %26 = arith.addf %21, %25 : vector<128x8xf32>
    %27 = vector.extract_strided_slice %0 {offsets = [0, 18, 1, 0], sizes = [2, 8, 8, 8], strides = [1, 1, 1, 1]} : vector<2x36x9x8xbf16> to vector<2x8x8x8xbf16>
    %28 = vector.shape_cast %27 : vector<2x8x8x8xbf16> to vector<128x8xbf16>
    %c40 = arith.constant 40 : index
    %c0_14 = arith.constant 0 : index
    %29 = vector.load %arg2[%c40, %c0_14] : memref<72x8xbf16, #tpu.memory_space<vmem>>, vector<8x8xbf16>
    %cst_15 = arith.constant dense<0.000000e+00> : vector<128x8xf32>
    %30 = tpu.matmul %28, %29, %cst_15 {dimension_numbers = #tpu.dot_dimension_numbers<[1], [0], [0], [1], [0, 0, 1, 1], [], []>} : vector<128x8xbf16>, vector<8x8xbf16>, vector<128x8xf32> -> vector<128x8xf32>
    %31 = arith.addf %26, %30 : vector<128x8xf32>
    %32 = vector.extract_strided_slice %0 {offsets = [0, 1, 0, 0], sizes = [2, 8, 8, 8], strides = [1, 1, 1, 1]} : vector<2x36x9x8xbf16> to vector<2x8x8x8xbf16>
    %33 = vector.shape_cast %32 : vector<2x8x8x8xbf16> to vector<128x8xbf16>
    %c48 = arith.constant 48 : index
    %c0_16 = arith.constant 0 : index
    %34 = vector.load %arg2[%c48, %c0_16] : memref<72x8xbf16, #tpu.memory_space<vmem>>, vector<8x8xbf16>
    %cst_17 = arith.constant dense<0.000000e+00> : vector<128x8xf32>
    %35 = tpu.matmul %33, %34, %cst_17 {dimension_numbers = #tpu.dot_dimension_numbers<[1], [0], [0], [1], [0, 0, 1, 1], [], []>} : vector<128x8xbf16>, vector<8x8xbf16>, vector<128x8xf32> -> vector<128x8xf32>
    %36 = arith.addf %31, %35 : vector<128x8xf32>
    %37 = vector.extract_strided_slice %0 {offsets = [0, 10, 0, 0], sizes = [2, 8, 8, 8], strides = [1, 1, 1, 1]} : vector<2x36x9x8xbf16> to vector<2x8x8x8xbf16>
    %38 = vector.shape_cast %37 : vector<2x8x8x8xbf16> to vector<128x8xbf16>
    %c56 = arith.constant 56 : index
    %c0_18 = arith.constant 0 : index
    %39 = vector.load %arg2[%c56, %c0_18] : memref<72x8xbf16, #tpu.memory_space<vmem>>, vector<8x8xbf16>
    %cst_19 = arith.constant dense<0.000000e+00> : vector<128x8xf32>
    %40 = tpu.matmul %38, %39, %cst_19 {dimension_numbers = #tpu.dot_dimension_numbers<[1], [0], [0], [1], [0, 0, 1, 1], [], []>} : vector<128x8xbf16>, vector<8x8xbf16>, vector<128x8xf32> -> vector<128x8xf32>
    %41 = arith.addf %36, %40 : vector<128x8xf32>
    %42 = vector.extract_strided_slice %0 {offsets = [0, 1, 1, 0], sizes = [2, 8, 8, 8], strides = [1, 1, 1, 1]} : vector<2x36x9x8xbf16> to vector<2x8x8x8xbf16>
    %43 = vector.shape_cast %42 : vector<2x8x8x8xbf16> to vector<128x8xbf16>
    %c64 = arith.constant 64 : index
    %c0_20 = arith.constant 0 : index
    %44 = vector.load %arg2[%c64, %c0_20] : memref<72x8xbf16, #tpu.memory_space<vmem>>, vector<8x8xbf16>
    %cst_21 = arith.constant dense<0.000000e+00> : vector<128x8xf32>
    %45 = tpu.matmul %43, %44, %cst_21 {dimension_numbers = #tpu.dot_dimension_numbers<[1], [0], [0], [1], [0, 0, 1, 1], [], []>} : vector<128x8xbf16>, vector<8x8xbf16>, vector<128x8xf32> -> vector<128x8xf32>
    %46 = arith.addf %41, %45 : vector<128x8xf32>
    %47 = vector.shape_cast %46 : vector<128x8xf32> to vector<2x64x8xf32>
    %48 = arith.truncf %47 : vector<2x64x8xf32> to vector<2x64x8xbf16>
    %c0_22 = arith.constant 0 : index
    %c0_23 = arith.constant 0 : index
    %c0_24 = arith.constant 0 : index
    %49 = vector.load %arg3[%c0_22, %c0_23, %c0_24] : memref<2x64x8xbf16, #tpu.memory_space<vmem>>, vector<2x64x8xbf16>
    tpu.vector_store %arg3[%c0_22, %c0_23, %c0_24], %48 {strides = array<i32>} : memref<2x64x8xbf16, #tpu.memory_space<vmem>>, vector<2x64x8xbf16>,
    %50 = vector.extract_strided_slice %0 {offsets = [0, 27, 0, 0], sizes = [2, 8, 8, 8], strides = [1, 1, 1, 1]} : vector<2x36x9x8xbf16> to vector<2x8x8x8xbf16>
    %51 = vector.extract_strided_slice %0 {offsets = [0, 18, 1, 0], sizes = [2, 8, 8, 8], strides = [1, 1, 1, 1]} : vector<2x36x9x8xbf16> to vector<2x8x8x8xbf16>
    %52 = arith.maximumf %50, %51 : vector<2x8x8x8xbf16>
    %53 = vector.extract_strided_slice %0 {offsets = [0, 10, 0, 0], sizes = [2, 8, 8, 8], strides = [1, 1, 1, 1]} : vector<2x36x9x8xbf16> to vector<2x8x8x8xbf16>
    %54 = vector.extract_strided_slice %0 {offsets = [0, 1, 1, 0], sizes = [2, 8, 8, 8], strides = [1, 1, 1, 1]} : vector<2x36x9x8xbf16> to vector<2x8x8x8xbf16>
    %55 = arith.maximumf %53, %54 : vector<2x8x8x8xbf16>
    %56 = arith.maximumf %52, %55 : vector<2x8x8x8xbf16>
    %57 = vector.shape_cast %56 : vector<2x8x8x8xbf16> to vector<2x64x8xbf16>
    %c0_25 = arith.constant 0 : index
    %c0_26 = arith.constant 0 : index
    %c0_27 = arith.constant 0 : index
    %58 = vector.load %arg4[%c0_25, %c0_26, %c0_27] : memref<2x64x8xbf16, #tpu.memory_space<vmem>>, vector<2x64x8xbf16>
    tpu.vector_store %arg4[%c0_25, %c0_26, %c0_27], %57 {strides = array<i32>} : memref<2x64x8xbf16, #tpu.memory_space<vmem>>, vector<2x64x8xbf16>,
    %cst_28 = arith.constant dense<0.000000e+00> : vector<8xf32>
    %59 = vector.multi_reduction <add>, %46, %cst_28 [0] : vector<128x8xf32> to vector<8xf32>
    %60 = vector.shape_cast %59 : vector<8xf32> to vector<1x8xf32>
    %c0_29 = arith.constant 0 : index
    %c0_30 = arith.constant 0 : index
    %c0_31 = arith.constant 0 : index
    %61 = vector.load %arg5[%c0_29, %c0_30, %c0_31] : memref<1x2x8xf32, #tpu.memory_space<vmem>>, vector<1x1x8xf32>
    %62 = vector.shape_cast %61 : vector<1x1x8xf32> to vector<1x8xf32>
    %63 = vector.shape_cast %60 : vector<1x8xf32> to vector<1x1x8xf32>
    tpu.vector_store %arg5[%c0_29, %c0_30, %c0_31], %63 {strides = array<i32>} : memref<1x2x8xf32, #tpu.memory_space<vmem>>, vector<1x1x8xf32>,
    %64 = arith.mulf %46, %46 : vector<128x8xf32>
    %cst_32 = arith.constant dense<0.000000e+00> : vector<8xf32>
    %65 = vector.multi_reduction <add>, %64, %cst_32 [0] : vector<128x8xf32> to vector<8xf32>
    %66 = vector.shape_cast %65 : vector<8xf32> to vector<1x8xf32>
    %c0_33 = arith.constant 0 : index
    %c1 = arith.constant 1 : index
    %c0_34 = arith.constant 0 : index
    %67 = vector.load %arg5[%c0_33, %c1, %c0_34] : memref<1x2x8xf32, #tpu.memory_space<vmem>>, vector<1x1x8xf32>
    %68 = vector.shape_cast %67 : vector<1x1x8xf32> to vector<1x8xf32>
    %69 = vector.shape_cast %66 : vector<1x8xf32> to vector<1x1x8xf32>
    tpu.vector_store %arg5[%c0_33, %c1, %c0_34], %69 {strides = array<i32>} : memref<1x2x8xf32, #tpu.memory_space<vmem>>, vector<1x1x8xf32>,
    return
  }
  func.func @transform_0(%arg0: i32) -> (i32, i32, i32, i32) {
    %c0_i32 = arith.constant 0 : i32
    %c0_i32_0 = arith.constant 0 : i32
    %c0_i32_1 = arith.constant 0 : i32
    %c0_i32_2 = arith.constant 0 : i32
    return %arg0, %c0_i32, %c0_i32_0, %c0_i32_1 : i32, i32, i32, i32
  }
  func.func @transform_1(%arg0: i32) -> (i32, i32) {
    %c0_i32 = arith.constant 0 : i32
    %c0_i32_0 = arith.constant 0 : i32
    %c0_i32_1 = arith.constant 0 : i32
    return %c0_i32, %c0_i32_0 : i32, i32
  }
  func.func @transform_2(%arg0: i32) -> (i32, i32, i32) {
    %c0_i32 = arith.constant 0 : i32
    %c0_i32_0 = arith.constant 0 : i32
    %c0_i32_1 = arith.constant 0 : i32
    return %arg0, %c0_i32, %c0_i32_0 : i32, i32, i32
  }
  func.func @transform_3(%arg0: i32) -> (i32, i32, i32) {
    %c0_i32 = arith.constant 0 : i32
    %c0_i32_0 = arith.constant 0 : i32
    %c0_i32_1 = arith.constant 0 : i32
    return %arg0, %c0_i32, %c0_i32_0 : i32, i32, i32
  }
  func.func @transform_4(%arg0: i32) -> (i32, i32, i32) {
    %c0_i32 = arith.constant 0 : i32
    %c0_i32_0 = arith.constant 0 : i32
    %c0_i32_1 = arith.constant 0 : i32
    return %arg0, %c0_i32, %c0_i32_0 : i32, i32, i32
  }
}

module attributes {stable_mosaic.version = 11 : i64} {
  func.func @_bn1_conv2_kernel(%arg0: i32, %arg1: memref<2x64x8xbf16, #tpu.memory_space<vmem>>, %arg2: memref<72x8xbf16, #tpu.memory_space<vmem>>, %arg3: memref<1x8xf32, #tpu.memory_space<vmem>>, %arg4: memref<1x8xf32, #tpu.memory_space<vmem>>, %arg5: memref<2x64x8xbf16, #tpu.memory_space<vmem>>, %arg6: memref<1x2x8xf32, #tpu.memory_space<vmem>>, %arg7: memref<2x10x10x8xbf16, #tpu.memory_space<vmem>>) attributes {dimension_semantics = [#tpu.dimension_semantics<parallel>], iteration_bounds = array<i64: 1>, scalar_prefetch = 0 : i64, scratch_operands = 1 : i64, tpu.core_type = #tpu.core_type<tc>, window_params = [{transform_indices = @transform_0, window_bounds = array<i64: 2, 64, 8>}, {pipeline_mode = #tpu.pipeline_mode<synchronous>, transform_indices = @transform_1, window_bounds = array<i64: 72, 8>}, {pipeline_mode = #tpu.pipeline_mode<synchronous>, transform_indices = @transform_2, window_bounds = array<i64: 1, 8>}, {pipeline_mode = #tpu.pipeline_mode<synchronous>, transform_indices = @transform_3, window_bounds = array<i64: 1, 8>}, {transform_indices = @transform_4, window_bounds = array<i64: 2, 64, 8>}, {transform_indices = @transform_5, window_bounds = array<i64: 1, 2, 8>}]} {
    %c0 = arith.constant 0 : index
    %c0_0 = arith.constant 0 : index
    %c0_1 = arith.constant 0 : index
    %0 = vector.load %arg1[%c0, %c0_0, %c0_1] : memref<2x64x8xbf16, #tpu.memory_space<vmem>>, vector<2x64x8xbf16>
    %1 = arith.extf %0 : vector<2x64x8xbf16> to vector<2x64x8xf32>
    %c0_2 = arith.constant 0 : index
    %c0_3 = arith.constant 0 : index
    %2 = vector.load %arg3[%c0_2, %c0_3] : memref<1x8xf32, #tpu.memory_space<vmem>>, vector<1x8xf32>
    %3 = vector.shape_cast %2 : vector<1x8xf32> to vector<1x1x8xf32>
    %4 = vector.broadcast %3 : vector<1x1x8xf32> to vector<2x64x8xf32>
    %5 = arith.mulf %1, %4 : vector<2x64x8xf32>
    %c0_4 = arith.constant 0 : index
    %c0_5 = arith.constant 0 : index
    %6 = vector.load %arg4[%c0_4, %c0_5] : memref<1x8xf32, #tpu.memory_space<vmem>>, vector<1x8xf32>
    %7 = vector.shape_cast %6 : vector<1x8xf32> to vector<1x1x8xf32>
    %8 = vector.broadcast %7 : vector<1x1x8xf32> to vector<2x64x8xf32>
    %9 = arith.addf %5, %8 : vector<2x64x8xf32>
    %cst = arith.constant 0.000000e+00 : f32
    %10 = vector.broadcast %cst : f32 to vector<2x64x8xf32>
    %11 = arith.maximumf %9, %10 : vector<2x64x8xf32>
    %cst_6 = arith.constant 0.000000e+00 : bf16
    %12 = vector.broadcast %cst_6 : bf16 to vector<2x1x10x8xbf16>
    %cst_7 = arith.constant 0.000000e+00 : bf16
    %13 = vector.broadcast %cst_7 : bf16 to vector<2x8x1x8xbf16>
    %c0_8 = arith.constant 0 : index
    %c0_9 = arith.constant 0 : index
    %c0_10 = arith.constant 0 : index
    %c0_11 = arith.constant 0 : index
    %14 = vector.load %arg7[%c0_8, %c0_9, %c0_10, %c0_11] : memref<2x10x10x8xbf16, #tpu.memory_space<vmem>>, vector<2x1x10x8xbf16>
    tpu.vector_store %arg7[%c0_8, %c0_9, %c0_10, %c0_11], %12 {strides = array<i32>} : memref<2x10x10x8xbf16, #tpu.memory_space<vmem>>, vector<2x1x10x8xbf16>,
    %c0_12 = arith.constant 0 : index
    %c9 = arith.constant 9 : index
    %c0_13 = arith.constant 0 : index
    %c0_14 = arith.constant 0 : index
    %15 = vector.load %arg7[%c0_12, %c9, %c0_13, %c0_14] : memref<2x10x10x8xbf16, #tpu.memory_space<vmem>>, vector<2x1x10x8xbf16>
    tpu.vector_store %arg7[%c0_12, %c9, %c0_13, %c0_14], %12 {strides = array<i32>} : memref<2x10x10x8xbf16, #tpu.memory_space<vmem>>, vector<2x1x10x8xbf16>,
    %c0_15 = arith.constant 0 : index
    %c1 = arith.constant 1 : index
    %c0_16 = arith.constant 0 : index
    %c0_17 = arith.constant 0 : index
    %16 = vector.load %arg7[%c0_15, %c1, %c0_16, %c0_17] : memref<2x10x10x8xbf16, #tpu.memory_space<vmem>>, vector<2x8x1x8xbf16>
    tpu.vector_store %arg7[%c0_15, %c1, %c0_16, %c0_17], %13 {strides = array<i32>} : memref<2x10x10x8xbf16, #tpu.memory_space<vmem>>, vector<2x8x1x8xbf16>,
    %c0_18 = arith.constant 0 : index
    %c1_19 = arith.constant 1 : index
    %c9_20 = arith.constant 9 : index
    %c0_21 = arith.constant 0 : index
    %17 = vector.load %arg7[%c0_18, %c1_19, %c9_20, %c0_21] : memref<2x10x10x8xbf16, #tpu.memory_space<vmem>>, vector<2x8x1x8xbf16>
    tpu.vector_store %arg7[%c0_18, %c1_19, %c9_20, %c0_21], %13 {strides = array<i32>} : memref<2x10x10x8xbf16, #tpu.memory_space<vmem>>, vector<2x8x1x8xbf16>,
    %18 = arith.truncf %11 : vector<2x64x8xf32> to vector<2x64x8xbf16>
    %19 = vector.shape_cast %18 : vector<2x64x8xbf16> to vector<2x8x8x8xbf16>
    %c0_22 = arith.constant 0 : index
    %c1_23 = arith.constant 1 : index
    %c1_24 = arith.constant 1 : index
    %c0_25 = arith.constant 0 : index
    %20 = vector.load %arg7[%c0_22, %c1_23, %c1_24, %c0_25] : memref<2x10x10x8xbf16, #tpu.memory_space<vmem>>, vector<2x8x8x8xbf16>
    tpu.vector_store %arg7[%c0_22, %c1_23, %c1_24, %c0_25], %19 {strides = array<i32>} : memref<2x10x10x8xbf16, #tpu.memory_space<vmem>>, vector<2x8x8x8xbf16>,
    %c0_26 = arith.constant 0 : index
    %c0_27 = arith.constant 0 : index
    %c0_28 = arith.constant 0 : index
    %c0_29 = arith.constant 0 : index
    %21 = vector.load %arg7[%c0_26, %c0_27, %c0_28, %c0_29] : memref<2x10x10x8xbf16, #tpu.memory_space<vmem>>, vector<2x10x10x8xbf16>
    %cst_30 = arith.constant 0.000000e+00 : f32
    %22 = vector.broadcast %cst_30 : f32 to vector<128x8xf32>
    %23 = vector.extract_strided_slice %21 {offsets = [0, 0, 0, 0], sizes = [2, 8, 8, 8], strides = [1, 1, 1, 1]} : vector<2x10x10x8xbf16> to vector<2x8x8x8xbf16>
    %24 = vector.shape_cast %23 : vector<2x8x8x8xbf16> to vector<128x8xbf16>
    %c0_31 = arith.constant 0 : index
    %c0_32 = arith.constant 0 : index
    %25 = vector.load %arg2[%c0_31, %c0_32] : memref<72x8xbf16, #tpu.memory_space<vmem>>, vector<8x8xbf16>
    %cst_33 = arith.constant dense<0.000000e+00> : vector<128x8xf32>
    %26 = tpu.matmul %24, %25, %cst_33 {dimension_numbers = #tpu.dot_dimension_numbers<[1], [0], [0], [1], [0, 0, 1, 1], [], []>} : vector<128x8xbf16>, vector<8x8xbf16>, vector<128x8xf32> -> vector<128x8xf32>
    %27 = arith.addf %22, %26 : vector<128x8xf32>
    %28 = vector.extract_strided_slice %21 {offsets = [0, 0, 1, 0], sizes = [2, 8, 8, 8], strides = [1, 1, 1, 1]} : vector<2x10x10x8xbf16> to vector<2x8x8x8xbf16>
    %29 = vector.shape_cast %28 : vector<2x8x8x8xbf16> to vector<128x8xbf16>
    %c8 = arith.constant 8 : index
    %c0_34 = arith.constant 0 : index
    %30 = vector.load %arg2[%c8, %c0_34] : memref<72x8xbf16, #tpu.memory_space<vmem>>, vector<8x8xbf16>
    %cst_35 = arith.constant dense<0.000000e+00> : vector<128x8xf32>
    %31 = tpu.matmul %29, %30, %cst_35 {dimension_numbers = #tpu.dot_dimension_numbers<[1], [0], [0], [1], [0, 0, 1, 1], [], []>} : vector<128x8xbf16>, vector<8x8xbf16>, vector<128x8xf32> -> vector<128x8xf32>
    %32 = arith.addf %27, %31 : vector<128x8xf32>
    %33 = vector.extract_strided_slice %21 {offsets = [0, 0, 2, 0], sizes = [2, 8, 8, 8], strides = [1, 1, 1, 1]} : vector<2x10x10x8xbf16> to vector<2x8x8x8xbf16>
    %34 = vector.shape_cast %33 : vector<2x8x8x8xbf16> to vector<128x8xbf16>
    %c16 = arith.constant 16 : index
    %c0_36 = arith.constant 0 : index
    %35 = vector.load %arg2[%c16, %c0_36] : memref<72x8xbf16, #tpu.memory_space<vmem>>, vector<8x8xbf16>
    %cst_37 = arith.constant dense<0.000000e+00> : vector<128x8xf32>
    %36 = tpu.matmul %34, %35, %cst_37 {dimension_numbers = #tpu.dot_dimension_numbers<[1], [0], [0], [1], [0, 0, 1, 1], [], []>} : vector<128x8xbf16>, vector<8x8xbf16>, vector<128x8xf32> -> vector<128x8xf32>
    %37 = arith.addf %32, %36 : vector<128x8xf32>
    %38 = vector.extract_strided_slice %21 {offsets = [0, 1, 0, 0], sizes = [2, 8, 8, 8], strides = [1, 1, 1, 1]} : vector<2x10x10x8xbf16> to vector<2x8x8x8xbf16>
    %39 = vector.shape_cast %38 : vector<2x8x8x8xbf16> to vector<128x8xbf16>
    %c24 = arith.constant 24 : index
    %c0_38 = arith.constant 0 : index
    %40 = vector.load %arg2[%c24, %c0_38] : memref<72x8xbf16, #tpu.memory_space<vmem>>, vector<8x8xbf16>
    %cst_39 = arith.constant dense<0.000000e+00> : vector<128x8xf32>
    %41 = tpu.matmul %39, %40, %cst_39 {dimension_numbers = #tpu.dot_dimension_numbers<[1], [0], [0], [1], [0, 0, 1, 1], [], []>} : vector<128x8xbf16>, vector<8x8xbf16>, vector<128x8xf32> -> vector<128x8xf32>
    %42 = arith.addf %37, %41 : vector<128x8xf32>
    %43 = vector.extract_strided_slice %21 {offsets = [0, 1, 1, 0], sizes = [2, 8, 8, 8], strides = [1, 1, 1, 1]} : vector<2x10x10x8xbf16> to vector<2x8x8x8xbf16>
    %44 = vector.shape_cast %43 : vector<2x8x8x8xbf16> to vector<128x8xbf16>
    %c32 = arith.constant 32 : index
    %c0_40 = arith.constant 0 : index
    %45 = vector.load %arg2[%c32, %c0_40] : memref<72x8xbf16, #tpu.memory_space<vmem>>, vector<8x8xbf16>
    %cst_41 = arith.constant dense<0.000000e+00> : vector<128x8xf32>
    %46 = tpu.matmul %44, %45, %cst_41 {dimension_numbers = #tpu.dot_dimension_numbers<[1], [0], [0], [1], [0, 0, 1, 1], [], []>} : vector<128x8xbf16>, vector<8x8xbf16>, vector<128x8xf32> -> vector<128x8xf32>
    %47 = arith.addf %42, %46 : vector<128x8xf32>
    %48 = vector.extract_strided_slice %21 {offsets = [0, 1, 2, 0], sizes = [2, 8, 8, 8], strides = [1, 1, 1, 1]} : vector<2x10x10x8xbf16> to vector<2x8x8x8xbf16>
    %49 = vector.shape_cast %48 : vector<2x8x8x8xbf16> to vector<128x8xbf16>
    %c40 = arith.constant 40 : index
    %c0_42 = arith.constant 0 : index
    %50 = vector.load %arg2[%c40, %c0_42] : memref<72x8xbf16, #tpu.memory_space<vmem>>, vector<8x8xbf16>
    %cst_43 = arith.constant dense<0.000000e+00> : vector<128x8xf32>
    %51 = tpu.matmul %49, %50, %cst_43 {dimension_numbers = #tpu.dot_dimension_numbers<[1], [0], [0], [1], [0, 0, 1, 1], [], []>} : vector<128x8xbf16>, vector<8x8xbf16>, vector<128x8xf32> -> vector<128x8xf32>
    %52 = arith.addf %47, %51 : vector<128x8xf32>
    %53 = vector.extract_strided_slice %21 {offsets = [0, 2, 0, 0], sizes = [2, 8, 8, 8], strides = [1, 1, 1, 1]} : vector<2x10x10x8xbf16> to vector<2x8x8x8xbf16>
    %54 = vector.shape_cast %53 : vector<2x8x8x8xbf16> to vector<128x8xbf16>
    %c48 = arith.constant 48 : index
    %c0_44 = arith.constant 0 : index
    %55 = vector.load %arg2[%c48, %c0_44] : memref<72x8xbf16, #tpu.memory_space<vmem>>, vector<8x8xbf16>
    %cst_45 = arith.constant dense<0.000000e+00> : vector<128x8xf32>
    %56 = tpu.matmul %54, %55, %cst_45 {dimension_numbers = #tpu.dot_dimension_numbers<[1], [0], [0], [1], [0, 0, 1, 1], [], []>} : vector<128x8xbf16>, vector<8x8xbf16>, vector<128x8xf32> -> vector<128x8xf32>
    %57 = arith.addf %52, %56 : vector<128x8xf32>
    %58 = vector.extract_strided_slice %21 {offsets = [0, 2, 1, 0], sizes = [2, 8, 8, 8], strides = [1, 1, 1, 1]} : vector<2x10x10x8xbf16> to vector<2x8x8x8xbf16>
    %59 = vector.shape_cast %58 : vector<2x8x8x8xbf16> to vector<128x8xbf16>
    %c56 = arith.constant 56 : index
    %c0_46 = arith.constant 0 : index
    %60 = vector.load %arg2[%c56, %c0_46] : memref<72x8xbf16, #tpu.memory_space<vmem>>, vector<8x8xbf16>
    %cst_47 = arith.constant dense<0.000000e+00> : vector<128x8xf32>
    %61 = tpu.matmul %59, %60, %cst_47 {dimension_numbers = #tpu.dot_dimension_numbers<[1], [0], [0], [1], [0, 0, 1, 1], [], []>} : vector<128x8xbf16>, vector<8x8xbf16>, vector<128x8xf32> -> vector<128x8xf32>
    %62 = arith.addf %57, %61 : vector<128x8xf32>
    %63 = vector.extract_strided_slice %21 {offsets = [0, 2, 2, 0], sizes = [2, 8, 8, 8], strides = [1, 1, 1, 1]} : vector<2x10x10x8xbf16> to vector<2x8x8x8xbf16>
    %64 = vector.shape_cast %63 : vector<2x8x8x8xbf16> to vector<128x8xbf16>
    %c64 = arith.constant 64 : index
    %c0_48 = arith.constant 0 : index
    %65 = vector.load %arg2[%c64, %c0_48] : memref<72x8xbf16, #tpu.memory_space<vmem>>, vector<8x8xbf16>
    %cst_49 = arith.constant dense<0.000000e+00> : vector<128x8xf32>
    %66 = tpu.matmul %64, %65, %cst_49 {dimension_numbers = #tpu.dot_dimension_numbers<[1], [0], [0], [1], [0, 0, 1, 1], [], []>} : vector<128x8xbf16>, vector<8x8xbf16>, vector<128x8xf32> -> vector<128x8xf32>
    %67 = arith.addf %62, %66 : vector<128x8xf32>
    %68 = vector.shape_cast %67 : vector<128x8xf32> to vector<2x64x8xf32>
    %69 = arith.truncf %68 : vector<2x64x8xf32> to vector<2x64x8xbf16>
    %c0_50 = arith.constant 0 : index
    %c0_51 = arith.constant 0 : index
    %c0_52 = arith.constant 0 : index
    %70 = vector.load %arg5[%c0_50, %c0_51, %c0_52] : memref<2x64x8xbf16, #tpu.memory_space<vmem>>, vector<2x64x8xbf16>
    tpu.vector_store %arg5[%c0_50, %c0_51, %c0_52], %69 {strides = array<i32>} : memref<2x64x8xbf16, #tpu.memory_space<vmem>>, vector<2x64x8xbf16>,
    %cst_53 = arith.constant dense<0.000000e+00> : vector<8xf32>
    %71 = vector.multi_reduction <add>, %67, %cst_53 [0] : vector<128x8xf32> to vector<8xf32>
    %72 = vector.shape_cast %71 : vector<8xf32> to vector<1x8xf32>
    %c0_54 = arith.constant 0 : index
    %c0_55 = arith.constant 0 : index
    %c0_56 = arith.constant 0 : index
    %73 = vector.load %arg6[%c0_54, %c0_55, %c0_56] : memref<1x2x8xf32, #tpu.memory_space<vmem>>, vector<1x1x8xf32>
    %74 = vector.shape_cast %73 : vector<1x1x8xf32> to vector<1x8xf32>
    %75 = vector.shape_cast %72 : vector<1x8xf32> to vector<1x1x8xf32>
    tpu.vector_store %arg6[%c0_54, %c0_55, %c0_56], %75 {strides = array<i32>} : memref<1x2x8xf32, #tpu.memory_space<vmem>>, vector<1x1x8xf32>,
    %76 = arith.mulf %67, %67 : vector<128x8xf32>
    %cst_57 = arith.constant dense<0.000000e+00> : vector<8xf32>
    %77 = vector.multi_reduction <add>, %76, %cst_57 [0] : vector<128x8xf32> to vector<8xf32>
    %78 = vector.shape_cast %77 : vector<8xf32> to vector<1x8xf32>
    %c0_58 = arith.constant 0 : index
    %c1_59 = arith.constant 1 : index
    %c0_60 = arith.constant 0 : index
    %79 = vector.load %arg6[%c0_58, %c1_59, %c0_60] : memref<1x2x8xf32, #tpu.memory_space<vmem>>, vector<1x1x8xf32>
    %80 = vector.shape_cast %79 : vector<1x1x8xf32> to vector<1x8xf32>
    %81 = vector.shape_cast %78 : vector<1x8xf32> to vector<1x1x8xf32>
    tpu.vector_store %arg6[%c0_58, %c1_59, %c0_60], %81 {strides = array<i32>} : memref<1x2x8xf32, #tpu.memory_space<vmem>>, vector<1x1x8xf32>,
    return
  }
  func.func @transform_0(%arg0: i32) -> (i32, i32, i32) {
    %c0_i32 = arith.constant 0 : i32
    %c0_i32_0 = arith.constant 0 : i32
    %c0_i32_1 = arith.constant 0 : i32
    return %arg0, %c0_i32, %c0_i32_0 : i32, i32, i32
  }
  func.func @transform_1(%arg0: i32) -> (i32, i32) {
    %c0_i32 = arith.constant 0 : i32
    %c0_i32_0 = arith.constant 0 : i32
    %c0_i32_1 = arith.constant 0 : i32
    return %c0_i32, %c0_i32_0 : i32, i32
  }
  func.func @transform_2(%arg0: i32) -> (i32, i32) {
    %c0_i32 = arith.constant 0 : i32
    %c0_i32_0 = arith.constant 0 : i32
    %c0_i32_1 = arith.constant 0 : i32
    return %c0_i32, %c0_i32_0 : i32, i32
  }
  func.func @transform_3(%arg0: i32) -> (i32, i32) {
    %c0_i32 = arith.constant 0 : i32
    %c0_i32_0 = arith.constant 0 : i32
    %c0_i32_1 = arith.constant 0 : i32
    return %c0_i32, %c0_i32_0 : i32, i32
  }
  func.func @transform_4(%arg0: i32) -> (i32, i32, i32) {
    %c0_i32 = arith.constant 0 : i32
    %c0_i32_0 = arith.constant 0 : i32
    %c0_i32_1 = arith.constant 0 : i32
    return %arg0, %c0_i32, %c0_i32_0 : i32, i32, i32
  }
  func.func @transform_5(%arg0: i32) -> (i32, i32, i32) {
    %c0_i32 = arith.constant 0 : i32
    %c0_i32_0 = arith.constant 0 : i32
    %c0_i32_1 = arith.constant 0 : i32
    return %arg0, %c0_i32, %c0_i32_0 : i32, i32, i32
  }
}

</mosaic_0001>

<bundles_post_ra>
// kernel: resblock_forward.5
= control target key start
LH: loop header
LB: loop body
LE: loop exit
PB: predicated region body
PF: predicated region fallthrough
CT: control target
= control target key end

     0   :  { %vm159_vm0 = vcmask 64512   ;;  %s439_s0 = inlined_call_operand.vmem [shape: bf16[2,64,8], index: 0, kind: input, shape index: {}]   ;;  %s440_s1 = inlined_call_operand.vmem [shape: bf16[2,64,8], index: 1, kind: input, shape index: {}]   ;;  %s441_s2 = inlined_call_operand.vmem [shape: f32[1,8], index: 2, kind: input, shape index: {}]   ;;  %s442_s3 = inlined_call_operand.vmem [shape: f32[1,8], index: 3, kind: input, shape index: {}]   ;;  %s443_s4 = inlined_call_operand.vmem [shape: f32[2,64,8], index: 4, kind: output, shape index: {}]  }
   0x1   :  { %v183_v0 = vld [vmem:[%s439_s0] sm:$0xff]   ;;  %v246_v5 = vld [vmem:[%s439_s0 + $0x8] sm:$0xff]   ;;  %v247_v12 = vld [vmem:[%s439_s0 + $0x10] sm:$0xff]  }
   0x2   :  { %v291_v1 = vld [vmem:[%s441_s2] ss:$0 sm:$0xff]  ;;  %v184_v2 = vunpack.c.l.bf16 %v183_v0  ;;  %v185_v4 = vunpack.c.h.bf16 %v183_v0  ;;  %v253_v6 = vld [vmem:[%s440_s1 + $0x8] sm:$0xff]   ;;  %v188_v10 = vunpack.c.l.bf16 %v246_v5  ;;  %v254_v13 = vld [vmem:[%s440_s1 + $0x10] sm:$0xff]   ;;  %v189_v16 = vunpack.c.h.bf16 %v246_v5 }
   0x3   :  { %v215_v3 = vld [vmem:[%s440_s1] sm:$0xff]   ;;  %v220_v11 = vunpack.c.l.bf16 %v253_v6  ;;  %v221_v17 = vunpack.c.h.bf16 %v253_v6  ;;  %v248_v18 = vld [vmem:[%s439_s0 + $0x18] sm:$0xff]   ;;  %v192_v20 = vunpack.c.l.bf16 %v247_v12  ;;  %v224_v21 = vunpack.c.l.bf16 %v254_v13  ;;  %v250_v54 = vld [vmem:[%s439_s0 + $0x28] sm:$0xff]  }
   0x4   :  { %v305_v7 = vld [vmem:[%s442_s3] ss:$0 sm:$0xff]  ;;  %v216_v8 = vunpack.c.l.bf16 %v215_v3  ;;  %v217_v9 = vunpack.c.h.bf16 %v215_v3  ;;  %v56_v14 = vmul.f32 %v184_v2, %v291_v1  ;;  %v57_v15 = vmul.f32 %v185_v4, %v291_v1  ;;  %v255_v23 = vld [vmem:[%s440_s1 + $0x18] sm:$0xff]   ;;  %v257_v55 = vld [vmem:[%s440_s1 + $0x28] sm:$0xff]  }
   0x5   :  { %v58_v19 = vmul.f32 %v188_v10, %v291_v1  ;;  %v193_v22 = vunpack.c.h.bf16 %v247_v12  ;;  %v59_v26 = vmul.f32 %v189_v16, %v291_v1  ;;  %v225_v27 = vunpack.c.h.bf16 %v254_v13  ;;  %v249_v40 = vld [vmem:[%s439_s0 + $0x20] sm:$0xff]   ;;  %v251_v0 = vld [vmem:[%s439_s0 + $0x30] sm:$0xff]   ;;  %v252_v16 = vld [vmem:[%s439_s0 + $0x38] sm:$0xff]  }
   0x6   :  { %v79_v24 = vadd.f32 %v305_v7, %v56_v14  ;;  %v80_v25 = vadd.f32 %v305_v7, %v57_v15  ;;  %v60_v29 = vmul.f32 %v192_v20, %v291_v1  ;;  %v196_v31 = vunpack.c.l.bf16 %v248_v18  ;;  %v256_v45 = vld [vmem:[%s440_s1 + $0x20] sm:$0xff]   ;;  %v258_v2 = vld [vmem:[%s440_s1 + $0x30] sm:$0xff]  }
   0x7   :  { %v81_v28 = vadd.f32 %v305_v7, %v58_v19  ;;  %v61_v30 = vmul.f32 %v193_v22, %v291_v1  ;;  %v82_v34 = vadd.f32 %v305_v7, %v59_v26  ;;  %v228_v35 = vunpack.c.l.bf16 %v255_v23 }
   0x8   :  { %v127_v32 = vadd.f32 %v216_v8, %v79_v24  ;;  %v128_v33 = vadd.f32 %v217_v9, %v80_v25  ;;  %v83_v37 = vadd.f32 %v305_v7, %v60_v29  ;;  %v62_v39 = vmul.f32 %v196_v31, %v291_v1 }
   0x9   :  { %v129_v36 = vadd.f32 %v220_v11, %v81_v28  ;;  %v84_v38 = vadd.f32 %v305_v7, %v61_v30  ;;  %v130_v43 = vadd.f32 %v221_v17, %v82_v34  ;;  %v197_v44 = vunpack.c.h.bf16 %v248_v18 }
   0xa   :  { %v143_v41 = vmax.f32 %v127_v32, 0.0  ;;  %v144_v42 = vmax.f32 %v128_v33, 0.0  ;;  %v131_v47 = vadd.f32 %v224_v21, %v83_v37  ;;  %v85_v49 = vadd.f32 %v305_v7, %v62_v39  ;;  %v259_v21 = vld [vmem:[%s440_s1 + $0x38] sm:$0xff]  }
   0xb   :  { %v145_v46 = vmax.f32 %v129_v36, 0.0  ;;  %v132_v48 = vadd.f32 %v225_v27, %v84_v38  ;;  %v146_v50 = vmax.f32 %v130_v43, 0.0  ;;  %v63_v51 = vmul.f32 %v197_v44, %v291_v1 }
   0xc   :  { %160 = vst.msk [vmem:[%s443_s4] sm:$0xff] %vm159_vm0, %v143_v41  ;;  %161 = vst.msk [vmem:[%s443_s4 + $0x8] sm:$0xff] %vm159_vm0, %v144_v42  ;;  %v229_v52 = vunpack.c.h.bf16 %v255_v23  ;;  %v200_v53 = vunpack.c.l.bf16 %v249_v40  ;;  %v147_v56 = vmax.f32 %v131_v47, 0.0  ;;  %v133_v58 = vadd.f32 %v228_v35, %v85_v49 }
   0xd   :  { %162 = vst.msk [vmem:[%s443_s4 + $0x10] sm:$0xff] %vm159_vm0, %v145_v46  ;;  %v148_v57 = vmax.f32 %v132_v48, 0.0  ;;  %v232_v59 = vunpack.c.l.bf16 %v256_v45  ;;  %163 = vst.msk [vmem:[%s443_s4 + $0x18] sm:$0xff] %vm159_vm0, %v146_v50  ;;  %v86_v60 = vadd.f32 %v305_v7, %v63_v51  ;;  %v201_v62 = vunpack.c.h.bf16 %v249_v40 }
   0xe   :  { %v64_v61 = vmul.f32 %v200_v53, %v291_v1  ;;  %v233_v63 = vunpack.c.h.bf16 %v256_v45  ;;  %164 = vst.msk [vmem:[%s443_s4 + $0x20] sm:$0xff] %vm159_vm0, %v147_v56  ;;  %v149_v3 = vmax.f32 %v133_v58, 0.0  ;;  %v204_v4 = vunpack.c.l.bf16 %v250_v54 }
   0xf   :  { %165 = vst.msk [vmem:[%s443_s4 + $0x28] sm:$0xff] %vm159_vm0, %v148_v57  ;;  %v236_v5 = vunpack.c.l.bf16 %v257_v55  ;;  %v205_v6 = vunpack.c.h.bf16 %v250_v54  ;;  %v134_v8 = vadd.f32 %v229_v52, %v86_v60  ;;  %v65_v10 = vmul.f32 %v201_v62, %v291_v1 }
  0x10   :  { %v87_v9 = vadd.f32 %v305_v7, %v64_v61  ;;  %v237_v11 = vunpack.c.h.bf16 %v257_v55  ;;  %166 = vst.msk [vmem:[%s443_s4 + $0x30] sm:$0xff] %vm159_vm0, %v149_v3  ;;  %v66_v12 = vmul.f32 %v204_v4, %v291_v1  ;;  %v208_v14 = vunpack.c.l.bf16 %v251_v0 }
  0x11   :  { %v67_v13 = vmul.f32 %v205_v6, %v291_v1  ;;  %v240_v15 = vunpack.c.l.bf16 %v258_v2  ;;  %v150_v17 = vmax.f32 %v134_v8, 0.0  ;;  %v88_v19 = vadd.f32 %v305_v7, %v65_v10 }
  0x12   :  { %v135_v18 = vadd.f32 %v232_v59, %v87_v9  ;;  %v209_v20 = vunpack.c.h.bf16 %v251_v0  ;;  %v89_v22 = vadd.f32 %v305_v7, %v66_v12  ;;  %v68_v24 = vmul.f32 %v208_v14, %v291_v1 }
  0x13   :  { %v90_v23 = vadd.f32 %v305_v7, %v67_v13  ;;  %v241_v25 = vunpack.c.h.bf16 %v258_v2  ;;  %167 = vst.msk [vmem:[%s443_s4 + $0x38] sm:$0xff] %vm159_vm0, %v150_v17  ;;  %v136_v27 = vadd.f32 %v233_v63, %v88_v19  ;;  %v212_v29 = vunpack.c.l.bf16 %v252_v16 }
  0x14   :  { %v151_v26 = vmax.f32 %v135_v18, 0.0  ;;  %v69_v28 = vmul.f32 %v209_v20, %v291_v1  ;;  %v137_v30 = vadd.f32 %v236_v5, %v89_v22  ;;  %v91_v32 = vadd.f32 %v305_v7, %v68_v24 }
  0x15   :  { %v138_v31 = vadd.f32 %v237_v11, %v90_v23  ;;  %v244_v33 = vunpack.c.l.bf16 %v259_v21  ;;  %v152_v34 = vmax.f32 %v136_v27, 0.0  ;;  %v70_v36 = vmul.f32 %v212_v29, %v291_v1 }
  0x16   :  { %168 = vst.msk [vmem:[%s443_s4 + $0x40] sm:$0xff] %vm159_vm0, %v151_v26  ;;  %v92_v35 = vadd.f32 %v305_v7, %v69_v28  ;;  %v213_v37 = vunpack.c.h.bf16 %v252_v16  ;;  %v153_v38 = vmax.f32 %v137_v30, 0.0  ;;  %v139_v40 = vadd.f32 %v240_v15, %v91_v32 }
  0x17   :  { %v154_v39 = vmax.f32 %v138_v31, 0.0  ;;  %169 = vst.msk [vmem:[%s443_s4 + $0x48] sm:$0xff] %vm159_vm0, %v152_v34  ;;  %v93_v42 = vadd.f32 %v305_v7, %v70_v36  ;;  %v245_v44 = vunpack.c.h.bf16 %v259_v21 }
  0x18   :  { %v140_v41 = vadd.f32 %v241_v25, %v92_v35  ;;  %v71_v43 = vmul.f32 %v213_v37, %v291_v1  ;;  %170 = vst.msk [vmem:[%s443_s4 + $0x50] sm:$0xff] %vm159_vm0, %v153_v38  ;;  %v155_v45 = vmax.f32 %v139_v40, 0.0 }
  0x19   :  { %171 = vst.msk [vmem:[%s443_s4 + $0x58] sm:$0xff] %vm159_vm0, %v154_v39  ;;  %v141_v47 = vadd.f32 %v244_v33, %v93_v42 }
  0x1a   :  { %v156_v46 = vmax.f32 %v140_v41, 0.0  ;;  %v94_v48 = vadd.f32 %v305_v7, %v71_v43  ;;  %172 = vst.msk [vmem:[%s443_s4 + $0x60] sm:$0xff] %vm159_vm0, %v155_v45 }
  0x1b   :  { %v157_v1 = vmax.f32 %v141_v47, 0.0 }
  0x1c   :  { %173 = vst.msk [vmem:[%s443_s4 + $0x68] sm:$0xff] %vm159_vm0, %v156_v46  ;;  %v142_v49 = vadd.f32 %v245_v44, %v94_v48 }
  0x1d   :  { %174 = vst.msk [vmem:[%s443_s4 + $0x70] sm:$0xff] %vm159_vm0, %v157_v1 }
  0x1e   :  { %v158_v50 = vmax.f32 %v142_v49, 0.0 }
  0x20   :  { %175 = vst.msk [vmem:[%s443_s4 + $0x78] sm:$0xff] %vm159_vm0, %v158_v50 }

// kernel: resblock_forward.3
= control target key start
LH: loop header
LB: loop body
LE: loop exit
PB: predicated region body
PF: predicated region fallthrough
CT: control target
= control target key end

     0   :  { %vm184_vm0 = vcmask 1043456   ;;  %vm159_vm1 = vcmask 64512   ;;  %vm449_vm2 = vsmask.f32 3328  ;;  %vm450_vm3 = vsmask.f32 7440  ;;  %s4232_s1 = inlined_call_operand.vmem [shape: bf16[72,8], index: 1, kind: input, shape index: {}]   ;;  %s4233_s0 = inlined_call_operand.vmem [shape: bf16[2,36,9,8], index: 0, kind: input, shape index: {}]   ;;  %s4234_s3 = inlined_call_operand.vmem [shape: bf16[2,64,8], index: 3, kind: output, shape index: {1}]   ;;  %s4235_s2 = inlined_call_operand.vmem [shape: bf16[2,64,8], index: 2, kind: output, shape index: {0}]   ;;  %s4236_s4 = inlined_call_operand.vmem [shape: f32[1,2,8], index: 4, kind: output, shape index: {2}]  }
   0x1   :  { %v118_v0 = vld [vmem:[%s4232_s1 + $0x4] sm:$0xf]  ;;  %v2979_v1 = vld [vmem:[%s4232_s1 + $0x10] sm:$0xf]  ;;  %v2984_v2 = vld [vmem:[%s4233_s0 + $0x8] sm:$0xf] }
   0x2   :  { %2908 = vmatprep.subr.msk.bf16.mxu1 %vm184_vm0, %v118_v0  ;;  %2912 = vmatprep.subr.msk.bf16.mxu0 %vm184_vm0, %v2979_v1  ;;  %v186_v3 = vsel %vm184_vm0, %v118_v0, 0  ;;  %v2992_v4 = vsel %vm184_vm0, %v2979_v1, 0  ;;  %v18_v5 = vld [vmem:[%s4233_s0 + $0xc] sm:$0x1]  ;;  %v33_v6 = vld [vmem:[%s4233_s0 + $0x48] sm:$0xf]  ;;  %vm3063_vm4 = vmor %vm449_vm2, %vm450_vm3 }
   0x3   :  { %4290 = vst [vmem:[#allocation2_spill] sm:$0xff] %v2992_v4  ;;  %2617 = vmatpush3.bf16.msra.mxu1 %v186_v3  ;;  %2689 = vmatpush3.bf16.msra.mxu0 %v2992_v4  ;;  %v3004_v7 = vld [vmem:[%s4233_s0 + $0x50] sm:$0xf]  ;;  %v3009_v8 = vld [vmem:[%s4233_s0 + $0x58] sm:$0xf]  ;;  %v467_v9 = vshrl.u32 %v2984_v2, 16 }
   0x4   :  { %4291 = vst [vmem:[#allocation3_spill] sm:$0xff] %v3004_v7  ;;  %4292 = vst [vmem:[#allocation4_spill] sm:$0xff] %v3009_v8  ;;  %v470_v10 = vshll.u32 %v2984_v2, 16  ;;  %v2359_v11 = vcombine.low %v33_v6, %v3004_v7  ;;  %v476_v12 = vshll.u32 %v18_v5, 16  ;;  %v3019_v16 = vld [vmem:[%s4233_s0 + $0x10] sm:$0xf] }
   0x5   :  { %v469_v14 = vrot.slane %v467_v9, 4  ;;  %v20_v17 = vld [vmem:[%s4233_s0 + $0x14] sm:$0x1]  ;;  %v3028_v19 = vld [vmem:[%s4233_s0 + $0x18] sm:$0xf]  ;;  %v481_v21 = vshrl.u32 %v3019_v16, 16 }
   0x6   :  { %v472_v15 = vrot.slane %v470_v10, 5  ;;  %2618 = vmatprep.mubr.msk.bf16.mxu1 %vm159_vm1, %v2359_v11  ;;  %v478_v18 = vrot.slane %v476_v12, 5  ;;  %v22_v20 = vld [vmem:[%s4233_s0 + $0x1c] sm:$0x1]  ;;  %v42_v23 = vld [vmem:[%s4233_s0 + $0x90] sm:$0xf] }
   0x7   :  { %v43_v24 = vld [vmem:[%s4233_s0 + $0x94] sm:$0x1]  ;;  %v3043_v25 = vld [vmem:[%s4233_s0 + $0xd8] sm:$0xf]  ;;  %v3051_v27 = vld [vmem:[%s4233_s0 + $0xe0] sm:$0xf] }
   0x8   :  { %v473_v22 = vor.u32 %v472_v15, %v469_v14  ;;  %v44_v26 = vld [vmem:[%s4233_s0 + $0x98] sm:$0xf]  ;;  %v483_v28 = vrot.slane %v481_v21, 4  ;;  %v484_v29 = vshll.u32 %v3019_v16, 16  ;;  %v490_v30 = vshll.u32 %v20_v17, 16 }
   0x9   :  { %v495_v31 = vshrl.u32 %v3028_v19, 16  ;;  %v45_v33 = vld [vmem:[%s4233_s0 + $0x9c] sm:$0x1]  ;;  %v498_v34 = vshll.u32 %v3028_v19, 16  ;;  %v504_v35 = vshll.u32 %v22_v20, 16  ;;  %v2423_v36 = vcombine.low %v3043_v25, %v3051_v27 }
   0xa   :  { %v474_v32 = vrot.slane %v473_v22, 4  ;;  %v486_v38 = vrot.slane %v484_v29, 5  ;;  %v1204_v40 = vshrl.u32 %v42_v23, 16  ;;  %v3070_v41 = vld [vmem:[%s4232_s1] sm:$0xf]  ;;  %v492_v43 = vrot.slane %v490_v30, 5 }
   0xb   :  { %v497_v39 = vrot.slane %v495_v31, 4  ;;  %v500_v44 = vrot.slane %v498_v34, 5  ;;  %2690 = vmatprep.mubr.msk.bf16.mxu0 %vm159_vm1, %v2423_v36  ;;  %v1207_v45 = vshll.u32 %v42_v23, 16  ;;  %v3080_v46 = vld [vmem:[%s4233_s0 + $0x60] sm:$0xf]  ;;  %2909 = vmatprep.subr.msk.bf16.mxu1 %vm184_vm0, %v3070_v41  ;;  %v506_v48 = vrot.slane %v504_v35, 5 }
   0xc   :  { %v3074_v42 = vsel %vm3063_vm4, %v474_v32, %v478_v18  ;;  %4295 = vst [vmem:[#allocation5_spill] sm:$0xff] %v3080_v46  ;;  %v487_v47 = vor.u32 %v486_v38, %v483_v28  ;;  %v1206_v49 = vrot.slane %v1204_v40, 4  ;;  %v1213_v50 = vshll.u32 %v43_v24, 16  ;;  %v46_v55 = vld [vmem:[%s4233_s0 + $0xa0] sm:$0xf] }
   0xd   :  { %v501_v51 = vor.u32 %v500_v44, %v497_v39  ;;  %v1209_v52 = vrot.slane %v1207_v45, 5  ;;  %v1218_v53 = vshrl.u32 %v44_v26, 16  ;;  %v1221_v54 = vshll.u32 %v44_v26, 16  ;;  %v47_v60 = vld [vmem:[%s4233_s0 + $0xa4] sm:$0x1] }
   0xe   :  { %v488_v56 = vrot.slane %v487_v47, 4  ;;  %v1215_v57 = vrot.slane %v1213_v50, 5  ;;  %v1227_v58 = vshll.u32 %v45_v33, 16  ;;  %v2360_v59 = vcombine.low %v3009_v8, %v3080_v46  ;;  %v3095_v61 = vld [vmem:[%s4233_s0 + $0xe8] sm:$0xf] }
   0xf   :  { %v502_v62 = vrot.slane %v501_v51, 4  ;;  %v1210_v63 = vor.u32 %v1209_v52, %v1206_v49  ;;  %v1220_v0 = vrot.slane %v1218_v53, 4  ;;  %v1223_v3 = vrot.slane %v1221_v54, 5  ;;  %v3100_v5 = vld [vmem:[%s4233_s0 + $0xf0] sm:$0xf] }
  0x10   :  { %vm2141_vm5 = vcmask 60416   ;;  %v2206_v6 = vmax.bf16 %v3074_v42, %v3004_v7  ;;  %v3106_v9 = vsel %vm3063_vm4, %v488_v56, %v492_v43  ;;  %2619 = vmatmul.mubr.msk.bf16.vlgmr.msra.gmra.mrb[0].mxu1 %vm159_vm1, %v2360_v59  ;;  %v48_v10 = vld [vmem:[%s4233_s0 + $0xa8] sm:$0xf]  ;;  %v2424_v11 = vcombine.low %v3095_v61, %v3100_v5  ;;  %v1427_v14 = vld [vmem:[%s4232_s1 + $0x14] sm:$0xf] }
  0x11   :  { %v1232_v12 = vshrl.u32 %v46_v55, 16  ;;  %v3119_v15 = vsel %vm3063_vm4, %v502_v62, %v506_v48  ;;  %v1211_v17 = vrot.slane %v1210_v63, 4  ;;  %v1224_v18 = vor.u32 %v1223_v3, %v1220_v0  ;;  %v49_v21 = vld [vmem:[%s4233_s0 + $0xac] sm:$0x1]  ;;  %2914 = vmatprep.subr.msk.bf16.mxu0 %vm184_vm0, %v1427_v14  ;;  %v3133_v28 = vld [vmem:[%s4233_s0 + $0x68] sm:$0xf] }
  0x12   :  { %v1229_v20 = vrot.slane %v1227_v58, 5  ;;  %v2207_v22 = vmax.bf16 %v3106_v9, %v3009_v8  ;;  %v2208_v23 = vmax.bf16 %v3119_v15, %v3080_v46  ;;  %2691 = vmatmul.mubr.msk.bf16.vlgmr.msra.gmra.mrb[0].mxu0 %vm159_vm1, %v2424_v11  ;;  %v1235_v26 = vshll.u32 %v46_v55, 16  ;;  %v3138_v29 = vld [vmem:[%s4233_s0 + $0x70] sm:$0xf]  ;;  %v3147_v34 = vld [vmem:[%s4233_s0 + $0xf8] sm:$0xf] }
  0x13   :  { %v1234_v24 = vrot.slane %v1232_v12, 4  ;;  %v3142_v30 = vsel %vm3063_vm4, %v1211_v17, %v1215_v57  ;;  %v1225_v31 = vrot.slane %v1224_v18, 4  ;;  %v1241_v32 = vshll.u32 %v47_v60, 16  ;;  %v3152_v35 = vld [vmem:[%s4233_s0 + $0x100] sm:$0xf] }
  0x14   :  { %v1246_v33 = vshrl.u32 %v48_v10, 16  ;;  %v2174_v36 = vmax.bf16 %v3142_v30, %v3043_v25  ;;  %v1237_v38 = vrot.slane %v1235_v26, 5  ;;  %v1249_v39 = vshll.u32 %v48_v10, 16  ;;  %v3159_v43 = vld [vmem:[%s4233_s0 + $0x78] sm:$0xf] }
  0x15   :  { %v1255_v40 = vshll.u32 %v49_v21, 16  ;;  %v3164_v44 = vld [vmem:[%s4233_s0 + $0x80] sm:$0xf]  ;;  %v3169_v45 = vld [vmem:[%s4233_s0 + $0x108] sm:$0xf]  ;;  %v1230_v25 = vsel %vm3063_vm4, %v1225_v31, %v1229_v20  ;;  %v1243_v47 = vrot.slane %v1241_v32, 5  ;;  %v2361_v59 = vcombine.low %v3133_v28, %v3138_v29 }
  0x16   :  { %v1248_v48 = vrot.slane %v1246_v33, 4  ;;  %v350_v49 = vsel %vm184_vm0, %v3070_v41, 0  ;;  %v3178_v50 = vld [vmem:[%s4233_s0 + $0x110] sm:$0xf]  ;;  %v2439_v51 = vcombine.low %v3142_v30, %v1230_v25  ;;  %v2175_v52 = vmax.bf16 %v1230_v25, %v3051_v27  ;;  %v84_v55 = vld [vmem:[%s4233_s0 + $0x168] sm:$0xf] }
  0x17   :  { %4296 = vst [vmem:[#allocation6_spill] sm:$0xff] %v3178_v50  ;;  %v2222_v53 = vmax.bf16 %v2206_v6, %v2174_v36  ;;  %v1238_v54 = vor.u32 %v1237_v38, %v1234_v24  ;;  %2635 = vmatpush3.bf16.msra.mxu1 %v350_v49  ;;  %v3188_v41 = vld [vmem:[%s4233_s0 + $0x170] sm:$0xf]  ;;  %v3193_v56 = vld [vmem:[%s4233_s0 + $0x178] sm:$0xf]  ;;  %v1251_v57 = vrot.slane %v1249_v39, 5  ;;  %v2425_v3 = vcombine.low %v3147_v34, %v3152_v35 }
  0x18   :  { %4297 = vst [vmem:[#allocation7_spill] sm:$0xff] %v3188_v41  ;;  %4298 = vst [vmem:[#allocation8_spill] sm:$0xff] %v3193_v56  ;;  %v1257_v58 = vrot.slane %v1255_v40, 5  ;;  %v1477_v27 = vsel %vm184_vm0, %v1427_v14, 0  ;;  %v3201_v60 = vld [vmem:[%s4233_s0 + $0x180] sm:$0xf]  ;;  %v2223_v62 = vmax.bf16 %v2207_v22, %v2175_v52  ;;  %2622 = vmatprep.mubr.msk.bf16.mxu1 %vm159_vm1, %v2361_v59  ;;  %v2362_v11 = vcombine.low %v3159_v43, %v3164_v44 }
  0x19   :  { %4299 = vst [vmem:[#allocation9_spill] sm:$0xff] %v3201_v60  ;;  %2238 = vst.msk [vmem:[%s4234_s3] sm:$0xf] %vm2141_vm5, %v2222_v53  ;;  %v1239_v63 = vrot.slane %v1238_v54, 4  ;;  %2707 = vmatpush3.bf16.msra.mxu0 %v1477_v27  ;;  %v1592_v6 = vld [vmem:[%s4232_s1 + $0x18] sm:$0xf]  ;;  %v1252_v10 = vor.u32 %v1251_v57, %v1248_v48  ;;  %v2426_v12 = vcombine.low %v3169_v45, %v3178_v50  ;;  %2694 = vmatprep.mubr.msk.bf16.mxu0 %vm159_vm1, %v2425_v3 }
  0x1a   :  { %v2363_v14 = vcombine.low %v84_v55, %v3188_v41  ;;  %v3223_v17 = vld [vmem:[%s4233_s0 + $0xb0] sm:$0xf]  ;;  %v51_v18 = vld [vmem:[%s4233_s0 + $0xb4] sm:$0x1]  ;;  %2239 = vst.msk [vmem:[%s4234_s3 + $0x4] sm:$0xf] %vm2141_vm5, %v2223_v62  ;;  %v2364_v21 = vcombine.low %v3193_v56, %v3201_v60  ;;  %2915 = vmatprep.subr.msk.bf16.mxu0 %vm184_vm0, %v1592_v6  ;;  %2623 = vmatmul.mubr.msk.bf16.gmra.mrb[4].mxu1 %vm159_vm1, %v2362_v11 }
  0x1b   :  { %4300 = vst [vmem:[#allocation10_spill] sm:$0xff] %v3223_v17  ;;  %v1244_v20 = vsel %vm3063_vm4, %v1239_v63, %v1243_v47  ;;  %v3241_v22 = vld [vmem:[%s4233_s0 + $0x188] sm:$0xf]  ;;  %v3246_v24 = vld [vmem:[%s4233_s0 + $0xb8] sm:$0xf]  ;;  %v1253_v30 = vrot.slane %v1252_v10, 4  ;;  %2695 = vmatmul.mubr.msk.bf16.gmra.mrb[4].mxu0 %vm159_vm1, %v2426_v12 }
  0x1c   :  { %4301 = vst [vmem:[#allocation11_spill] sm:$0xff] %v3241_v22  ;;  %4302 = vst [vmem:[#allocation12_spill] sm:$0xff] %v3246_v24  ;;  %v53_v26 = vld [vmem:[%s4233_s0 + $0xbc] sm:$0x1]  ;;  %v2176_v31 = vmax.bf16 %v1244_v20, %v3095_v61  ;;  %v3257_v32 = vld [vmem:[%s4233_s0 + $0x190] sm:$0xf]  ;;  %2626 = vmatprep.mubr.msk.bf16.mxu1 %vm159_vm1, %v2363_v14  ;;  %2708 = vmatprep.mubr.msk.bf16.mxu0 %vm159_vm1, %v2439_v51 }
  0x1d   :  { %4303 = vst [vmem:[#allocation13_spill] sm:$0xff] %v3257_v32  ;;  %v1260_v33 = vshrl.u32 %v3223_v17, 16  ;;  %v1263_v36 = vshll.u32 %v3223_v17, 16  ;;  %v1269_v38 = vshll.u32 %v51_v18, 16  ;;  %v1274_v61 = vshrl.u32 %v3246_v24, 16 }
  0x1e   :  { %v1277_v39 = vshll.u32 %v3246_v24, 16  ;;  %v1283_v40 = vshll.u32 %v53_v26, 16  ;;  %v3267_v25 = vsel %vm3063_vm4, %v1253_v30, %v1257_v58  ;;  %v2224_v47 = vmax.bf16 %v2208_v23, %v2176_v31  ;;  %v3275_v51 = vld [vmem:[%s4233_s0 + $0xc0] sm:$0xf]  ;;  %v55_v52 = vld [vmem:[%s4233_s0 + $0xc4] sm:$0x1] }
  0x1f   :  { %v1262_v48 = vrot.slane %v1260_v33, 4  ;;  %v1265_v49 = vrot.slane %v1263_v36, 5  ;;  %4304 = vst [vmem:[#allocation14_spill] sm:$0xff] %v3275_v51  ;;  %v2440_v53 = vcombine.low %v1244_v20, %v3267_v25  ;;  %v1630_v54 = vsel %vm184_vm0, %v1592_v6, 0  ;;  %v3287_v23 = vld [vmem:[%s4233_s0 + $0xc8] sm:$0xf] }
  0x20   :  { %v2365_v55 = vcombine.low %v3241_v22, %v3257_v32  ;;  %v1276_v57 = vrot.slane %v1274_v61, 4  ;;  %4305 = vst [vmem:[#allocation15_spill] sm:$0xff] %v3287_v23  ;;  %v57_v58 = vld [vmem:[%s4233_s0 + $0xcc] sm:$0x1]  ;;  %2240 = vst.msk [vmem:[%s4234_s3 + $0x8] sm:$0xf] %vm2141_vm5, %v2224_v47 }
  0x21   :  { %v1266_v27 = vor.u32 %v1265_v49, %v1262_v48  ;;  %v1271_v59 = vrot.slane %v1269_v38, 5  ;;  %v1279_v62 = vrot.slane %v1277_v39, 5  ;;  %v1285_v63 = vrot.slane %v1283_v40, 5  ;;  %v3302_v18 = vld [vmem:[%s4233_s0 + $0x198] sm:$0xf] }
  0x22   :  { %v1288_v3 = vshrl.u32 %v3275_v51, 16  ;;  %v1291_v6 = vshll.u32 %v3275_v51, 16  ;;  %v1297_v10 = vshll.u32 %v55_v52, 16  ;;  %v1302_v11 = vshrl.u32 %v3287_v23, 16  ;;  %4306 = vst [vmem:[#allocation16_spill] sm:$0xff] %v3302_v18  ;;  %2627 = vmatmul.mubr.msk.bf16.gmra.mrb[8].mxu1 %vm159_vm1, %v2364_v21 }
  0x23   :  { %v1267_v12 = vrot.slane %v1266_v27, 4  ;;  %v1280_v14 = vor.u32 %v1279_v62, %v1276_v57  ;;  %v1305_v20 = vshll.u32 %v3287_v23, 16  ;;  %v1311_v26 = vshll.u32 %v57_v58, 16  ;;  %v3308_v36 = vld [vmem:[%s4233_s0 + $0x1b0] sm:$0xf]  ;;  %2709 = vmatmul.mubr.msk.bf16.vlgmr.msra.gmra.mrb[0].mxu0 %vm159_vm1, %v2440_v53  ;;  %2630 = vmatprep.mubr.msk.bf16.mxu1 %vm159_vm1, %v2365_v55 }
  0x24   :  { %v1290_v30 = vrot.slane %v1288_v3, 4  ;;  %v1293_v31 = vrot.slane %v1291_v6, 5  ;;  %v1304_v33 = vrot.slane %v1302_v11, 4  ;;  %4307 = vst [vmem:[#allocation17_spill] sm:$0xff] %v3308_v36  ;;  %v3319_v39 = vld [vmem:[%s4233_s0 + $0x1a0] sm:$0xf]  ;;  %2725 = vmatpush3.bf16.msra.mxu0 %v1630_v54 }
  0x25   :  { %v3314_v38 = vsel %vm3063_vm4, %v1267_v12, %v1271_v59  ;;  %v1281_v61 = vrot.slane %v1280_v14, 4  ;;  %4308 = vst [vmem:[#allocation18_spill] sm:$0xff] %v3319_v39  ;;  %v1307_v40 = vrot.slane %v1305_v20, 5  ;;  %v3324_v47 = vld [vmem:[%s4232_s1 + $0x8] sm:$0xf]  ;;  %v1299_v48 = vrot.slane %v1297_v10, 5 }
  0x26   :  { %v1294_v21 = vor.u32 %v1293_v31, %v1290_v30  ;;  %v3330_v49 = vld [vmem:[%s4233_s0] sm:$0xf]  ;;  %v1313_v57 = vrot.slane %v1311_v26, 5  ;;  %v94_v58 = vld [vmem:[%s4233_s0 + $0x1b4] sm:$0x1]  ;;  %v1316_v55 = vshrl.u32 %v3308_v36, 16  ;;  %2910 = vmatprep.subr.msk.bf16.mxu1 %vm184_vm0, %v3324_v47  ;;  %v2366_v59 = vcombine.low %v3302_v18, %v3319_v39 }
  0x27   :  { %v3334_v52 = vsel %vm3063_vm4, %v1281_v61, %v1285_v63  ;;  %v1308_v53 = vor.u32 %v1307_v40, %v1304_v33  ;;  %v3342_v54 = vld [vmem:[%s4233_s0 + $0x1b8] sm:$0xf]  ;;  %v96_v63 = vld [vmem:[%s4233_s0 + $0x1bc] sm:$0x1]  ;;  %v2375_v6 = vcombine.low %v3330_v49, %v2984_v2  ;;  %v1319_v11 = vshll.u32 %v3308_v36, 16 }
  0x28   :  { %4309 = vst [vmem:[#allocation19_spill] sm:$0xff] %v3342_v54  ;;  %v2441_v27 = vcombine.low %v3314_v38, %v3334_v52  ;;  %v1295_v62 = vrot.slane %v1294_v21, 4  ;;  %v1318_v10 = vrot.slane %v1316_v55, 4  ;;  %v1325_v14 = vshll.u32 %v94_v58, 16  ;;  %v3367_v30 = vld [vmem:[%s4233_s0 + $0x1c0] sm:$0xf] }
  0x29   :  { %v1309_v3 = vrot.slane %v1308_v53, 4  ;;  %v1330_v20 = vshrl.u32 %v3342_v54, 16  ;;  %v1333_v26 = vshll.u32 %v3342_v54, 16  ;;  %4310 = vst [vmem:[#allocation20_spill] sm:$0xff] %v3367_v30  ;;  %v1321_v33 = vrot.slane %v1319_v11, 5 }
  0x2a   :  { %2712 = vmatprep.mubr.msk.bf16.mxu0 %vm159_vm1, %v2441_v27  ;;  %v3360_v12 = vsel %vm3063_vm4, %v1295_v62, %v1299_v48  ;;  %v1339_v61 = vshll.u32 %v96_v63, 16  ;;  %v98_v40 = vld [vmem:[%s4233_s0 + $0x1c4] sm:$0x1]  ;;  %v3379_v21 = vld [vmem:[%s4233_s0 + $0x1c8] sm:$0xf]  ;;  %2631 = vmatmul.mubr.msk.bf16.gmra.mrb[12].mxu1 %vm159_vm1, %v2366_v59  ;;  %v1327_v27 = vrot.slane %v1325_v14, 5 }
  0x2b   :  { %v3371_v31 = vsel %vm3063_vm4, %v1309_v3, %v1313_v57  ;;  %4312 = vst [vmem:[#allocation22_spill] sm:$0xff] %v3379_v21  ;;  %v1332_v58 = vrot.slane %v1330_v20, 4  ;;  %v100_v57 = vld [vmem:[%s4233_s0 + $0x1cc] sm:$0x1]  ;;  %v1322_v55 = vor.u32 %v1321_v33, %v1318_v10  ;;  %v1335_v62 = vrot.slane %v1333_v26, 5  ;;  %2636 = vmatprep.mubr.msk.bf16.mxu1 %vm159_vm1, %v2375_v6 }
  0x2c   :  { %4311 = vst [vmem:[#allocation21_spill] sm:$0xff] %v3371_v31  ;;  %v2442_v48 = vcombine.low %v3360_v12, %v3371_v31  ;;  %v1341_v63 = vrot.slane %v1339_v61, 5  ;;  %v1344_v3 = vshrl.u32 %v3367_v30, 16  ;;  %v1347_v11 = vshll.u32 %v3367_v30, 16  ;;  %v3398_v10 = vld [vmem:[%s4233_s0 + $0x20] sm:$0xf] }
  0x2d   :  { %v1353_v53 = vshll.u32 %v98_v40, 16  ;;  %v1358_v20 = vshrl.u32 %v3379_v21, 16  ;;  %v1323_v0 = vrot.slane %v1322_v55, 4  ;;  %v1336_v13 = vor.u32 %v1335_v62, %v1332_v58  ;;  %v3403_v33 = vld [vmem:[%s4233_s0 + $0x28] sm:$0xf] }
  0x2e   :  { %2713 = vmatmul.mubr.msk.bf16.gmra.mrb[4].mxu0 %vm159_vm1, %v2442_v48  ;;  %v1361_v36 = vshll.u32 %v3379_v21, 16  ;;  %v1367_v59 = vshll.u32 %v100_v57, 16  ;;  %v1346_v14 = vrot.slane %v1344_v3, 4  ;;  %v1349_v26 = vrot.slane %v1347_v11, 5  ;;  %v3495_v50 = vld [vmem:[%s4232_s1 + $0xc] sm:$0xf] }
  0x2f   :  { %v1360_v6 = vrot.slane %v1358_v20, 4  ;;  %v3407_v61 = vsel %vm3063_vm4, %v1323_v0, %v1327_v27  ;;  %v1337_v40 = vrot.slane %v1336_v13, 4  ;;  %v2376_v48 = vcombine.low %v3019_v16, %v3028_v19  ;;  %v3546_v7 = vld [vmem:[%s4233_s0 + $0x130] sm:$0xf] }
  0x30   :  { %4313 = vst [vmem:[#allocation23_spill] sm:$0xff] %v3407_v61  ;;  %v1363_v58 = vrot.slane %v1361_v36, 5  ;;  %v1350_v57 = vor.u32 %v1349_v26, %v1346_v14  ;;  %v1355_v55 = vrot.slane %v1353_v53, 5  ;;  %v1369_v62 = vrot.slane %v1367_v59, 5  ;;  %v3424_v36 = vld [vmem:[%s4233_s0 + $0x1d0] sm:$0xf] }
  0x31   :  { %v3415_v11 = vsel %vm3063_vm4, %v1337_v40, %v1341_v63  ;;  %v726_v0 = vsel %vm184_vm0, %v3324_v47, 0  ;;  %v2377_v13 = vcombine.low %v3398_v10, %v3403_v33  ;;  %4315 = vst [vmem:[#allocation25_spill] sm:$0xff] %v3424_v36  ;;  %v102_v53 = vld [vmem:[%s4233_s0 + $0x1d4] sm:$0x1]  ;;  %v3438_v14 = vld [vmem:[%s4233_s0 + $0x1d8] sm:$0xf] }
  0x32   :  { %4314 = vst [vmem:[#allocation24_spill] sm:$0xff] %v3415_v11  ;;  %v1364_v20 = vor.u32 %v1363_v58, %v1360_v6  ;;  %v2443_v47 = vcombine.low %v3407_v61, %v3415_v11  ;;  %v1351_v59 = vrot.slane %v1350_v57, 4  ;;  %4316 = vst [vmem:[#allocation26_spill] sm:$0xff] %v3438_v14  ;;  %v3443_v26 = vld [vmem:[%s4232_s1 + $0x1c] sm:$0xf]  ;;  %v453_v40 = vshrl.u32 %v3330_v49, 16  ;;  %2637 = vmatmul.mubr.msk.bf16.vlgmr.msra.gmra.mrb[0].mxu1 %vm159_vm1, %v2376_v48 }
  0x33   :  { %v456_v58 = vshll.u32 %v3330_v49, 16  ;;  %2916 = vmatprep.subr.msk.bf16.mxu0 %vm184_vm0, %v3443_v26  ;;  %2653 = vmatpush3.bf16.msra.mxu1 %v726_v0  ;;  %v104_v49 = vld [vmem:[%s4233_s0 + $0x1dc] sm:$0x1]  ;;  %v1372_v48 = vshrl.u32 %v3424_v36, 16  ;;  %v3467_v6 = vld [vmem:[%s4233_s0 + $0x30] sm:$0xf] }
  0x34   :  { %v1365_v57 = vrot.slane %v1364_v20, 4  ;;  %2716 = vmatprep.mubr.msk.bf16.mxu0 %vm159_vm1, %v2443_v47  ;;  %v3457_v27 = vsel %vm3063_vm4, %v1351_v59, %v1355_v55  ;;  %v1375_v20 = vshll.u32 %v3424_v36, 16  ;;  %2640 = vmatprep.mubr.msk.bf16.mxu1 %vm159_vm1, %v2377_v13  ;;  %v509_v55 = vshrl.u32 %v3398_v10, 16  ;;  %v3479_v63 = vld [vmem:[%s4233_s0 + $0x38] sm:$0xf] }
  0x35   :  { %4317 = vst [vmem:[#allocation27_spill] sm:$0xff] %v3457_v27  ;;  %v1381_v0 = vshll.u32 %v102_v53, 16  ;;  %v1386_v59 = vshrl.u32 %v3438_v14, 16  ;;  %v512_v54 = vshll.u32 %v3398_v10, 16  ;;  %v1374_v51 = vrot.slane %v1372_v48, 4  ;;  %2911 = vmatprep.subr.msk.bf16.mxu1 %vm184_vm0, %v3495_v50 }
  0x36   :  { %v3471_v47 = vsel %vm3063_vm4, %v1365_v57, %v1369_v62  ;;  %v1377_v62 = vrot.slane %v1375_v20, 5  ;;  %v3487_v13 = vld [vmem:[%s4233_s0 + $0x1e0] sm:$0xf]  ;;  %v3489_v53 = vrot.slane %v453_v40, 4  ;;  %v1389_v23 = vshll.u32 %v3438_v14, 16 }
  0x37   :  { %4318 = vst [vmem:[#allocation28_spill] sm:$0xff] %v3471_v47  ;;  %v2444_v3 = vcombine.low %v3457_v27, %v3471_v47  ;;  %4319 = vst [vmem:[#allocation29_spill] sm:$0xff] %v3487_v13  ;;  %v1388_v57 = vrot.slane %v1386_v59, 4  ;;  %v1395_v4 = vshll.u32 %v104_v49, 16  ;;  %v3497_v31 = vrot.slane %v456_v58, 5 }
  0x38   :  { %v1378_v48 = vor.u32 %v1377_v62, %v1374_v51  ;;  %v1383_v20 = vrot.slane %v1381_v0, 5  ;;  %v2378_v17 = vcombine.low %v3467_v6, %v3479_v63  ;;  %v106_v40 = vld [vmem:[%s4233_s0 + $0x1e4] sm:$0x1]  ;;  %v3508_v49 = vld [vmem:[%s4233_s0 + $0x1e8] sm:$0xf]  ;;  %v3514_v51 = vrot.slane %v509_v55, 4 }
  0x39   :  { %2717 = vmatmul.mubr.msk.bf16.gmra.mrb[8].mxu0 %vm159_vm1, %v2444_v3  ;;  %4320 = vst [vmem:[#allocation30_spill] sm:$0xff] %v3508_v49  ;;  %v523_v58 = vshrl.u32 %v3403_v33, 16  ;;  %v1391_v0 = vrot.slane %v1389_v23, 5  ;;  %v108_v59 = vld [vmem:[%s4233_s0 + $0x1ec] sm:$0x1]  ;;  %v3520_v62 = vrot.slane %v512_v54, 5  ;;  %v4330_v27 = vcombine.low %v2984_v2, %v3019_v16 }
  0x3a   :  { %v526_v24 = vshll.u32 %v3403_v33, 16  ;;  %v1379_v46 = vrot.slane %v1378_v48, 4  ;;  %v1400_v11 = vshrl.u32 %v3487_v13, 16  ;;  %v3527_v3 = vld [vmem:[%s4233_s0 + $0x120] sm:$0xf]  ;;  %v1397_v39 = vrot.slane %v1395_v4, 5  ;;  %2641 = vmatmul.mubr.msk.bf16.gmra.mrb[4].mxu1 %vm159_vm1, %v2378_v17 }
  0x3b   :  { %v1392_v55 = vor.u32 %v1391_v0, %v1388_v57  ;;  %v537_v23 = vshrl.u32 %v3467_v6, 16  ;;  %v1403_v18 = vshll.u32 %v3487_v13, 16  ;;  %v3535_v54 = vld [vmem:[%s4233_s0 + $0x128] sm:$0xf]  ;;  %v1409_v32 = vshll.u32 %v106_v40, 16 }
  0x3c   :  { %v3539_v48 = vsel %vm3063_vm4, %v1379_v46, %v1383_v20  ;;  %v1402_v61 = vrot.slane %v1400_v11, 4  ;;  %v1414_v57 = vshrl.u32 %v3508_v49, 16  ;;  %v1417_v17 = vshll.u32 %v3508_v49, 16  ;;  %v24_v2 = vld [vmem:[%s4233_s0 + $0x24] sm:$0x1] }
  0x3d   :  { %4321 = vst [vmem:[#allocation31_spill] sm:$0xff] %v3539_v48  ;;  %v1393_v4 = vrot.slane %v1392_v55, 4  ;;  %v1405_v0 = vrot.slane %v1403_v18, 5  ;;  %v1423_v8 = vshll.u32 %v108_v59, 16  ;;  %v540_v13 = vshll.u32 %v3467_v6, 16 }
  0x3e   :  { %v551_v36 = vshrl.u32 %v3479_v63, 16  ;;  %v1416_v46 = vrot.slane %v1414_v57, 4  ;;  %v2379_v11 = vcombine.low %v3527_v3, %v3535_v54  ;;  %v3555_v18 = vld [vmem:[%s4233_s0 + $0x138] sm:$0xf]  ;;  %v1411_v59 = vrot.slane %v1409_v32, 5 }
  0x3f   :  { %v3559_v20 = vsel %vm3063_vm4, %v1393_v4, %v1397_v39  ;;  %v1406_v40 = vor.u32 %v1405_v0, %v1402_v61  ;;  %v1419_v55 = vrot.slane %v1417_v17, 5  ;;  %v3561_v49 = vrot.slane %v523_v58, 4  ;;  %v3573_v39 = vld [vmem:[%s4233_s0 + $0x208] sm:$0xf]  ;;  %v3578_v32 = vld [vmem:[%s4233_s0 + $0x210] sm:$0xf] }
  0x40   :  { %4322 = vst [vmem:[#allocation32_spill] sm:$0xff] %v3559_v20  ;;  %v3563_v14 = vrot.slane %v526_v24, 5  ;;  %v2445_v30 = vcombine.low %v3539_v48, %v3559_v20  ;;  %2644 = vmatprep.mubr.msk.bf16.mxu1 %vm159_vm1, %v2379_v11  ;;  %4323 = vst [vmem:[#allocation33_spill] sm:$0xff] %v3573_v39  ;;  %v1425_v58 = vrot.slane %v1423_v8, 5  ;;  %v2380_v4 = vcombine.low %v3546_v7, %v3555_v18  ;;  %v3598_v8 = vld [vmem:[%s4233_s0 + $0x148] sm:$0xf] }
  0x41   :  { %4324 = vst [vmem:[#allocation34_spill] sm:$0xff] %v3578_v32  ;;  %v1407_v24 = vrot.slane %v1406_v40, 4  ;;  %v1420_v61 = vor.u32 %v1419_v55, %v1416_v46  ;;  %v3587_v11 = vrot.slane %v537_v23, 4  ;;  %v554_v57 = vshll.u32 %v3479_v63, 16  ;;  %v3593_v46 = vld [vmem:[%s4233_s0 + $0x140] sm:$0xf] }
  0x42   :  { %2720 = vmatprep.mubr.msk.bf16.mxu0 %vm159_vm1, %v2445_v30  ;;  %4325 = vst [vmem:[#allocation35_spill] sm:$0xff] %v3598_v8  ;;  %v3600_v40 = vrot.slane %v540_v13, 5  ;;  %v3602_v55 = vrot.slane %v551_v36, 4  ;;  %2645 = vmatmul.mubr.msk.bf16.gmra.mrb[8].mxu1 %vm159_vm1, %v2380_v4  ;;  %v3612_v17 = vld [vmem:[%s4233_s0 + $0x150] sm:$0xf]  ;;  %v565_v0 = vshrl.u32 %v3527_v3, 16 }
  0x43   :  { %v3606_v30 = vsel %vm3063_vm4, %v1407_v24, %v1411_v59  ;;  %v1421_v23 = vrot.slane %v1420_v61, 4  ;;  %4327 = vst [vmem:[#allocation37_spill] sm:$0xff] %v3612_v17  ;;  %v568_v20 = vshll.u32 %v3527_v3, 16  ;;  %v579_v13 = vshrl.u32 %v3535_v54, 16  ;;  %v3621_v59 = vld [vmem:[%s4233_s0 + $0x158] sm:$0xf] }
  0x44   :  { %4326 = vst [vmem:[#allocation36_spill] sm:$0xff] %v3606_v30  ;;  %v582_v36 = vshll.u32 %v3535_v54, 16  ;;  %4328 = vst [vmem:[#allocation38_spill] sm:$0xff] %v3621_v59  ;;  %v593_v61 = vshrl.u32 %v3546_v7, 16  ;;  %v596_v4 = vshll.u32 %v3546_v7, 16  ;;  %v2381_v3 = vcombine.low %v3593_v46, %v3598_v8 }
  0x45   :  { %v3625_v24 = vsel %vm3063_vm4, %v1421_v23, %v1425_v58  ;;  %v607_v21 = vshrl.u32 %v3555_v18, 16  ;;  %v610_v56 = vshll.u32 %v3555_v18, 16  ;;  %v621_v41 = vshrl.u32 %v3593_v46, 16 }
  0x46   :  { %4329 = vst [vmem:[#allocation39_spill] sm:$0xff] %v3625_v24  ;;  %v2446_v48 = vcombine.low %v3606_v30, %v3625_v24  ;;  %v3636_v32 = vrot.slane %v554_v57, 5  ;;  %2648 = vmatprep.mubr.msk.bf16.mxu1 %vm159_vm1, %v2381_v3  ;;  %v624_v58 = vshll.u32 %v3593_v46, 16  ;;  %v635_v23 = vshrl.u32 %v3598_v8, 16  ;;  %v16_v3 = vld [vmem:[%s4233_s0 + $0x4] sm:$0x1] }
  0x47   :  { %v2382_v47 = vcombine.low %v3612_v17, %v3621_v59  ;;  %v3644_v24 = vrot.slane %v565_v0, 4  ;;  %v3646_v30 = vrot.slane %v568_v20, 5  ;;  %v3648_v22 = vrot.slane %v579_v13, 4 }
  0x48   :  { %2721 = vmatmul.mubr.msk.bf16.gmra.mrb[12].mxu0 %vm159_vm1, %v2446_v48  ;;  %v638_v57 = vshll.u32 %v3598_v8, 16  ;;  %v3654_v39 = vrot.slane %v582_v36, 5  ;;  %v3660_v48 = vrot.slane %v593_v61, 4  ;;  %v3662_v0 = vrot.slane %v596_v4, 5 }
  0x49   :  { %2726 = vmatprep.mubr.msk.bf16.mxu0 %vm159_vm1, %v4330_v27  ;;  %v1783_v20 = vsel %vm184_vm0, %v3443_v26, 0  ;;  %v3666_v13 = vrot.slane %v607_v21, 4  ;;  %v3668_v60 = vrot.slane %v610_v56, 5  ;;  %v3670_v8 = vrot.slane %v621_v41, 4  ;;  %v26_v41 = vld [vmem:[%s4233_s0 + $0x2c] sm:$0x1] }
  0x4a   :  { %v2457_v36 = vcombine.low %v3403_v33, %v3467_v6  ;;  %v3677_v16 = vrot.slane %v624_v58, 5  ;;  %v3679_v27 = vrot.slane %v635_v23, 4  ;;  %2649 = vmatmul.mubr.msk.bf16.gmra.mrb[12].mxu1 %vm159_vm1, %v2382_v47  ;;  %v459_v21 = vor.u32 %v3497_v31, %v3489_v53  ;;  %v28_v47 = vld [vmem:[%s4233_s0 + $0x34] sm:$0x1] }
  0x4b   :  { %v462_v56 = vshll.u32 %v16_v3, 16  ;;  %v3687_v26 = vrot.slane %v638_v57, 5  ;;  %v649_v33 = vshrl.u32 %v3612_v17, 16  ;;  %v652_v6 = vshll.u32 %v3612_v17, 16 }
  0x4c   :  { %v663_v61 = vshrl.u32 %v3621_v59, 16  ;;  %v666_v4 = vshll.u32 %v3621_v59, 16  ;;  %v460_v31 = vrot.slane %v459_v21, 4  ;;  %v515_v58 = vor.u32 %v3520_v62, %v3514_v51  ;;  %v3708_v21 = vld [vmem:[%s4233_s0 + $0x40] sm:$0xf] }
  0x4d   :  { %4331 = vst [vmem:[#allocation40_spill] sm:$0xff] %v3687_v26  ;;  %v464_v53 = vrot.slane %v462_v56, 5  ;;  %v907_v23 = vsel %vm184_vm0, %v3495_v50, 0  ;;  %v518_v57 = vshll.u32 %v24_v2, 16  ;;  %v529_v3 = vor.u32 %v3563_v14, %v3561_v49  ;;  %v30_v26 = vld [vmem:[%s4233_s0 + $0x3c] sm:$0x1] }
  0x4e   :  { %v532_v17 = vshll.u32 %v26_v41, 16  ;;  %v516_v62 = vrot.slane %v515_v58, 4  ;;  %v543_v50 = vor.u32 %v3600_v40, %v3587_v11  ;;  %v546_v2 = vshll.u32 %v28_v47, 16  ;;  %v3717_v14 = vld [vmem:[%s4232_s1 + $0x20] sm:$0xf] }
  0x4f   :  { %v465_v51 = vsel %vm3063_vm4, %v460_v31, %v464_v53  ;;  %v4332_v49 = vcombine.low %v3028_v19, %v3398_v10  ;;  %v520_v41 = vrot.slane %v518_v57, 5  ;;  %v530_v59 = vrot.slane %v529_v3, 4 }
  0x50   :  { %v2391_v56 = vcombine.low %v465_v51, %v3074_v42  ;;  %v534_v31 = vrot.slane %v532_v17, 5  ;;  %v544_v11 = vrot.slane %v543_v50, 4  ;;  %v548_v40 = vrot.slane %v546_v2, 5 }
  0x51   :  { %2727 = vmatmul.mubr.msk.bf16.vlgmr.msra.gmra.mrb[0].mxu0 %vm159_vm1, %v4332_v49  ;;  %v557_v47 = vor.u32 %v3636_v32, %v3602_v55  ;;  %v560_v53 = vshll.u32 %v30_v26, 16  ;;  %v3727_v58 = vrot.slane %v649_v33, 4  ;;  %v2458_v19 = vcombine.low %v3479_v63, %v3708_v21 }
  0x52   :  { %2743 = vmatpush3.bf16.msra.mxu0 %v1783_v20  ;;  %2730 = vmatprep.mubr.msk.bf16.mxu0 %vm159_vm1, %v2457_v36  ;;  %v3734_v10 = vsel %vm3063_vm4, %v516_v62, %v520_v41  ;;  %v3738_v17 = vsel %vm3063_vm4, %v530_v59, %v534_v31  ;;  %v3742_v32 = vrot.slane %v652_v6, 5  ;;  %v4333_v55 = vcombine.low %v3106_v9, %v3119_v15  ;;  %v67_v36 = vld [vmem:[%s4233_s0 + $0x124] sm:$0x1] }
  0x53   :  { %2654 = vmatprep.mubr.msk.bf16.mxu1 %vm159_vm1, %v2391_v56  ;;  %2917 = vmatprep.subr.msk.bf16.mxu0 %vm184_vm0, %v3717_v14  ;;  %v2393_v63 = vcombine.low %v3734_v10, %v3738_v17  ;;  %v2209_v20 = vmax.bf16 %v3734_v10, %v3133_v28  ;;  %v2210_v59 = vmax.bf16 %v3738_v17, %v3138_v29  ;;  %v558_v6 = vrot.slane %v557_v47, 4  ;;  %v75_v47 = vld [vmem:[%s4233_s0 + $0x144] sm:$0x1] }
  0x54   :  { %2655 = vmatmul.mubr.msk.bf16.vlgmr.msra.gmra.mrb[0].mxu1 %vm159_vm1, %v4333_v55  ;;  %v2459_v26 = vcombine.low %v3535_v54, %v3546_v7  ;;  %v3761_v33 = vsel %vm3063_vm4, %v544_v11, %v548_v40  ;;  %v562_v57 = vrot.slane %v560_v53, 5  ;;  %v3763_v3 = vrot.slane %v663_v61, 4  ;;  %v69_v54 = vld [vmem:[%s4233_s0 + $0x12c] sm:$0x1] }
  0x55   :  { %2671 = vmatpush3.bf16.msra.mxu1 %v907_v23  ;;  %2658 = vmatprep.mubr.msk.bf16.mxu1 %vm159_vm1, %v2393_v63  ;;  %v4334_v51 = vmax.bf16 %v3267_v25, %v3100_v5  ;;  %v4335_v50 = vmax.bf16 %v3314_v38, %v3147_v34  ;;  %v2211_v7 = vmax.bf16 %v3761_v33, %v3159_v43  ;;  %v574_v25 = vshll.u32 %v67_v36, 16  ;;  %v71_v38 = vld [vmem:[%s4233_s0 + $0x134] sm:$0x1]  ;;  %v77_v55 = vld [vmem:[%s4233_s0 + $0x14c] sm:$0x1]  ;;  %v4339_v36 = vld [vmem:[#allocation37_spill] sm:$0xff] }
  0x56   :  { %2913 = vmatprep.subr.msk.bf16.mxu1 %vm184_vm0, %v2979_v1  ;;  %v3781_v61 = vsel %vm3063_vm4, %v558_v6, %v562_v57  ;;  %v571_v5 = vor.u32 %v3646_v30, %v3644_v24  ;;  %v585_v34 = vor.u32 %v3654_v39, %v3648_v22  ;;  %v668_v23 = vrot.slane %v666_v4, 5  ;;  %v73_v24 = vld [vmem:[%s4233_s0 + $0x13c] sm:$0x1] }
  0x57   :  { %v2225_v62 = vmax.bf16 %v2209_v20, %v4334_v51  ;;  %v2226_v2 = vmax.bf16 %v2210_v59, %v4335_v50  ;;  %v2394_v1 = vcombine.low %v3761_v33, %v3781_v61  ;;  %v2212_v22 = vmax.bf16 %v3781_v61, %v3164_v44  ;;  %v4338_v20 = vld [vmem:[#allocation40_spill] sm:$0xff] }
  0x58   :  { %v4336_v39 = vmax.bf16 %v3334_v52, %v3152_v35  ;;  %v572_v4 = vrot.slane %v571_v5, 4  ;;  %v576_v49 = vrot.slane %v574_v25, 5  ;;  %v586_v56 = vrot.slane %v585_v34, 4  ;;  %v79_v51 = vld [vmem:[%s4233_s0 + $0x154] sm:$0x1]  ;;  %v4341_v5 = vld [vmem:[#allocation9_spill] sm:$0xff] }
  0x59   :  { %2241 = vst.msk [vmem:[%s4234_s3 + $0xc] sm:$0xf] %vm2141_vm5, %v2225_v62  ;;  %2242 = vst.msk [vmem:[%s4234_s3 + $0x10] sm:$0xf] %vm2141_vm5, %v2226_v2  ;;  %2731 = vmatmul.mubr.msk.bf16.gmra.mrb[4].mxu0 %vm159_vm1, %v2458_v19  ;;  %v588_v41 = vshll.u32 %v69_v54, 16  ;;  %v4337_v31 = vmax.bf16 %v3360_v12, %v3169_v45  ;;  %v599_v35 = vor.u32 %v3662_v0, %v3660_v48  ;;  %v602_v52 = vshll.u32 %v71_v38, 16 }
  0x5a   :  { %v2227_v30 = vmax.bf16 %v2211_v7, %v4336_v39  ;;  %2734 = vmatprep.mubr.msk.bf16.mxu0 %vm159_vm1, %v2459_v26  ;;  %v613_v40 = vor.u32 %v3668_v60, %v3666_v13  ;;  %v2460_v45 = vcombine.low %v3555_v18, %v3593_v46  ;;  %v577_v12 = vsel %vm3063_vm4, %v572_v4, %v576_v49  ;;  %v4340_v26 = vld [vmem:[#allocation35_spill] sm:$0xff]  ;;  %v81_v7 = vld [vmem:[%s4233_s0 + $0x15c] sm:$0x1] }
  0x5b   :  { %v2228_v11 = vmax.bf16 %v2212_v22, %v4337_v31  ;;  %v590_v53 = vrot.slane %v588_v41, 5  ;;  %v616_v19 = vshll.u32 %v73_v24, 16  ;;  %v600_v60 = vrot.slane %v599_v35, 4  ;;  %v4342_v24 = vld [vmem:[#allocation27_spill] sm:$0xff]  ;;  %v4343_v4 = vld [vmem:[#allocation33_spill] sm:$0xff] }
  0x5c   :  { %2243 = vst.msk [vmem:[%s4234_s3 + $0x14] sm:$0xf] %vm2141_vm5, %v2227_v30  ;;  %2659 = vmatmul.mubr.msk.bf16.gmra.mrb[4].mxu1 %vm159_vm1, %v2394_v1  ;;  %v604_v48 = vrot.slane %v602_v52, 5  ;;  %v614_v0 = vrot.slane %v613_v40, 4  ;;  %v627_v13 = vor.u32 %v3677_v16, %v3670_v8  ;;  %v630_v63 = vshll.u32 %v75_v47, 16  ;;  %v4345_v31 = vld [vmem:[#allocation11_spill] sm:$0xff] }
  0x5d   :  { %2244 = vst.msk [vmem:[%s4234_s3 + $0x18] sm:$0xf] %vm2141_vm5, %v2228_v11  ;;  %v3837_v18 = vsel %vm3063_vm4, %v586_v56, %v590_v53  ;;  %v618_v46 = vrot.slane %v616_v19, 5  ;;  %v641_v59 = vor.u32 %v4338_v20, %v3679_v27  ;;  %v2461_v6 = vcombine.low %v4340_v26, %v4339_v36  ;;  %v82_v30 = vld [vmem:[%s4233_s0 + $0x160] sm:$0xf]  ;;  %v4350_v36 = vld [vmem:[#allocation7_spill] sm:$0xff] }
  0x5e   :  { %v2395_v57 = vcombine.low %v577_v12, %v3837_v18  ;;  %v3849_v8 = vsel %vm3063_vm4, %v600_v60, %v604_v48  ;;  %v628_v16 = vrot.slane %v627_v13, 4  ;;  %v1899_v62 = vshrl.u32 %v3708_v21, 16  ;;  %v4347_v47 = vld [vmem:[#allocation34_spill] sm:$0xff] }
  0x5f   :  { %v1902_v50 = vshll.u32 %v3708_v21, 16  ;;  %v3858_v27 = vsel %vm3063_vm4, %v614_v0, %v618_v46  ;;  %v632_v2 = vrot.slane %v630_v63, 5  ;;  %v642_v34 = vrot.slane %v641_v59, 4  ;;  %v4349_v19 = vld [vmem:[#allocation38_spill] sm:$0xff] }
  0x60   :  { %2662 = vmatprep.mubr.msk.bf16.mxu1 %vm159_vm1, %v2395_v57  ;;  %v2396_v54 = vcombine.low %v3849_v8, %v3858_v27  ;;  %v2216_v25 = vmax.bf16 %v3858_v27, %v4341_v5  ;;  %v644_v38 = vshll.u32 %v77_v55, 16  ;;  %v655_v1 = vor.u32 %v3742_v32, %v3727_v58  ;;  %v32_v20 = vld [vmem:[%s4233_s0 + $0x44] sm:$0x1] }
  0x61   :  { %2735 = vmatmul.mubr.msk.bf16.gmra.mrb[8].mxu0 %vm159_vm1, %v2460_v45  ;;  %v3871_v21 = vsel %vm3063_vm4, %v628_v16, %v632_v2  ;;  %v658_v22 = vshll.u32 %v79_v51, 16  ;;  %v669_v39 = vor.u32 %v668_v23, %v3763_v3  ;;  %v4344_v49 = vmax.bf16 %v4342_v24, %v4343_v4  ;;  %v4346_v23 = vld [vmem:[#allocation28_spill] sm:$0xff]  ;;  %v4352_v2 = vld [vmem:[#allocation22_spill] sm:$0xff]  ;;  %v4358_v24 = vld [vmem:[#allocation3_spill] sm:$0xff] }
  0x62   :  { %2738 = vmatprep.mubr.msk.bf16.mxu0 %vm159_vm1, %v2461_v6  ;;  %v646_v41 = vrot.slane %v644_v38, 5  ;;  %v2217_v11 = vmax.bf16 %v3871_v21, %v4345_v31  ;;  %v672_v35 = vshll.u32 %v81_v7, 16  ;;  %v656_v52 = vrot.slane %v655_v1, 4  ;;  %v4351_v6 = vld [vmem:[#allocation8_spill] sm:$0xff]  ;;  %v4356_v1 = vld [vmem:[#allocation30_spill] sm:$0xff] }
  0x63   :  { %v2232_v56 = vmax.bf16 %v2216_v25, %v4344_v49  ;;  %v660_v58 = vrot.slane %v658_v22, 5  ;;  %v670_v32 = vrot.slane %v669_v39, 4  ;;  %v1913_v40 = vshrl.u32 %v82_v30, 16  ;;  %v2944_v51 = vld [vmem:[%s4233_s0 + $0x90] sm:$0xf]  ;;  %v4354_v25 = vld [vmem:[#allocation26_spill] sm:$0xff] }
  0x64   :  { %2663 = vmatmul.mubr.msk.bf16.gmra.mrb[8].mxu1 %vm159_vm1, %v2396_v54  ;;  %v3892_v3 = vsel %vm3063_vm4, %v642_v34, %v646_v41  ;;  %v4348_v45 = vmax.bf16 %v4346_v23, %v4347_v47  ;;  %v674_v53 = vrot.slane %v672_v35, 5  ;;  %v2462_v60 = vcombine.low %v4349_v19, %v82_v30  ;;  %v4353_v7 = vld [vmem:[#allocation20_spill] sm:$0xff]  ;;  %v4355_v34 = vld [vmem:[#allocation25_spill] sm:$0xff] }
  0x65   :  { %2248 = vst.msk [vmem:[%s4234_s3 + $0x28] sm:$0xf] %vm2141_vm5, %v2232_v56  ;;  %v2397_v48 = vcombine.low %v3871_v21, %v3892_v3  ;;  %v3902_v0 = vsel %vm3063_vm4, %v656_v52, %v660_v58  ;;  %v1901_v13 = vrot.slane %v1899_v62, 4  ;;  %v1904_v46 = vrot.slane %v1902_v50, 5  ;;  %v2945_v62 = vld [vmem:[%s4233_s0 + $0x98] sm:$0xf] }
  0x66   :  { %v2233_v12 = vmax.bf16 %v2217_v11, %v4348_v45  ;;  %v3910_v55 = vsel %vm3063_vm4, %v670_v32, %v674_v53  ;;  %v1916_v63 = vshll.u32 %v82_v30, 16  ;;  %v1915_v59 = vrot.slane %v1913_v40, 4  ;;  %v4357_v22 = vld [vmem:[#allocation29_spill] sm:$0xff]  ;;  %v4359_v49 = vld [vmem:[#allocation4_spill] sm:$0xff]  ;;  %v3949_v58 = vld [vmem:[%s4233_s0 + $0x200] sm:$0xf] }
  0x67   :  { %2666 = vmatprep.mubr.msk.bf16.mxu1 %vm159_vm1, %v2397_v48  ;;  %v2214_v26 = vmax.bf16 %v3837_v18, %v4350_v36  ;;  %v2215_v57 = vmax.bf16 %v3849_v8, %v4351_v6  ;;  %v2398_v16 = vcombine.low %v3902_v0, %v3910_v55  ;;  %v2407_v50 = vcombine.low %v2944_v51, %v2945_v62  ;;  %v3938_v30 = vld [vmem:[%s4233_s0 + $0x1f8] sm:$0xf]  ;;  %v4362_v32 = vld [vmem:[#allocation23_spill] sm:$0xff]  ;;  %v4363_v45 = vld [vmem:[#allocation16_spill] sm:$0xff] }
  0x68   :  { %2249 = vst.msk [vmem:[%s4234_s3 + $0x2c] sm:$0xf] %vm2141_vm5, %v2233_v12  ;;  %v2412_v54 = vcombine.low %v4353_v7, %v4352_v2  ;;  %v2413_v38 = vcombine.low %v4355_v34, %v4354_v25  ;;  %v4360_v56 = vcombine.low %v4358_v24, %v4359_v49  ;;  %v4361_v41 = vld [vmem:[#allocation13_spill] sm:$0xff]  ;;  %v1905_v35 = vor.u32 %v1904_v46, %v1901_v13  ;;  %v4364_v53 = vld [vmem:[#allocation18_spill] sm:$0xff]  ;;  %v4366_v62 = vld [vmem:[#allocation31_spill] sm:$0xff] }
  0x69   :  { %2739 = vmatmul.mubr.msk.bf16.gmra.mrb[12].mxu0 %vm159_vm1, %v2462_v60  ;;  %v2218_v11 = vmax.bf16 %v3892_v3, %v4361_v41  ;;  %v1908_v52 = vshll.u32 %v32_v20, 16  ;;  %v2182_v40 = vmax.bf16 %v4362_v32, %v3938_v30  ;;  %v1918_v23 = vrot.slane %v1916_v63, 5  ;;  %v4365_v60 = vld [vmem:[#allocation24_spill] sm:$0xff]  ;;  %v3962_v13 = vld [vmem:[%s4233_s0 + $0x218] sm:$0xf] }
  0x6a   :  { %2744 = vmatprep.mubr.msk.bf16.mxu0 %vm159_vm1, %v4360_v56  ;;  %v2219_v12 = vmax.bf16 %v3902_v0, %v4363_v45  ;;  %v2220_v19 = vmax.bf16 %v3910_v55, %v4364_v53  ;;  %v2183_v48 = vmax.bf16 %v4365_v60, %v3949_v58  ;;  %v1906_v46 = vrot.slane %v1905_v35, 4  ;;  %v3968_v63 = vld [vmem:[%s4233_s0 + $0x220] sm:$0xf]  ;;  %v4367_v56 = vld [vmem:[#allocation32_spill] sm:$0xff] }
  0x6b   :  { %v1910_v20 = vrot.slane %v1908_v52, 5  ;;  %v2230_v51 = vmax.bf16 %v2214_v26, %v2182_v40  ;;  %v2186_v24 = vmax.bf16 %v4366_v62, %v3962_v13  ;;  %v2187_v32 = vmax.bf16 %v4367_v56, %v3968_v63  ;;  %v83_v26 = vld [vmem:[%s4233_s0 + $0x164] sm:$0x1]  ;;  %v4368_v40 = vld [vmem:[#allocation36_spill] sm:$0xff]  ;;  %v4373_v56 = vld [vmem:[#allocation21_spill] sm:$0xff] }
  0x6c   :  { %2667 = vmatmul.mubr.msk.bf16.gmra.mrb[12].mxu1 %vm159_vm1, %v2398_v16  ;;  %v2231_v49 = vmax.bf16 %v2215_v57, %v2183_v48  ;;  %v3978_v16 = vld [vmem:[%s4233_s0 + $0x228] sm:$0xf]  ;;  %v2473_v35 = vcombine.low %v3138_v29, %v3159_v43  ;;  %v1962_v29 = vsel %vm184_vm0, %v3717_v14, 0  ;;  %v1922_v62 = vshll.u32 %v83_v26, 16 }
  0x6d   :  { %2672 = vmatprep.mubr.msk.bf16.mxu1 %vm159_vm1, %v2407_v50  ;;  %v41_v50 = vld [vmem:[%s4233_s0 + $0x88] sm:$0xf]  ;;  %v3990_v57 = vsel %vm3063_vm4, %v1906_v46, %v1910_v20  ;;  %2246 = vst.msk [vmem:[%s4234_s3 + $0x20] sm:$0xf] %vm2141_vm5, %v2230_v51  ;;  %v2234_v52 = vmax.bf16 %v2218_v11, %v2186_v24  ;;  %v2188_v60 = vmax.bf16 %v4368_v40, %v3978_v16  ;;  %v2946_v20 = vld [vmem:[%s4233_s0 + $0xa0] sm:$0xf] }
  0x6e   :  { %v2213_v43 = vmax.bf16 %v3990_v57, %v41_v50  ;;  %2247 = vst.msk [vmem:[%s4234_s3 + $0x24] sm:$0xf] %vm2141_vm5, %v2231_v49  ;;  %v2235_v48 = vmax.bf16 %v2219_v12, %v2187_v32  ;;  %v1919_v46 = vor.u32 %v1918_v23, %v1915_v59  ;;  %v2947_v11 = vld [vmem:[%s4233_s0 + $0xa8] sm:$0xf]  ;;  %v4369_v24 = vld [vmem:[#allocation5_spill] sm:$0xff]  ;;  %v4371_v59 = vld [vmem:[#allocation12_spill] sm:$0xff]  ;;  %v4382_v2 = vcombine.low %v4357_v22, %v4356_v1 }
  0x6f   :  { %v2408_v51 = vcombine.low %v2946_v20, %v2947_v11  ;;  %2250 = vst.msk [vmem:[%s4234_s3 + $0x30] sm:$0xf] %vm2141_vm5, %v2234_v52  ;;  %v2236_v14 = vmax.bf16 %v2220_v19, %v2188_v60  ;;  %v4370_v12 = vcombine.low %v4369_v24, %v3133_v28  ;;  %v4372_v23 = vld [vmem:[#allocation10_spill] sm:$0xff]  ;;  %v116_v28 = vld [vmem:[%s4233_s0 + $0x230] sm:$0xf]  ;;  %v1924_v19 = vrot.slane %v1922_v62, 5 }
  0x70   :  { %v2409_v49 = vcombine.low %v4372_v23, %v4371_v59  ;;  %v4374_v32 = vld [vmem:[#allocation6_spill] sm:$0xff]  ;;  %2251 = vst.msk [vmem:[%s4234_s3 + $0x34] sm:$0xf] %vm2141_vm5, %v2235_v48  ;;  %v1920_v52 = vrot.slane %v1919_v46, 4  ;;  %v4376_v26 = vld [vmem:[#allocation39_spill] sm:$0xff]  ;;  %v4381_v24 = vld [vmem:[#allocation17_spill] sm:$0xff]  ;;  %v2488_v7 = vcombine.low %v3119_v15, %v3734_v10  ;;  %v2490_v15 = vcombine.low %v3781_v61, %v3990_v57 }
  0x71   :  { %2745 = vmatmul.mubr.msk.bf16.vlgmr.msra.gmra.mrb[0].mxu0 %vm159_vm1, %v4370_v12  ;;  %v4375_v40 = vmax.bf16 %v4373_v56, %v4374_v32  ;;  %2252 = vst.msk [vmem:[%s4234_s3 + $0x38] sm:$0xf] %vm2141_vm5, %v2236_v14  ;;  %v2189_v60 = vmax.bf16 %v4376_v26, %v116_v28  ;;  %v4377_v48 = vld [vmem:[#allocation2_spill] sm:$0xff]  ;;  %v4378_v11 = vld [vmem:[#allocation15_spill] sm:$0xff]  ;;  %v2491_v10 = vcombine.low %v3837_v18, %v3849_v8  ;;  %vm2291_vm6 = vcmask 57344  }
  0x72   :  { %2761 = vmatpush3.bf16.msra.mxu0 %v1962_v29  ;;  %2748 = vmatprep.mubr.msk.bf16.mxu0 %vm159_vm1, %v2473_v35  ;;  %v92_v35 = vld [vmem:[%s4233_s0 + $0x1a8] sm:$0xf]  ;;  %v1925_v29 = vsel %vm3063_vm4, %v1920_v52, %v1924_v19 }
  0x73   :  { %v2229_v39 = vmax.bf16 %v2213_v43, %v4375_v40  ;;  %v2474_v43 = vcombine.low %v3164_v44, %v41_v50  ;;  %v2221_v46 = vmax.bf16 %v1925_v29, %v92_v35  ;;  %v4380_v62 = vld [vmem:[#allocation19_spill] sm:$0xff]  ;;  %v2476_v44 = vcombine.low %v4341_v5, %v4345_v31 }
  0x74   :  { %2673 = vmatmul.mubr.msk.bf16.vlgmr.msra.gmra.mrb[0].mxu1 %vm159_vm1, %v2408_v51  ;;  %v4379_v51 = vld [vmem:[#allocation14_spill] sm:$0xff]  ;;  %v2411_v37 = vcombine.low %v4381_v24, %v4380_v62  ;;  %v2487_v5 = vcombine.low %v3074_v42, %v3106_v9  ;;  %v2427_v31 = vcombine.low %v3938_v30, %v3949_v58  ;;  %v2489_v42 = vcombine.low %v3738_v17, %v3761_v33 }
  0x75   :  { %2245 = vst.msk [vmem:[%s4234_s3 + $0x1c] sm:$0xf] %vm2141_vm5, %v2229_v39  ;;  %2779 = vmatpush3.bf16.msra.mxu1 %v4377_v48  ;;  %2676 = vmatprep.mubr.msk.bf16.mxu1 %vm159_vm1, %v2409_v49  ;;  %v2475_v39 = vcombine.low %v4350_v36, %v4351_v6  ;;  %v2237_v20 = vmax.bf16 %v2221_v46, %v2189_v60 }
  0x76   :  { %v2410_v14 = vcombine.low %v4379_v51, %v4378_v11  ;;  %v2477_v36 = vcombine.low %v4361_v41, %v4363_v45  ;;  %v2478_v6 = vcombine.low %v4364_v53, %v92_v35  ;;  %v2428_v9 = vcombine.low %v4343_v4, %v4347_v47 }
  0x77   :  { %2253 = vst.msk [vmem:[%s4234_s3 + $0x3c] sm:$0xf] %vm2141_vm5, %v2237_v20  ;;  %v2430_v17 = vcombine.low %v3978_v16, %v116_v28  ;;  %v2492_v33 = vcombine.low %v3858_v27, %v3871_v21  ;;  %v2493_v4 = vcombine.low %v3892_v3, %v3902_v0  ;;  %v2494_v61 = vcombine.low %v3910_v55, %v1925_v29 }
  0x79   :  { %2749 = vmatmul.mubr.msk.bf16.gmra.mrb[4].mxu0 %vm159_vm1, %v2474_v43 }
  0x7a   :  { %2752 = vmatprep.mubr.msk.bf16.mxu0 %vm159_vm1, %v2475_v39 }
  0x7c   :  { %2677 = vmatmul.mubr.msk.bf16.gmra.mrb[4].mxu1 %vm159_vm1, %v2410_v14 }
  0x7d   :  { %2680 = vmatprep.mubr.msk.bf16.mxu1 %vm159_vm1, %v2411_v37 }
  0x81   :  { %2753 = vmatmul.mubr.msk.bf16.gmra.mrb[8].mxu0 %vm159_vm1, %v2476_v44 }
  0x82   :  { %2756 = vmatprep.mubr.msk.bf16.mxu0 %vm159_vm1, %v2477_v36 }
  0x84   :  { %2681 = vmatmul.mubr.msk.bf16.gmra.mrb[8].mxu1 %vm159_vm1, %v2412_v54  ;;  %v2429_v54 = vcombine.low %v3962_v13, %v3968_v63 }
  0x85   :  { %2684 = vmatprep.mubr.msk.bf16.mxu1 %vm159_vm1, %v2413_v38 }
  0x89   :  { %2757 = vmatmul.mubr.msk.bf16.gmra.mrb[12].mxu0 %vm159_vm1, %v2478_v6 }
  0x8a   :  { %2762 = vmatprep.mubr.msk.bf16.mxu0 %vm159_vm1, %v2487_v5 }
  0x8c   :  { %2685 = vmatmul.mubr.msk.bf16.gmra.mrb[12].mxu1 %vm159_vm1, %v4382_v2 }
  0x8d   :  { %2698 = vmatprep.mubr.msk.bf16.mxu1 %vm159_vm1, %v2427_v31 }
  0x91   :  { %2763 = vmatmul.mubr.msk.bf16.vlgmr.msra.gmra.mrb[0].mxu0 %vm159_vm1, %v2488_v7 }
  0x92   :  { %2766 = vmatprep.mubr.msk.bf16.mxu0 %vm159_vm1, %v2489_v42 }
  0x94   :  { %2699 = vmatmul.mubr.msk.bf16.vlgmr.msra.gmra.mrb[8].mxu1 %vm159_vm1, %v2428_v9 }
  0x95   :  { %2702 = vmatprep.mubr.msk.bf16.mxu1 %vm159_vm1, %v2429_v54 }
  0x99   :  { %2767 = vmatmul.mubr.msk.bf16.gmra.mrb[4].mxu0 %vm159_vm1, %v2490_v15 }
  0x9a   :  { %2770 = vmatprep.mubr.msk.bf16.mxu0 %vm159_vm1, %v2491_v10 }
  0x9c   :  { %2703 = vmatmul.mubr.msk.bf16.gmra.mrb[12].mxu1 %vm159_vm1, %v2430_v17 }
  0xa1   :  { %2771 = vmatmul.mubr.msk.bf16.gmra.mrb[8].mxu0 %vm159_vm1, %v2492_v33 }
  0xa2   :  { %2774 = vmatprep.mubr.msk.bf16.mxu0 %vm159_vm1, %v2493_v4 }
  0xa9   :  { %2775 = vmatmul.mubr.msk.bf16.gmra.mrb[12].mxu0 %vm159_vm1, %v2494_v61 }
 0x147   :  { %v2674_v18 = vpop.f32.mrb[0].mxu1 }
 0x148   :  { %v943_v8 = vpop.f32.mrb[1].mxu1 }
 0x149   :  { %v2675_v47 = vpop.f32.mrb[2].mxu1 }
 0x14a   :  { %v946_v25 = vpop.f32.mrb[3].mxu1 }
 0x14f   :  { %v2678_v34 = vpop.f32.mrb[4].mxu1 }
 0x150   :  { %v959_v38 = vpop.f32.mrb[5].mxu1 }
 0x151   :  { %v2679_v1 = vpop.f32.mrb[6].mxu1 }
 0x152   :  { %v962_v22 = vpop.f32.mrb[7].mxu1 }
 0x164   :  { %v2764_v27 = vpop.f32.mrb[0].mxu0 }
 0x165   :  { %v2780_v21 = vadd.f32 %v2764_v27, %v2674_v18  ;;  %v1998_v30 = vpop.f32.mrb[1].mxu0 }
 0x166   :  { %v2781_v3 = vadd.f32 %v1998_v30, %v943_v8  ;;  %v2765_v0 = vpop.f32.mrb[2].mxu0 }
 0x167   :  { %v2521_v41 = vpack.c.bf16 %v2780_v21, %v2780_v21  ;;  %v2782_v58 = vadd.f32 %v2765_v0, %v2675_v47  ;;  %v2001_v45 = vpop.f32.mrb[3].mxu0  ;;  %v2700_v53 = vpop.f32.mrb[8].mxu1  ;;  %v2295_v50 = vmul.f32 %v2780_v21, %v2780_v21  ;;  %v2257_v28 = vsel %vm159_vm1, %v2780_v21, 0.0 }
 0x168   :  { %v2519_v55 = vpack.c.bf16 %v2781_v3, %v2781_v3  ;;  %v2293_v13 = vmul.f32 %v2781_v3, %v2781_v3  ;;  %v2783_v63 = vadd.f32 %v2001_v45, %v946_v25  ;;  %v1156_v16 = vpop.f32.mrb[9].mxu1  ;;  %v2254_v59 = vsel %vm159_vm1, %v2781_v3, 0.0 }
 0x169   :  { %2144 = vst.msk [vmem:[%s4235_s2 + $0x8] sm:$0xf] %vm2141_vm5, %v2521_v41  ;;  %v2522_v57 = vpack.c.bf16 %v2782_v58, %v2782_v58  ;;  %v4122_v12 = vpop.f32.mrb[10].mxu1  ;;  %v2296_v40 = vmul.f32 %v2782_v58, %v2782_v58  ;;  %v2312_v46 = vsel %vm159_vm1, %v2295_v50, 0.0  ;;  %v2259_v11 = vsel %vm159_vm1, %v2782_v58, 0.0 }
 0x16a   :  { %2142 = vst.msk [vmem:[%s4235_s2] sm:$0xf] %vm2141_vm5, %v2519_v55  ;;  %v2520_v23 = vpack.c.bf16 %v2783_v63, %v2783_v63  ;;  %v2255_v49 = vsel %vm159_vm1, %v2783_v63, 0.0  ;;  %v2294_v56 = vmul.f32 %v2783_v63, %v2783_v63  ;;  %v4130_v32 = vpop.f32.mrb[11].mxu1  ;;  %v2309_v19 = vsel %vm159_vm1, %v2293_v13, 0.0 }
 0x16b   :  { %2145 = vst.msk [vmem:[%s4235_s2 + $0xc] sm:$0xf] %vm2141_vm5, %v2522_v57  ;;  %v2256_v52 = vadd.f32 %v2255_v49, %v2254_v59  ;;  %v2314_v51 = vsel %vm159_vm1, %v2296_v40, 0.0 }
 0x16c   :  { %2143 = vst.msk [vmem:[%s4235_s2 + $0x4] sm:$0xf] %vm2141_vm5, %v2520_v23  ;;  %v2310_v26 = vsel %vm159_vm1, %v2294_v56, 0.0  ;;  %v2768_v60 = vpop.f32.mrb[4].mxu0 }
 0x16d   :  { %v2258_v35 = vadd.f32 %v2257_v28, %v2256_v52  ;;  %v2311_v29 = vadd.f32 %v2310_v26, %v2309_v19  ;;  %v2784_v43 = vadd.f32 %v2768_v60, %v2678_v34  ;;  %v2014_v48 = vpop.f32.mrb[5].mxu0 }
 0x16e   :  { %v2785_v39 = vadd.f32 %v2014_v48, %v959_v38  ;;  %v2769_v20 = vpop.f32.mrb[6].mxu0 }
 0x16f   :  { %v2313_v14 = vadd.f32 %v2312_v46, %v2311_v29  ;;  %v2525_v62 = vpack.c.bf16 %v2784_v43, %v2784_v43  ;;  %v2017_v24 = vpop.f32.mrb[7].mxu0  ;;  %v2704_v37 = vpop.f32.mrb[12].mxu1  ;;  %v2260_v36 = vadd.f32 %v2259_v11, %v2258_v35  ;;  %v2786_v7 = vadd.f32 %v2769_v20, %v2679_v1 }
 0x170   :  { %v2523_v44 = vpack.c.bf16 %v2785_v39, %v2785_v39  ;;  %v2261_v6 = vsel %vm159_vm1, %v2785_v39, 0.0  ;;  %v2297_v5 = vmul.f32 %v2785_v39, %v2785_v39  ;;  %v1172_v31 = vpop.f32.mrb[13].mxu1  ;;  %v2787_v42 = vadd.f32 %v2017_v24, %v962_v22 }
 0x171   :  { %2148 = vst.msk [vmem:[%s4235_s2 + $0x18] sm:$0xf] %vm2141_vm5, %v2525_v62  ;;  %v2315_v2 = vadd.f32 %v2314_v51, %v2313_v14  ;;  %v4151_v9 = vpop.f32.mrb[14].mxu1  ;;  %v2262_v54 = vadd.f32 %v2261_v6, %v2260_v36  ;;  %v2299_v17 = vmul.f32 %v2784_v43, %v2784_v43  ;;  %v2526_v4 = vpack.c.bf16 %v2786_v7, %v2786_v7 }
 0x172   :  { %2146 = vst.msk [vmem:[%s4235_s2 + $0x10] sm:$0xf] %vm2141_vm5, %v2523_v44  ;;  %v2316_v15 = vsel %vm159_vm1, %v2297_v5, 0.0  ;;  %v4158_v10 = vpop.f32.mrb[15].mxu1  ;;  %v2524_v61 = vpack.c.bf16 %v2787_v42, %v2787_v42  ;;  %v2263_v18 = vsel %vm159_vm1, %v2787_v42, 0.0  ;;  %v2298_v8 = vmul.f32 %v2787_v42, %v2787_v42 }
 0x173   :  { %v2317_v33 = vadd.f32 %v2316_v15, %v2315_v2  ;;  %2149 = vst.msk [vmem:[%s4235_s2 + $0x1c] sm:$0xf] %vm2141_vm5, %v2526_v4  ;;  %v2264_v25 = vadd.f32 %v2263_v18, %v2262_v54  ;;  %v2265_v1 = vsel %vm159_vm1, %v2784_v43, 0.0  ;;  %v2300_v22 = vmul.f32 %v2786_v7, %v2786_v7 }
 0x174   :  { %v2772_v47 = vpop.f32.mrb[8].mxu0  ;;  %2147 = vst.msk [vmem:[%s4235_s2 + $0x14] sm:$0xf] %vm2141_vm5, %v2524_v61  ;;  %v2318_v27 = vsel %vm159_vm1, %v2298_v8, 0.0  ;;  %v2320_v3 = vsel %vm159_vm1, %v2299_v17, 0.0 }
 0x175   :  { %v2788_v34 = vadd.f32 %v2772_v47, %v2700_v53  ;;  %v2030_v38 = vpop.f32.mrb[9].mxu0  ;;  %v2266_v0 = vadd.f32 %v2265_v1, %v2264_v25  ;;  %v2319_v41 = vadd.f32 %v2318_v27, %v2317_v33  ;;  %v2267_v53 = vsel %vm159_vm1, %v2786_v7, 0.0 }
 0x176   :  { %v2789_v21 = vadd.f32 %v2030_v38, %v1156_v16  ;;  %v2773_v30 = vpop.f32.mrb[10].mxu0  ;;  %v2322_v23 = vsel %vm159_vm1, %v2300_v22, 0.0 }
 0x177   :  { %v2529_v58 = vpack.c.bf16 %v2788_v34, %v2788_v34  ;;  %v2033_v45 = vpop.f32.mrb[11].mxu0  ;;  %v2321_v50 = vadd.f32 %v2320_v3, %v2319_v41  ;;  %v2268_v16 = vadd.f32 %v2267_v53, %v2266_v0  ;;  %v2790_v57 = vadd.f32 %v2773_v30, %v4122_v12 }
 0x178   :  { %v2527_v55 = vpack.c.bf16 %v2789_v21, %v2789_v21  ;;  %v2269_v13 = vsel %vm159_vm1, %v2789_v21, 0.0  ;;  %v2301_v63 = vmul.f32 %v2789_v21, %v2789_v21  ;;  %v2791_v59 = vadd.f32 %v2033_v45, %v4130_v32 }
 0x179   :  { %2152 = vst.msk [vmem:[%s4235_s2 + $0x28] sm:$0xf] %vm2141_vm5, %v2529_v58  ;;  %v2303_v56 = vmul.f32 %v2788_v34, %v2788_v34  ;;  %v2270_v40 = vadd.f32 %v2269_v13, %v2268_v16  ;;  %v2323_v52 = vadd.f32 %v2322_v23, %v2321_v50  ;;  %v2530_v28 = vpack.c.bf16 %v2790_v57, %v2790_v57 }
 0x17a   :  { %2150 = vst.msk [vmem:[%s4235_s2 + $0x20] sm:$0xf] %vm2141_vm5, %v2527_v55  ;;  %v2324_v49 = vsel %vm159_vm1, %v2301_v63, 0.0  ;;  %v2528_v19 = vpack.c.bf16 %v2791_v59, %v2791_v59  ;;  %v2271_v26 = vsel %vm159_vm1, %v2791_v59, 0.0  ;;  %v2302_v60 = vmul.f32 %v2791_v59, %v2791_v59 }
 0x17b   :  { %v2325_v35 = vadd.f32 %v2324_v49, %v2323_v52  ;;  %2153 = vst.msk [vmem:[%s4235_s2 + $0x2c] sm:$0xf] %vm2141_vm5, %v2530_v28  ;;  %v2272_v32 = vadd.f32 %v2271_v26, %v2270_v40  ;;  %v2273_v48 = vsel %vm159_vm1, %v2788_v34, 0.0  ;;  %v2304_v46 = vmul.f32 %v2790_v57, %v2790_v57 }
 0x17c   :  { %v2776_v12 = vpop.f32.mrb[12].mxu0  ;;  %2151 = vst.msk [vmem:[%s4235_s2 + $0x24] sm:$0xf] %vm2141_vm5, %v2528_v19  ;;  %v2326_v39 = vsel %vm159_vm1, %v2302_v60, 0.0  ;;  %v2328_v51 = vsel %vm159_vm1, %v2303_v56, 0.0 }
 0x17d   :  { %v2792_v29 = vadd.f32 %v2776_v12, %v2704_v37  ;;  %v2046_v43 = vpop.f32.mrb[13].mxu0  ;;  %v2274_v14 = vadd.f32 %v2273_v48, %v2272_v32  ;;  %v2327_v62 = vadd.f32 %v2326_v39, %v2325_v35  ;;  %v2275_v37 = vsel %vm159_vm1, %v2790_v57, 0.0 }
 0x17e   :  { %v2793_v20 = vadd.f32 %v2046_v43, %v1172_v31  ;;  %v2777_v11 = vpop.f32.mrb[14].mxu0  ;;  %v2330_v54 = vsel %vm159_vm1, %v2304_v46, 0.0 }
 0x17f   :  { %v2533_v24 = vpack.c.bf16 %v2792_v29, %v2792_v29  ;;  %v2049_v44 = vpop.f32.mrb[15].mxu0  ;;  %v2329_v2 = vadd.f32 %v2328_v51, %v2327_v62  ;;  %v2276_v31 = vadd.f32 %v2275_v37, %v2274_v14  ;;  %v2794_v7 = vadd.f32 %v2777_v11, %v4151_v9 }
 0x180   :  { %v2531_v36 = vpack.c.bf16 %v2793_v20, %v2793_v20  ;;  %v2277_v6 = vsel %vm159_vm1, %v2793_v20, 0.0  ;;  %v2305_v5 = vmul.f32 %v2793_v20, %v2793_v20  ;;  %v2795_v42 = vadd.f32 %v2049_v44, %v4158_v10 }
 0x181   :  { %2156 = vst.msk [vmem:[%s4235_s2 + $0x38] sm:$0xf] %vm2141_vm5, %v2533_v24  ;;  %v2278_v17 = vadd.f32 %v2277_v6, %v2276_v31  ;;  %v2331_v33 = vadd.f32 %v2330_v54, %v2329_v2  ;;  %v2534_v4 = vpack.c.bf16 %v2794_v7, %v2794_v7  ;;  %v2307_v61 = vmul.f32 %v2792_v29, %v2792_v29 }
 0x182   :  { %2154 = vst.msk [vmem:[%s4235_s2 + $0x30] sm:$0xf] %vm2141_vm5, %v2531_v36  ;;  %v2332_v15 = vsel %vm159_vm1, %v2305_v5, 0.0  ;;  %v2532_v18 = vpack.c.bf16 %v2795_v42, %v2795_v42  ;;  %v2279_v8 = vsel %vm159_vm1, %v2795_v42, 0.0  ;;  %v2306_v47 = vmul.f32 %v2795_v42, %v2795_v42 }
 0x183   :  { %v2333_v9 = vadd.f32 %v2332_v15, %v2331_v33  ;;  %2157 = vst.msk [vmem:[%s4235_s2 + $0x3c] sm:$0xf] %vm2141_vm5, %v2534_v4  ;;  %v2280_v10 = vadd.f32 %v2279_v8, %v2278_v17  ;;  %v2281_v25 = vsel %vm159_vm1, %v2792_v29, 0.0  ;;  %v2308_v34 = vmul.f32 %v2794_v7, %v2794_v7 }
 0x184   :  { %2155 = vst.msk [vmem:[%s4235_s2 + $0x34] sm:$0xf] %vm2141_vm5, %v2532_v18  ;;  %v2334_v38 = vsel %vm159_vm1, %v2306_v47, 0.0  ;;  %v2336_v27 = vsel %vm159_vm1, %v2307_v61, 0.0  ;;  %v2283_v21 = vsel %vm159_vm1, %v2794_v7, 0.0 }
 0x185   :  { %v2282_v1 = vadd.f32 %v2281_v25, %v2280_v10  ;;  %v2335_v22 = vadd.f32 %v2334_v38, %v2333_v9  ;;  %v2338_v0 = vsel %vm159_vm1, %v2308_v34, 0.0 }
 0x187   :  { %v2284_v30 = vadd.f32 %v2283_v21, %v2282_v1  ;;  %v2337_v3 = vadd.f32 %v2336_v27, %v2335_v22 }
 0x189   :  { %v2285_v41 = vrot.slane %v2284_v30, 4  ;;  %v2339_v58 = vadd.f32 %v2338_v0, %v2337_v3 }
 0x18b   :  { %v2286_v45 = vadd.f32 %v2285_v41, %v2284_v30  ;;  %v2340_v53 = vrot.slane %v2339_v58, 4 }
 0x18d   :  { %v2287_v55 = vrot.slane %v2286_v45, 2  ;;  %v2341_v13 = vadd.f32 %v2340_v53, %v2339_v58 }
 0x18f   :  { %v2288_v63 = vadd.f32 %v2287_v55, %v2286_v45  ;;  %v2342_v50 = vrot.slane %v2341_v13, 2 }
 0x191   :  { %v2289_v16 = vrot.slane %v2288_v63, 1  ;;  %v2343_v57 = vadd.f32 %v2342_v50, %v2341_v13 }
 0x193   :  { %v2290_v59 = vadd.f32 %v2289_v16, %v2288_v63  ;;  %v2344_v23 = vrot.slane %v2343_v57, 1 }
 0x195   :  { %2292 = vst.msk [vmem:[%s4236_s4] sm:$0x1] %vm2291_vm6, %v2290_v59  ;;  %v2345_v49 = vadd.f32 %v2344_v23, %v2343_v57 }
 0x197   :  { %2346 = vst.msk [vmem:[%s4236_s4 + $0x1] sm:$0x1] %vm2291_vm6, %v2345_v49 }

// kernel: resblock_forward.4
= control target key start
LH: loop header
LB: loop body
LE: loop exit
PB: predicated region body
PF: predicated region fallthrough
CT: control target
= control target key end

     0   :  { %vm851_vm0 = vcmask 1043456   ;;  %vm114_vm1 = vcmask 60416   ;;  %vm116_vm2 = vcmask 57344   ;;  %v129_v0 = vld [vmem:[#allocation2 + $0x8] sm:$0x1]  ;;  %v3110_v4 = vmov 0   ;;  %s4130_s1 = inlined_call_operand.vmem [shape: bf16[72,8], index: 1, kind: input, shape index: {}]   ;;  %s4131_s0 = inlined_call_operand.vmem [shape: bf16[2,64,8], index: 0, kind: input, shape index: {}]   ;;  %s4132_s2 = inlined_call_operand.vmem [shape: f32[1,8], index: 2, kind: input, shape index: {}]   ;;  %s4133_s3 = inlined_call_operand.vmem [shape: f32[1,8], index: 3, kind: input, shape index: {}]   ;;  %s4134_s4 = inlined_call_operand.vmem [shape: bf16[2,64,8], index: 4, kind: output, shape index: {0}]   ;;  %s4135_s5 = inlined_call_operand.vmem [shape: f32[1,2,8], index: 5, kind: output, shape index: {1}]  }
   0x1   :  { %v801_v1 = vld [vmem:[%s4130_s1 + $0x4] sm:$0xf]  ;;  %v1545_v2 = vld [vmem:[%s4130_s1 + $0x10] sm:$0xf]  ;;  %115 = vst.msk [vmem:[#allocation2] sm:$0xf] %vm114_vm1, %v3110_v4 }
   0x2   :  { %v2671_v3 = vld [vmem:[%s4131_s0] sm:$0xff]   ;;  %117 = vst.msk [vmem:[#allocation2 + $0x4] sm:$0x1] %vm116_vm2, %v3110_v4  ;;  %119 = vst.msk [vmem:[#allocation2 + $0x54] sm:$0x1] %vm116_vm2, %v3110_v4  ;;  %3082 = vmatprep.subr.msk.bf16.mxu1 %vm851_vm0, %v801_v1  ;;  %3086 = vmatprep.subr.msk.bf16.mxu0 %vm851_vm0, %v1545_v2  ;;  %v853_v5 = vsel %vm851_vm0, %v801_v1, 0 }
   0x3   :  { %118 = vst.msk [vmem:[#allocation2 + $0x50] sm:$0xf] %vm114_vm1, %v3110_v4  ;;  %121 = vst.msk [vmem:[#allocation2 + $0x48] sm:$0xf] %vm114_vm1, %v3110_v4  ;;  %v3162_v6 = vsel %vm851_vm0, %v1545_v2, 0  ;;  %v2672_v7 = vunpack.c.l.bf16 %v2671_v3  ;;  %v2673_v10 = vunpack.c.h.bf16 %v2671_v3  ;;  %2791 = vmatpush3.bf16.msra.mxu1 %v853_v5  ;;  %v2702_v18 = vld [vmem:[%s4131_s0 + $0x8] sm:$0xff]  }
   0x4   :  { %122 = vst.msk [vmem:[#allocation2 + $0x4c] sm:$0x1] %vm116_vm2, %v3110_v4  ;;  %124 = vst.msk [vmem:[#allocation2 + $0x9c] sm:$0x1] %vm116_vm2, %v3110_v4  ;;  %v3167_v8 = vld [vmem:[%s4132_s2] ss:$0 sm:$0xff]  ;;  %2863 = vmatpush3.bf16.msra.mxu0 %v3162_v6  ;;  %v2676_v22 = vunpack.c.l.bf16 %v2702_v18  ;;  %v2677_v23 = vunpack.c.h.bf16 %v2702_v18 }
   0x5   :  { %123 = vst.msk [vmem:[#allocation2 + $0x98] sm:$0xf] %vm114_vm1, %v3110_v4  ;;  %4143 = vst [vmem:[#allocation3_spill] sm:$0xff] %v3162_v6  ;;  %v3172_v9 = vld [vmem:[%s4133_s3] ss:$0 sm:$0xff]  ;;  %v59_v12 = vmul.f32 %v2672_v7, %v3167_v8  ;;  %v60_v15 = vmul.f32 %v2673_v10, %v3167_v8  ;;  %v3227_v52 = vld [vmem:[%s4131_s0 + $0x10] sm:$0xff]  }
   0x6   :  { %vm127_vm3 = vsmask.f32 256  ;;  %vm177_vm4 = vsmask.f32 7938  ;;  %v179_v11 = vld [vmem:[#allocation2 + $0xc] sm:$0x1]  ;;  %v61_v34 = vmul.f32 %v2676_v22, %v3167_v8  ;;  %v62_v35 = vmul.f32 %v2677_v23, %v3167_v8 }
   0x7   :  { %vm3177_vm5 = vmand %vm116_vm2, %vm127_vm3  ;;  %vm574_vm6 = vsmask.f32 3328  ;;  %v573_v14 = vld [vmem:[%s4130_s1] sm:$0xf]  ;;  %vm575_vm8 = vsmask.f32 7440  ;;  %v82_v20 = vadd.f32 %v3172_v9, %v59_v12  ;;  %v83_v26 = vadd.f32 %v3172_v9, %v60_v15 }
   0x8   :  { %v130_v16 = vsel %vm3177_vm5, 0, %v129_v0  ;;  %vm3189_vm7 = vmand %vm116_vm2, %vm177_vm4  ;;  %3083 = vmatprep.subr.msk.bf16.mxu1 %vm851_vm0, %v573_v14  ;;  %v132_v19 = vld [vmem:[#allocation2 + $0x10] sm:$0x1]  ;;  %v135_v24 = vld [vmem:[#allocation2 + $0x18] sm:$0x1]  ;;  %v3212_v41 = vsel %vm851_vm0, %v573_v14, 0  ;;  %v84_v43 = vadd.f32 %v3172_v9, %v61_v34  ;;  %v85_v44 = vadd.f32 %v3172_v9, %v62_v35 }
   0x9   :  { %131 = vst [vmem:[#allocation2 + $0x8] sm:$0x1] %v130_v16  ;;  %v180_v21 = vsel %vm3189_vm7, 0, %v179_v11  ;;  %v138_v25 = vld [vmem:[#allocation2 + $0x20] sm:$0x1]  ;;  %v133_v27 = vsel %vm3177_vm5, 0, %v132_v19  ;;  %vm3236_vm9 = vmor %vm574_vm6, %vm575_vm8  ;;  %v2680_v3 = vunpack.c.l.bf16 %v3227_v52 }
   0xa   :  { %181 = vst [vmem:[#allocation2 + $0xc] sm:$0x1] %v180_v21  ;;  %v136_v28 = vsel %vm3177_vm5, 0, %v135_v24  ;;  %v139_v29 = vsel %vm3177_vm5, 0, %v138_v25  ;;  %v182_v30 = vld [vmem:[#allocation2 + $0x14] sm:$0x1]  ;;  %vm3243_vm10 = vmand %vm114_vm1, %vm177_vm4 }
   0xb   :  { %v98_v31 = vmax.f32 %v82_v20, 0.0  ;;  %v533_v32 = vld [vmem:[#allocation2] sm:$0xf]  ;;  %v534_v33 = vld [vmem:[#allocation2 + $0x4] sm:$0x1]  ;;  %v183_v36 = vsel %vm3189_vm7, 0, %v182_v30  ;;  %v63_v30 = vmul.f32 %v2680_v3, %v3167_v8 }
   0xc   :  { %134 = vst [vmem:[#allocation2 + $0x10] sm:$0x1] %v133_v27  ;;  %137 = vst [vmem:[#allocation2 + $0x18] sm:$0x1] %v136_v28  ;;  %v578_v37 = vshrl.u32 %v533_v32, 16  ;;  %v581_v38 = vshll.u32 %v533_v32, 16 }
   0xd   :  { %140 = vst [vmem:[#allocation2 + $0x20] sm:$0x1] %v139_v29  ;;  %v587_v39 = vshll.u32 %v534_v33, 16  ;;  %184 = vst [vmem:[#allocation2 + $0x14] sm:$0x1] %v183_v36  ;;  %v2638_v42 = vpack.c.bf16 %v98_v31, %v98_v31  ;;  %v99_v45 = vmax.f32 %v83_v26, 0.0 }
   0xe   :  { %v185_v40 = vld [vmem:[#allocation2 + $0x1c] sm:$0x1]  ;;  %v188_v46 = vld [vmem:[#allocation2 + $0x24] sm:$0x1]  ;;  %v1706_v47 = vld [vmem:[%s4130_s1 + $0x14] sm:$0xf] }
   0xf   :  { %v580_v48 = vrot.slane %v578_v37, 4  ;;  %v583_v49 = vrot.slane %v581_v38, 5  ;;  %v3219_v50 = vrot.slane %v587_v39, 5  ;;  %v186_v51 = vsel %vm3189_vm7, 0, %v185_v40  ;;  %3088 = vmatprep.subr.msk.bf16.mxu0 %vm851_vm0, %v1706_v47  ;;  %v141_v57 = vld [vmem:[#allocation2 + $0x28] sm:$0x1] }
  0x10   :  { %v276_v53 = vshrl.u32 %v2638_v42, 16  ;;  %v279_v54 = vshll.u32 %v2638_v42, 16  ;;  %v100_v55 = vmax.f32 %v84_v43, 0.0  ;;  %v101_v56 = vmax.f32 %v85_v44, 0.0  ;;  %187 = vst [vmem:[#allocation2 + $0x1c] sm:$0x1] %v186_v51 }
  0x11   :  { %v584_v58 = vor.u32 %v583_v49, %v580_v48  ;;  %v189_v59 = vsel %vm3189_vm7, 0, %v188_v46  ;;  %v2639_v60 = vpack.c.bf16 %v99_v45, %v99_v45  ;;  %v3232_v61 = vsel %vm851_vm0, %v1706_v47, 0  ;;  %v437_v63 = vld [vmem:[#allocation2 + $0x8] sm:$0xf]  ;;  %v440_v5 = vld [vmem:[#allocation2 + $0xc] sm:$0x1] }
  0x12   :  { %v278_v62 = vrot.slane %v276_v53, 7  ;;  %190 = vst [vmem:[#allocation2 + $0x24] sm:$0x1] %v189_v59  ;;  %v2640_v1 = vpack.c.bf16 %v100_v55, %v100_v55  ;;  %v2641_v2 = vpack.c.bf16 %v101_v56, %v101_v56  ;;  %v142_v12 = vsel %vm3177_vm5, 0, %v141_v57  ;;  %v191_v19 = vld [vmem:[#allocation2 + $0x2c] sm:$0x1] }
  0x13   :  { %v3247_v7 = vrot.slane %v584_v58, 4  ;;  %v284_v10 = vshrl.u32 %v2639_v60, 16  ;;  %v287_v11 = vshll.u32 %v2639_v60, 16  ;;  %143 = vst [vmem:[#allocation2 + $0x28] sm:$0x1] %v142_v12  ;;  %v192_v37 = vsel %vm3189_vm7, 0, %v191_v19 }
  0x14   :  { %v281_v14 = vor.u32 %v279_v54, %v278_v62  ;;  %v282_v15 = vrot.slane %v278_v62, 4  ;;  %v292_v16 = vshrl.u32 %v2640_v1, 16  ;;  %v295_v18 = vshll.u32 %v2640_v1, 16  ;;  %v443_v24 = vld [vmem:[#allocation2 + $0x10] sm:$0xf]  ;;  %v2704_v51 = vld [vmem:[%s4131_s0 + $0x18] sm:$0xff]  }
  0x15   :  { %v590_v20 = vsel %vm3236_vm9, %v3247_v7, %v3219_v50  ;;  %v286_v21 = vrot.slane %v284_v10, 7  ;;  %v300_v22 = vshrl.u32 %v2641_v2, 16  ;;  %v303_v23 = vshll.u32 %v2641_v2, 16  ;;  %v446_v28 = vld [vmem:[#allocation2 + $0x14] sm:$0x1]  ;;  %v3287_v1 = vld [vmem:[%s4131_s0 + $0x20] sm:$0xff]  }
  0x16   :  { %v438_v25 = vsel %vm3243_vm10, %v281_v14, %v437_v63  ;;  %v441_v26 = vsel %vm3177_vm5, %v282_v15, %v440_v5  ;;  %v294_v27 = vrot.slane %v292_v16, 7  ;;  %v449_v29 = vld [vmem:[#allocation2 + $0x18] sm:$0xf]  ;;  %v144_v31 = vld [vmem:[#allocation2 + $0x30] sm:$0x1]  ;;  %v86_v42 = vadd.f32 %v3172_v9, %v63_v30 }
  0x17   :  { %v194_v32 = vld [vmem:[#allocation2 + $0x34] sm:$0x1]  ;;  %439 = vst [vmem:[#allocation2 + $0x8] sm:$0xf] %v438_v25  ;;  %442 = vst [vmem:[#allocation2 + $0xc] sm:$0x1] %v441_v26  ;;  %v289_v33 = vor.u32 %v287_v11, %v286_v21  ;;  %v2681_v43 = vunpack.c.h.bf16 %v3227_v52  ;;  %v2684_v5 = vunpack.c.l.bf16 %v2704_v51  ;;  %v2685_v12 = vunpack.c.h.bf16 %v2704_v51 }
  0x18   :  { %v290_v34 = vrot.slane %v286_v21, 4  ;;  %v302_v35 = vrot.slane %v300_v22, 7  ;;  %v452_v36 = vld [vmem:[#allocation2 + $0x1c] sm:$0x1]  ;;  %v297_v38 = vor.u32 %v295_v18, %v294_v27  ;;  %v298_v39 = vrot.slane %v294_v27, 4 }
  0x19   :  { %v455_v40 = vld [vmem:[#allocation2 + $0x20] sm:$0xf]  ;;  %193 = vst [vmem:[#allocation2 + $0x2c] sm:$0x1] %v192_v37  ;;  %v147_v44 = vld [vmem:[#allocation2 + $0x38] sm:$0x1]  ;;  %v444_v47 = vsel %vm3243_vm10, %v289_v33, %v443_v24  ;;  %v64_v56 = vmul.f32 %v2681_v43, %v3167_v8  ;;  %v65_v22 = vmul.f32 %v2684_v5, %v3167_v8 }
  0x1a   :  { %v305_v45 = vor.u32 %v303_v23, %v302_v35  ;;  %v306_v46 = vrot.slane %v302_v35, 4  ;;  %v447_v48 = vsel %vm3177_vm5, %v290_v34, %v446_v28  ;;  %v458_v49 = vld [vmem:[#allocation2 + $0x24] sm:$0x1]  ;;  %v197_v53 = vld [vmem:[#allocation2 + $0x3c] sm:$0x1]  ;;  %v450_v52 = vsel %vm3243_vm10, %v297_v38, %v449_v29 }
  0x1b   :  { %445 = vst [vmem:[#allocation2 + $0x10] sm:$0xf] %v444_v47  ;;  %448 = vst [vmem:[#allocation2 + $0x14] sm:$0x1] %v447_v48  ;;  %v453_v54 = vsel %vm3177_vm5, %v298_v39, %v452_v36  ;;  %v102_v55 = vmax.f32 %v86_v42, 0.0  ;;  %v145_v62 = vsel %vm3177_vm5, 0, %v144_v31  ;;  %v87_v3 = vadd.f32 %v3172_v9, %v64_v56 }
  0x1c   :  { %v150_v57 = vld [vmem:[#allocation2 + $0x40] sm:$0x1]  ;;  %v200_v58 = vld [vmem:[#allocation2 + $0x44] sm:$0x1]  ;;  %451 = vst [vmem:[#allocation2 + $0x18] sm:$0xf] %v450_v52  ;;  %v456_v59 = vsel %vm3243_vm10, %v305_v45, %v455_v40  ;;  %v459_v60 = vsel %vm3177_vm5, %v306_v46, %v458_v49  ;;  %v2688_v23 = vunpack.c.l.bf16 %v3287_v1  ;;  %v3311_v30 = vadd.f32 %v3172_v9, %v65_v22 }
  0x1d   :  { %454 = vst [vmem:[#allocation2 + $0x1c] sm:$0x1] %v453_v54  ;;  %v195_v63 = vsel %vm3189_vm7, 0, %v194_v32  ;;  %457 = vst [vmem:[#allocation2 + $0x20] sm:$0xf] %v456_v59  ;;  %v2642_v2 = vpack.c.bf16 %v102_v55, %v102_v55  ;;  %v148_v10 = vsel %vm3177_vm5, 0, %v147_v44  ;;  %v66_v31 = vmul.f32 %v2685_v12, %v3167_v8 }
  0x1e   :  { %460 = vst [vmem:[#allocation2 + $0x24] sm:$0x1] %v459_v60  ;;  %146 = vst [vmem:[#allocation2 + $0x30] sm:$0x1] %v145_v62  ;;  %v198_v11 = vsel %vm3189_vm7, 0, %v197_v53  ;;  %v151_v14 = vsel %vm3177_vm5, 0, %v150_v57  ;;  %v67_v36 = vmul.f32 %v2688_v23, %v3167_v8  ;;  %v2689_v44 = vunpack.c.h.bf16 %v3287_v1 }
  0x1f   :  { %196 = vst [vmem:[#allocation2 + $0x34] sm:$0x1] %v195_v63  ;;  %149 = vst [vmem:[#allocation2 + $0x38] sm:$0x1] %v148_v10  ;;  %v201_v15 = vsel %vm3189_vm7, 0, %v200_v58  ;;  %v308_v19 = vshrl.u32 %v2642_v2, 16  ;;  %v3327_v43 = vadd.f32 %v3172_v9, %v66_v31 }
  0x20   :  { %v3298_v16 = vld [vmem:[#allocation2 + $0x8] sm:$0xf]  ;;  %v3300_v18 = vld [vmem:[#allocation2 + $0xc] sm:$0x1]  ;;  %v311_v21 = vshll.u32 %v2642_v2, 16  ;;  %vm826_vm11 = vcmask 64512   ;;  %v3335_v49 = vadd.f32 %v3172_v9, %v67_v36 }
  0x21   :  { %199 = vst [vmem:[#allocation2 + $0x3c] sm:$0x1] %v198_v11  ;;  %152 = vst [vmem:[#allocation2 + $0x40] sm:$0x1] %v151_v14  ;;  %v592_v24 = vshrl.u32 %v3298_v16, 16  ;;  %v595_v25 = vshll.u32 %v3298_v16, 16 }
  0x22   :  { %202 = vst [vmem:[#allocation2 + $0x44] sm:$0x1] %v201_v15  ;;  %v601_v26 = vshll.u32 %v3300_v18, 16  ;;  %v1141_v27 = vrot.slane %v3300_v18, 5  ;;  %v3308_v28 = vrot.slane %v308_v19, 7  ;;  %v103_v29 = vmax.f32 %v87_v3, 0.0 }
  0x23   :  { %v594_v32 = vrot.slane %v592_v24, 4  ;;  %v597_v33 = vrot.slane %v595_v25, 5  ;;  %v3314_v35 = vld [vmem:[#allocation2 + $0x10] sm:$0xf]  ;;  %v3317_v37 = vld [vmem:[#allocation2 + $0x14] sm:$0x1] }
  0x24   :  { %v603_v34 = vrot.slane %v601_v26, 5  ;;  %v3319_v38 = vld [vmem:[#allocation2 + $0x18] sm:$0xf]  ;;  %v3321_v39 = vld [vmem:[#allocation2 + $0x1c] sm:$0x1]  ;;  %v313_v40 = vor.u32 %v311_v21, %v3308_v28  ;;  %v3324_v42 = vpack.c.bf16 %v103_v29, %v103_v29  ;;  %v606_v47 = vshrl.u32 %v3314_v35, 16 }
  0x25   :  { %v598_v45 = vor.u32 %v597_v33, %v594_v32  ;;  %v3330_v46 = vld [vmem:[#allocation2 + $0x20] sm:$0xf]  ;;  %v609_v48 = vshll.u32 %v3314_v35, 16  ;;  %v615_v51 = vshll.u32 %v3317_v37, 16  ;;  %v620_v53 = vshrl.u32 %v3319_v38, 16 }
  0x26   :  { %v623_v52 = vshll.u32 %v3319_v38, 16  ;;  %v629_v54 = vshll.u32 %v3321_v39, 16  ;;  %v3341_v56 = vld [vmem:[#allocation2 + $0x24] sm:$0x1]  ;;  %v608_v57 = vrot.slane %v606_v47, 4  ;;  %v634_v59 = vshrl.u32 %v3330_v46, 16 }
  0x27   :  { %v599_v55 = vrot.slane %v598_v45, 4  ;;  %v611_v58 = vrot.slane %v609_v48, 5  ;;  %v617_v60 = vrot.slane %v615_v51, 5  ;;  %v622_v62 = vrot.slane %v620_v53, 4  ;;  %v461_v12 = vld [vmem:[#allocation2 + $0x28] sm:$0xf] }
  0x28   :  { %v625_v63 = vrot.slane %v623_v52, 5  ;;  %v631_v2 = vrot.slane %v629_v54, 5  ;;  %v636_v10 = vrot.slane %v634_v59, 4  ;;  %v637_v11 = vshll.u32 %v3330_v46, 16  ;;  %v464_v26 = vld [vmem:[#allocation2 + $0x2c] sm:$0x1] }
  0x29   :  { %v604_v3 = vsel %vm3236_vm9, %v599_v55, %v603_v34  ;;  %v612_v5 = vor.u32 %v611_v58, %v608_v57  ;;  %v643_v19 = vshll.u32 %v3341_v56, 16  ;;  %v1145_v21 = vrot.slane %v3317_v37, 5  ;;  %v153_v36 = vld [vmem:[#allocation2 + $0x58] sm:$0x1]  ;;  %v203_v45 = vld [vmem:[#allocation2 + $0x5c] sm:$0x1] }
  0x2a   :  { %v2476_v14 = vcombine.low %v590_v20, %v604_v3  ;;  %v626_v15 = vor.u32 %v625_v63, %v622_v62  ;;  %v639_v23 = vrot.slane %v637_v11, 5  ;;  %v1149_v24 = vrot.slane %v3321_v39, 5  ;;  %v467_v54 = vld [vmem:[#allocation2 + $0x30] sm:$0xf]  ;;  %v3103_v17 = vld [vmem:[%s4133_s3] ss:$0 sm:$0xff] }
  0x2b   :  { %v613_v22 = vrot.slane %v612_v5, 4  ;;  %v1153_v25 = vrot.slane %v3341_v56, 5  ;;  %v645_v31 = vrot.slane %v643_v19, 5  ;;  %v314_v32 = vrot.slane %v3308_v28, 4  ;;  %v473_v19 = vld [vmem:[#allocation2 + $0x38] sm:$0xf] }
  0x2c   :  { %2792 = vmatprep.mubr.msk.bf16.mxu1 %vm826_vm11, %v2476_v14  ;;  %v627_v29 = vrot.slane %v626_v15, 4  ;;  %v462_v50 = vsel %vm3243_vm10, %v313_v40, %v461_v12  ;;  %v640_v20 = vor.u32 %v639_v23, %v636_v10  ;;  %v316_v33 = vshrl.u32 %v3324_v42, 16  ;;  %v3396_v12 = vld [vmem:[%s4130_s1 + $0x18] sm:$0xf] }
  0x2d   :  { %v618_v7 = vsel %vm3236_vm9, %v613_v22, %v617_v60  ;;  %463 = vst [vmem:[#allocation2 + $0x28] sm:$0xf] %v462_v50  ;;  %v319_v34 = vshll.u32 %v3324_v42, 16  ;;  %v465_v28 = vsel %vm3177_vm5, %v314_v32, %v464_v26  ;;  %v104_v40 = vmax.f32 %v3311_v30, 0.0  ;;  %v470_v42 = vld [vmem:[#allocation2 + $0x34] sm:$0x1] }
  0x2e   :  { %v632_v47 = vsel %vm3236_vm9, %v627_v29, %v631_v2  ;;  %v2556_v48 = vcombine.low %v604_v3, %v618_v7  ;;  %v641_v51 = vrot.slane %v640_v20, 4  ;;  %466 = vst [vmem:[#allocation2 + $0x2c] sm:$0x1] %v465_v28  ;;  %v318_v52 = vrot.slane %v316_v33, 7  ;;  %v3384_v2 = vld [vmem:[#allocation2 + $0x50] sm:$0xf] }
  0x2f   :  { %v3369_v53 = vcombine.low %v618_v7, %v632_v47  ;;  %v105_v55 = vmax.f32 %v3327_v43, 0.0  ;;  %v2644_v57 = vpack.c.bf16 %v104_v40, %v104_v40  ;;  %v106_v58 = vmax.f32 %v3335_v49, 0.0  ;;  %v3389_v49 = vld [vmem:[%s4130_s1 + $0x8] sm:$0xf]  ;;  %v476_v22 = vld [vmem:[#allocation2 + $0x3c] sm:$0x1] }
  0x30   :  { %2864 = vmatprep.mubr.msk.bf16.mxu0 %vm826_vm11, %v2556_v48  ;;  %v154_v59 = vsel %vm3177_vm5, 0, %v153_v36  ;;  %v204_v30 = vsel %vm3189_vm7, 0, %v203_v45  ;;  %v3380_v60 = vsel %vm3236_vm9, %v641_v51, %v645_v31  ;;  %v321_v43 = vor.u32 %v319_v34, %v318_v52  ;;  %v479_v34 = vld [vmem:[#allocation2 + $0x40] sm:$0xf]  ;;  %v3411_v36 = vld [vmem:[#allocation2 + $0x54] sm:$0x1] }
  0x31   :  { %2793 = vmatmul.mubr.msk.bf16.vlgmr.msra.gmra.mrb[0].mxu1 %vm826_vm11, %v3369_v53  ;;  %v322_v62 = vrot.slane %v318_v52, 4  ;;  %v2645_v63 = vpack.c.bf16 %v105_v55, %v105_v55  ;;  %155 = vst [vmem:[#allocation2 + $0x58] sm:$0x1] %v154_v59  ;;  %205 = vst [vmem:[#allocation2 + $0x5c] sm:$0x1] %v204_v30  ;;  %vm1132_vm12 = vcmask 1042432   ;;  %v2557_v3 = vcombine.low %v632_v47, %v3380_v60 }
  0x32   :  { %2809 = vmatpush3.bf16.msra.mxu1 %v3212_v41  ;;  %v324_v5 = vshrl.u32 %v2644_v57, 16  ;;  %v327_v10 = vshll.u32 %v2644_v57, 16  ;;  %v2646_v11 = vpack.c.bf16 %v106_v58, %v106_v58  ;;  %v468_v14 = vsel %vm3243_vm10, %v321_v43, %v467_v54 }
  0x33   :  { %v471_v15 = vsel %vm3177_vm5, %v322_v62, %v470_v42  ;;  %v332_v23 = vshrl.u32 %v2645_v63, 16  ;;  %v335_v26 = vshll.u32 %v2645_v63, 16  ;;  %3084 = vmatprep.subr.msk.bf16.mxu1 %vm851_vm0, %v3389_v49  ;;  %2865 = vmatmul.mubr.msk.bf16.vlgmr.msra.gmra.mrb[0].mxu0 %vm826_vm11, %v2557_v3  ;;  %469 = vst [vmem:[#allocation2 + $0x30] sm:$0xf] %v468_v14  ;;  %v690_v50 = vshrl.u32 %v3384_v2, 16  ;;  %v3426_v63 = vld [vmem:[%s4131_s0 + $0x28] sm:$0xff]  }
  0x34   :  { %v3405_v41 = vld [vmem:[#allocation2 + $0x28] sm:$0xf]  ;;  %472 = vst [vmem:[#allocation2 + $0x34] sm:$0x1] %v471_v15  ;;  %v326_v29 = vrot.slane %v324_v5, 7  ;;  %v340_v31 = vshrl.u32 %v2646_v11, 16  ;;  %2881 = vmatpush3.bf16.msra.mxu0 %v3232_v61  ;;  %v68_v37 = vmul.f32 %v2689_v44, %v3167_v8 }
  0x35   :  { %v343_v32 = vshll.u32 %v2646_v11, 16  ;;  %v648_v7 = vshrl.u32 %v3405_v41, 16  ;;  %v651_v20 = vshll.u32 %v3405_v41, 16  ;;  %v334_v33 = vrot.slane %v332_v23, 7  ;;  %v3414_v47 = vld [vmem:[#allocation2 + $0x2c] sm:$0x1]  ;;  %3089 = vmatprep.subr.msk.bf16.mxu0 %vm851_vm0, %v3396_v12 }
  0x36   :  { %v693_v45 = vshll.u32 %v3384_v2, 16  ;;  %v329_v48 = vor.u32 %v327_v10, %v326_v29  ;;  %v330_v28 = vrot.slane %v326_v29, 4  ;;  %v342_v40 = vrot.slane %v340_v31, 7  ;;  %v482_v42 = vld [vmem:[#allocation2 + $0x44] sm:$0x1] }
  0x37   :  { %v692_v51 = vrot.slane %v690_v50, 4  ;;  %v650_v61 = vrot.slane %v648_v7, 4  ;;  %v653_v52 = vrot.slane %v651_v20, 5  ;;  %v657_v54 = vshll.u32 %v3414_v47, 16 }
  0x38   :  { %v337_v55 = vor.u32 %v335_v26, %v334_v33  ;;  %v474_v57 = vsel %vm3243_vm10, %v329_v48, %v473_v19  ;;  %v477_v58 = vsel %vm3177_vm5, %v330_v28, %v476_v22  ;;  %v338_v59 = vrot.slane %v334_v33, 4  ;;  %v485_v43 = vld [vmem:[#allocation2 + $0x58] sm:$0xf]  ;;  %v488_v62 = vld [vmem:[#allocation2 + $0x5c] sm:$0x1] }
  0x39   :  { %v345_v30 = vor.u32 %v343_v32, %v342_v40  ;;  %v654_v3 = vor.u32 %v653_v52, %v650_v61  ;;  %v659_v5 = vrot.slane %v657_v54, 5  ;;  %475 = vst [vmem:[#allocation2 + $0x38] sm:$0xf] %v474_v57  ;;  %478 = vst [vmem:[#allocation2 + $0x3c] sm:$0x1] %v477_v58  ;;  %v346_v11 = vrot.slane %v342_v40, 4 }
  0x3a   :  { %v480_v10 = vsel %vm3243_vm10, %v337_v55, %v479_v34  ;;  %v483_v14 = vsel %vm3177_vm5, %v338_v59, %v482_v42  ;;  %v695_v19 = vrot.slane %v693_v45, 5  ;;  %v699_v22 = vshll.u32 %v3411_v36, 16  ;;  %v3435_v26 = vld [vmem:[#allocation2 + $0x30] sm:$0xf] }
  0x3b   :  { %481 = vst [vmem:[#allocation2 + $0x40] sm:$0xf] %v480_v10  ;;  %v486_v15 = vsel %vm3243_vm10, %v345_v30, %v485_v43  ;;  %v655_v23 = vrot.slane %v654_v3, 4  ;;  %v3437_v29 = vld [vmem:[#allocation2 + $0x34] sm:$0x1]  ;;  %v489_v31 = vsel %vm3177_vm5, %v346_v11, %v488_v62  ;;  %vm1133_vm13 = vcmask 1046532  }
  0x3c   :  { %484 = vst [vmem:[#allocation2 + $0x44] sm:$0x1] %v483_v14  ;;  %487 = vst [vmem:[#allocation2 + $0x58] sm:$0xf] %v486_v15  ;;  %v2692_v32 = vunpack.c.l.bf16 %v3426_v63  ;;  %v662_v50 = vshrl.u32 %v3435_v26, 16  ;;  %v665_v7 = vshll.u32 %v3435_v26, 16  ;;  %v696_v33 = vor.u32 %v695_v19, %v692_v51 }
  0x3d   :  { %v671_v20 = vshll.u32 %v3437_v29, 16  ;;  %490 = vst [vmem:[#allocation2 + $0x5c] sm:$0x1] %v489_v31  ;;  %vm3446_vm14 = vmor %vm1132_vm12, %vm1133_vm13  ;;  %v660_v45 = vsel %vm3236_vm9, %v655_v23, %v659_v5  ;;  %v3452_v48 = vrot.slane %v699_v22, 5  ;;  %v2509_v28 = vrot.slane %v3298_v16, 9 }
  0x3e   :  { %v2510_v40 = vrot.slane %v3314_v35, 9  ;;  %v3457_v61 = vcombine.low %v3380_v60, %v660_v45  ;;  %v664_v52 = vrot.slane %v662_v50, 4  ;;  %v667_v54 = vrot.slane %v665_v7, 5 }
  0x3f   :  { %v673_v51 = vrot.slane %v671_v20, 5  ;;  %v3459_v55 = vrot.slane %v696_v33, 4  ;;  %v3465_v42 = vsel %vm3446_vm14, %v2509_v28, %v1141_v27  ;;  %v2511_v60 = vrot.slane %v3319_v38, 9 }
  0x40   :  { %v3471_v57 = vsel %vm3446_vm14, %v2510_v40, %v1145_v21  ;;  %2796 = vmatprep.mubr.msk.bf16.mxu1 %vm826_vm11, %v3457_v61  ;;  %v668_v58 = vor.u32 %v667_v54, %v664_v52  ;;  %v3476_v59 = vld [vmem:[#allocation2 + $0x38] sm:$0xf]  ;;  %v3478_v30 = vld [vmem:[#allocation2 + $0x3c] sm:$0x1]  ;;  %v2512_v18 = vrot.slane %v3330_v46, 9  ;;  %v69_v56 = vmul.f32 %v2692_v32, %v3167_v8 }
  0x41   :  { %v2574_v27 = vcombine.low %v3465_v42, %v3471_v57  ;;  %v676_v21 = vshrl.u32 %v3476_v59, 16  ;;  %v679_v43 = vshll.u32 %v3476_v59, 16  ;;  %v685_v62 = vshll.u32 %v3478_v30, 16 }
  0x42   :  { %v3489_v3 = vld [vmem:[#allocation2 + $0x40] sm:$0xf]  ;;  %v702_v5 = vsel %vm3236_vm9, %v3459_v55, %v3452_v48  ;;  %v669_v10 = vrot.slane %v668_v58, 4  ;;  %v3503_v44 = vsel %vm3446_vm14, %v2511_v60, %v1149_v24  ;;  %v92_v32 = vadd.f32 %v3172_v9, %v69_v56  ;;  %v215_v56 = vld [vmem:[#allocation2 + $0x7c] sm:$0x1] }
  0x43   :  { %v3495_v11 = vld [vmem:[#allocation2 + $0x44] sm:$0x1]  ;;  %v1518_v14 = vshrl.u32 %v3489_v3, 16  ;;  %v1521_v1 = vshll.u32 %v3489_v3, 16  ;;  %v678_v15 = vrot.slane %v676_v21, 4  ;;  %v681_v19 = vrot.slane %v679_v43, 5 }
  0x44   :  { %v687_v22 = vrot.slane %v685_v62, 5  ;;  %v1527_v23 = vshll.u32 %v3495_v11, 16  ;;  %v3506_v31 = vld [vmem:[#allocation2 + $0x58] sm:$0xf]  ;;  %v674_v50 = vsel %vm3236_vm9, %v669_v10, %v673_v51  ;;  %v3510_v33 = vld [vmem:[#allocation2 + $0x5c] sm:$0x1]  ;;  %v3519_v51 = vsel %vm3446_vm14, %v2512_v18, %v1153_v25 }
  0x45   :  { %v1520_v7 = vrot.slane %v1518_v14, 4  ;;  %v1523_v20 = vrot.slane %v1521_v1, 5  ;;  %v704_v39 = vshrl.u32 %v3506_v31, 16  ;;  %v2558_v28 = vcombine.low %v660_v45, %v674_v50  ;;  %v156_v21 = vld [vmem:[#allocation2 + $0x60] sm:$0x1] }
  0x46   :  { %v682_v40 = vor.u32 %v681_v19, %v678_v15  ;;  %v1529_v24 = vrot.slane %v1527_v23, 5  ;;  %v707_v52 = vshll.u32 %v3506_v31, 16  ;;  %v713_v58 = vshll.u32 %v3510_v33, 16  ;;  %v159_v43 = vld [vmem:[#allocation2 + $0x68] sm:$0x1] }
  0x47   :  { %v1524_v54 = vor.u32 %v1523_v20, %v1520_v7  ;;  %v706_v60 = vrot.slane %v704_v39, 4  ;;  %2868 = vmatprep.mubr.msk.bf16.mxu0 %vm826_vm11, %v2558_v28  ;;  %v3524_v10 = vcombine.low %v3471_v57, %v3503_v44  ;;  %v2575_v14 = vcombine.low %v3503_v44, %v3519_v51  ;;  %v206_v18 = vld [vmem:[#allocation2 + $0x64] sm:$0x1]  ;;  %v209_v19 = vld [vmem:[#allocation2 + $0x6c] sm:$0x1] }
  0x48   :  { %v683_v62 = vrot.slane %v682_v40, 4  ;;  %v709_v45 = vrot.slane %v707_v52, 5  ;;  %v715_v15 = vrot.slane %v713_v58, 5  ;;  %v91_v25 = vadd.f32 %v3172_v9, %v68_v37  ;;  %v162_v52 = vld [vmem:[#allocation2 + $0x70] sm:$0x1] }
  0x49   :  { %v1525_v1 = vrot.slane %v1524_v54, 4  ;;  %v157_v20 = vsel %vm3177_vm5, 0, %v156_v21  ;;  %v160_v39 = vsel %vm3177_vm5, 0, %v159_v43  ;;  %v165_v54 = vld [vmem:[#allocation2 + $0x78] sm:$0x1]  ;;  %v207_v58 = vsel %vm3189_vm7, 0, %v206_v18 }
  0x4a   :  { %v688_v23 = vsel %vm3236_vm9, %v683_v62, %v687_v22  ;;  %v710_v7 = vor.u32 %v709_v45, %v706_v60  ;;  %v107_v37 = vmax.f32 %v91_v25, 0.0  ;;  %158 = vst [vmem:[#allocation2 + $0x60] sm:$0x1] %v157_v20  ;;  %161 = vst [vmem:[#allocation2 + $0x68] sm:$0x1] %v160_v39  ;;  %v3548_v22 = vld [vmem:[%s4131_s0 + $0x30] sm:$0xff]   ;;  %v2693_v45 = vunpack.c.h.bf16 %v3426_v63 }
  0x4b   :  { %v3538_v28 = vcombine.low %v674_v50, %v688_v23  ;;  %v3542_v40 = vsel %vm3236_vm9, %v1525_v1, %v1529_v24  ;;  %v210_v24 = vsel %vm3189_vm7, 0, %v209_v19  ;;  %v108_v21 = vmax.f32 %v92_v32, 0.0  ;;  %208 = vst [vmem:[#allocation2 + $0x64] sm:$0x1] %v207_v58  ;;  %v212_v1 = vld [vmem:[#allocation2 + $0x74] sm:$0x1] }
  0x4c   :  { %4155 = vst [vmem:[#allocation5_spill] sm:$0xff] %v3542_v40  ;;  %v2559_v60 = vcombine.low %v688_v23, %v3542_v40  ;;  %v711_v50 = vrot.slane %v710_v7, 4  ;;  %211 = vst [vmem:[#allocation2 + $0x6c] sm:$0x1] %v210_v24  ;;  %v2647_v43 = vpack.c.bf16 %v107_v37, %v107_v37  ;;  %v1871_v62 = vsel %vm851_vm0, %v3396_v12, 0 }
  0x4d   :  { %4154 = vst [vmem:[#allocation4_spill] sm:$0xff] %v3538_v28  ;;  %2797 = vmatmul.mubr.msk.bf16.gmra.mrb[4].mxu1 %vm826_vm11, %v3538_v28  ;;  %v2696_v18 = vunpack.c.l.bf16 %v3548_v22  ;;  %v163_v19 = vsel %vm3177_vm5, 0, %v162_v52  ;;  %v166_v23 = vsel %vm3177_vm5, 0, %v165_v54  ;;  %v2648_v63 = vpack.c.bf16 %v108_v21, %v108_v21 }
  0x4e   :  { %2869 = vmatmul.mubr.msk.bf16.gmra.mrb[4].mxu0 %vm826_vm11, %v2559_v60  ;;  %v3563_v25 = vsel %vm3236_vm9, %v711_v50, %v715_v15  ;;  %v348_v15 = vshrl.u32 %v2647_v43, 16  ;;  %v351_v7 = vshll.u32 %v2647_v43, 16  ;;  %164 = vst [vmem:[#allocation2 + $0x70] sm:$0x1] %v163_v19  ;;  %167 = vst [vmem:[#allocation2 + $0x78] sm:$0x1] %v166_v23  ;;  %v70_v20 = vmul.f32 %v2693_v45, %v3167_v8 }
  0x4f   :  { %v2480_v12 = vcombine.low %v702_v5, %v3563_v25  ;;  %2882 = vmatprep.mubr.msk.bf16.mxu0 %vm826_vm11, %v2574_v27  ;;  %v71_v39 = vmul.f32 %v2696_v18, %v3167_v8  ;;  %v213_v32 = vsel %vm3189_vm7, 0, %v212_v1  ;;  %v216_v48 = vsel %vm3189_vm7, 0, %v215_v56  ;;  %v3596_v1 = vld [vmem:[%s4131_s0 + $0x38] sm:$0xff]  }
  0x50   :  { %v350_v55 = vrot.slane %v348_v15, 7  ;;  %v356_v57 = vshrl.u32 %v2648_v63, 16  ;;  %v359_v27 = vshll.u32 %v2648_v63, 16  ;;  %214 = vst [vmem:[#allocation2 + $0x74] sm:$0x1] %v213_v32  ;;  %v2513_v5 = vrot.slane %v3405_v41, 9 }
  0x51   :  { %2800 = vmatprep.mubr.msk.bf16.mxu1 %vm826_vm11, %v2480_v12  ;;  %217 = vst [vmem:[#allocation2 + $0x7c] sm:$0x1] %v216_v48  ;;  %v491_v37 = vld [vmem:[#allocation2 + $0x60] sm:$0xf]  ;;  %v93_v52 = vadd.f32 %v3172_v9, %v70_v20  ;;  %v94_v54 = vadd.f32 %v3172_v9, %v71_v39  ;;  %v1157_v60 = vrot.slane %v3414_v47, 5  ;;  %v2514_v50 = vrot.slane %v3435_v26, 9 }
  0x52   :  { %v353_v58 = vor.u32 %v351_v7, %v350_v55  ;;  %v354_v24 = vrot.slane %v350_v55, 4  ;;  %v358_v21 = vrot.slane %v356_v57, 7  ;;  %v497_v43 = vld [vmem:[#allocation2 + $0x68] sm:$0xf]  ;;  %v1161_v45 = vrot.slane %v3437_v29, 5 }
  0x53   :  { %v494_v56 = vld [vmem:[#allocation2 + $0x64] sm:$0x1]  ;;  %v500_v18 = vld [vmem:[#allocation2 + $0x6c] sm:$0x1]  ;;  %v109_v19 = vmax.f32 %v93_v52, 0.0  ;;  %v110_v23 = vmax.f32 %v94_v54, 0.0  ;;  %v3600_v47 = vsel %vm3446_vm14, %v2513_v5, %v1157_v60  ;;  %v2697_v12 = vunpack.c.h.bf16 %v3548_v22 }
  0x54   :  { %v361_v63 = vor.u32 %v359_v27, %v358_v21  ;;  %v362_v15 = vrot.slane %v358_v21, 4  ;;  %v492_v29 = vsel %vm3243_vm10, %v353_v58, %v491_v37  ;;  %v495_v7 = vsel %vm3177_vm5, %v354_v24, %v494_v56  ;;  %v3610_v20 = vld [vmem:[%s4130_s1 + $0x1c] sm:$0xf]  ;;  %v168_v55 = vld [vmem:[#allocation2 + $0x80] sm:$0x1] }
  0x55   :  { %493 = vst [vmem:[#allocation2 + $0x60] sm:$0xf] %v492_v29  ;;  %496 = vst [vmem:[#allocation2 + $0x64] sm:$0x1] %v495_v7  ;;  %v2649_v22 = vpack.c.bf16 %v109_v19, %v109_v19  ;;  %v2650_v39 = vpack.c.bf16 %v110_v23, %v110_v23  ;;  %v3618_v32 = vsel %vm3446_vm14, %v2514_v50, %v1161_v45  ;;  %v2700_v48 = vunpack.c.l.bf16 %v3596_v1  ;;  %v171_v57 = vld [vmem:[#allocation2 + $0x88] sm:$0x1] }
  0x56   :  { %2883 = vmatmul.mubr.msk.bf16.vlgmr.msra.gmra.mrb[0].mxu0 %vm826_vm11, %v2575_v14  ;;  %v498_v27 = vsel %vm3243_vm10, %v361_v63, %v497_v43  ;;  %v501_v5 = vsel %vm3177_vm5, %v362_v15, %v500_v18  ;;  %v2576_v44 = vcombine.low %v3600_v47, %v3618_v32  ;;  %v72_v14 = vmul.f32 %v2697_v12, %v3167_v8  ;;  %v218_v37 = vld [vmem:[#allocation2 + $0x84] sm:$0x1]  ;;  %v221_v52 = vld [vmem:[#allocation2 + $0x8c] sm:$0x1]  ;;  %v503_v18 = vld [vmem:[#allocation2 + $0x70] sm:$0xf] }
  0x57   :  { %2899 = vmatpush3.bf16.msra.mxu0 %v1871_v62  ;;  %499 = vst [vmem:[#allocation2 + $0x68] sm:$0xf] %v498_v27  ;;  %502 = vst [vmem:[#allocation2 + $0x6c] sm:$0x1] %v501_v5  ;;  %v364_v54 = vshrl.u32 %v2649_v22, 16  ;;  %v367_v60 = vshll.u32 %v2649_v22, 16  ;;  %v73_v62 = vmul.f32 %v2700_v48, %v3167_v8  ;;  %v2495_v13 = vcombine.low %v3435_v26, %v3476_v59 }
  0x58   :  { %v372_v50 = vshrl.u32 %v2650_v39, 16  ;;  %v375_v58 = vshll.u32 %v2650_v39, 16  ;;  %3090 = vmatprep.subr.msk.bf16.mxu0 %vm851_vm0, %v3610_v20  ;;  %2886 = vmatprep.mubr.msk.bf16.mxu0 %vm826_vm11, %v2576_v44  ;;  %v95_v24 = vadd.f32 %v3172_v9, %v72_v14  ;;  %v169_v21 = vsel %vm3177_vm5, 0, %v168_v55  ;;  %v509_v8 = vld [vmem:[#allocation2 + $0x78] sm:$0xf] }
  0x59   :  { %v172_v43 = vsel %vm3177_vm5, 0, %v171_v57  ;;  %v366_v45 = vrot.slane %v364_v54, 7  ;;  %170 = vst [vmem:[#allocation2 + $0x80] sm:$0x1] %v169_v21  ;;  %v219_v19 = vsel %vm3189_vm7, 0, %v218_v37  ;;  %v222_v23 = vsel %vm3189_vm7, 0, %v221_v52 }
  0x5a   :  { %v374_v56 = vrot.slane %v372_v50, 7  ;;  %173 = vst [vmem:[#allocation2 + $0x88] sm:$0x1] %v172_v43  ;;  %v96_v12 = vadd.f32 %v3172_v9, %v73_v62  ;;  %v111_v63 = vmax.f32 %v95_v24, 0.0  ;;  %220 = vst [vmem:[#allocation2 + $0x84] sm:$0x1] %v219_v19 }
  0x5b   :  { %223 = vst [vmem:[#allocation2 + $0x8c] sm:$0x1] %v222_v23  ;;  %v2515_v15 = vrot.slane %v3476_v59, 9  ;;  %v1165_v29 = vrot.slane %v3478_v30, 5  ;;  %v369_v7 = vor.u32 %v367_v60, %v366_v45  ;;  %v370_v22 = vrot.slane %v366_v45, 4 }
  0x5c   :  { %v377_v39 = vor.u32 %v375_v58, %v374_v56  ;;  %v378_v48 = vrot.slane %v374_v56, 4  ;;  %v506_v55 = vld [vmem:[#allocation2 + $0x74] sm:$0x1]  ;;  %v512_v57 = vld [vmem:[#allocation2 + $0x7c] sm:$0x1]  ;;  %v112_v44 = vmax.f32 %v96_v12, 0.0  ;;  %v2651_v14 = vpack.c.bf16 %v111_v63, %v111_v63 }
  0x5d   :  { %v3644_v27 = vld [vmem:[#allocation2 + $0x60] sm:$0xf]  ;;  %v3646_v5 = vld [vmem:[#allocation2 + $0x64] sm:$0x1]  ;;  %v2572_v9 = vrot.slane %v3489_v3, 9  ;;  %v504_v54 = vsel %vm3243_vm10, %v369_v7, %v503_v18  ;;  %v507_v58 = vsel %vm3177_vm5, %v370_v22, %v506_v55 }
  0x5e   :  { %v718_v37 = vshrl.u32 %v3644_v27, 16  ;;  %v721_v52 = vshll.u32 %v3644_v27, 16  ;;  %v727_v30 = vshll.u32 %v3646_v5, 16  ;;  %v3654_v60 = vld [vmem:[#allocation2 + $0x68] sm:$0xf]  ;;  %v510_v62 = vsel %vm3243_vm10, %v377_v39, %v509_v8 }
  0x5f   :  { %v3656_v50 = vld [vmem:[#allocation2 + $0x6c] sm:$0x1]  ;;  %505 = vst [vmem:[#allocation2 + $0x70] sm:$0xf] %v504_v54  ;;  %v513_v24 = vsel %vm3177_vm5, %v378_v48, %v512_v57  ;;  %v2652_v21 = vpack.c.bf16 %v112_v44, %v112_v44  ;;  %v732_v18 = vshrl.u32 %v3654_v60, 16  ;;  %v735_v19 = vshll.u32 %v3654_v60, 16 }
  0x60   :  { %v720_v43 = vrot.slane %v718_v37, 4  ;;  %v723_v45 = vrot.slane %v721_v52, 5  ;;  %v729_v56 = vrot.slane %v727_v30, 5  ;;  %508 = vst [vmem:[#allocation2 + $0x74] sm:$0x1] %v507_v58  ;;  %v741_v23 = vshll.u32 %v3656_v50, 16 }
  0x61   :  { %511 = vst [vmem:[#allocation2 + $0x78] sm:$0xf] %v510_v62  ;;  %514 = vst [vmem:[#allocation2 + $0x7c] sm:$0x1] %v513_v24  ;;  %v380_v12 = vshrl.u32 %v2651_v14, 16  ;;  %v383_v63 = vshll.u32 %v2651_v14, 16  ;;  %v3669_v44 = vsel %vm3446_vm14, %v2515_v15, %v1165_v29 }
  0x62   :  { %v724_v7 = vor.u32 %v723_v45, %v720_v43  ;;  %v734_v8 = vrot.slane %v732_v18, 4  ;;  %v388_v22 = vshrl.u32 %v2652_v21, 16  ;;  %v391_v39 = vshll.u32 %v2652_v21, 16  ;;  %v515_v57 = vld [vmem:[#allocation2 + $0x80] sm:$0xf] }
  0x63   :  { %v737_v48 = vrot.slane %v735_v19, 5  ;;  %v382_v55 = vrot.slane %v380_v12, 7  ;;  %v1700_v37 = vrot.slane %v3495_v11, 5  ;;  %v743_v30 = vrot.slane %v741_v23, 5  ;;  %v518_v58 = vld [vmem:[#allocation2 + $0x84] sm:$0x1] }
  0x64   :  { %v725_v52 = vrot.slane %v724_v7, 4  ;;  %v390_v54 = vrot.slane %v388_v22, 7  ;;  %v2517_v62 = vrot.slane %v3506_v31, 9  ;;  %v521_v45 = vld [vmem:[#allocation2 + $0x88] sm:$0xf] }
  0x65   :  { %v738_v14 = vor.u32 %v737_v48, %v734_v8  ;;  %v385_v24 = vor.u32 %v383_v63, %v382_v55  ;;  %v386_v43 = vrot.slane %v382_v55, 4  ;;  %v3675_v21 = vsel %vm3446_vm14, %v2572_v9, %v1700_v37  ;;  %v524_v19 = vld [vmem:[#allocation2 + $0x8c] sm:$0x1] }
  0x66   :  { %4156 = vst [vmem:[#allocation6_spill] sm:$0xff] %v3675_v21  ;;  %v3679_v15 = vsel %vm3236_vm9, %v725_v52, %v729_v56  ;;  %v3681_v29 = vld [vmem:[#allocation2 + $0x70] sm:$0xf]  ;;  %v393_v11 = vor.u32 %v391_v39, %v390_v54  ;;  %v394_v18 = vrot.slane %v390_v54, 4  ;;  %v2577_v23 = vcombine.low %v3669_v44, %v3675_v21 }
  0x67   :  { %v739_v12 = vrot.slane %v738_v14, 4  ;;  %v562_v63 = vld [vmem:[#allocation2 + $0x74] sm:$0x1]  ;;  %v746_v8 = vshrl.u32 %v3681_v29, 16  ;;  %v516_v9 = vsel %vm3243_vm10, %v385_v24, %v515_v57  ;;  %v519_v56 = vsel %vm3177_vm5, %v386_v43, %v518_v58 }
  0x68   :  { %v3685_v7 = vld [vmem:[#allocation2 + $0x78] sm:$0xf]  ;;  %v3692_v22 = vld [vmem:[#allocation2 + $0x7c] sm:$0x1]  ;;  %v749_v39 = vshll.u32 %v3681_v29, 16  ;;  %v755_v48 = vshll.u32 %v562_v63, 16  ;;  %2887 = vmatmul.mubr.msk.bf16.gmra.mrb[4].mxu0 %vm826_vm11, %v2577_v23  ;;  %v522_v58 = vsel %vm3243_vm10, %v393_v11, %v521_v45  ;;  %v525_v23 = vsel %vm3177_vm5, %v394_v18, %v524_v19 }
  0x69   :  { %v760_v55 = vshrl.u32 %v3685_v7, 16  ;;  %v763_v37 = vshll.u32 %v3685_v7, 16  ;;  %517 = vst [vmem:[#allocation2 + $0x80] sm:$0xf] %v516_v9  ;;  %520 = vst [vmem:[#allocation2 + $0x84] sm:$0x1] %v519_v56  ;;  %v3700_v52 = vsel %vm3236_vm9, %v739_v12, %v743_v30 }
  0x6a   :  { %4157 = vst [vmem:[#allocation7_spill] sm:$0xff] %v3700_v52  ;;  %v748_v57 = vrot.slane %v746_v8, 4  ;;  %v769_v54 = vshll.u32 %v3692_v22, 16  ;;  %v3707_v14 = vcombine.low %v3679_v15, %v3700_v52  ;;  %v751_v24 = vrot.slane %v749_v39, 5  ;;  %523 = vst [vmem:[#allocation2 + $0x88] sm:$0xf] %v522_v58 }
  0x6b   :  { %v762_v43 = vrot.slane %v760_v55, 4  ;;  %v765_v9 = vrot.slane %v763_v37, 5  ;;  %v1173_v30 = vrot.slane %v3510_v33, 5  ;;  %v757_v8 = vrot.slane %v755_v48, 5  ;;  %526 = vst [vmem:[#allocation2 + $0x8c] sm:$0x1] %v525_v23 }
  0x6c   :  { %4158 = vst [vmem:[#allocation8_spill] sm:$0xff] %v3707_v14  ;;  %2801 = vmatmul.mubr.msk.bf16.gmra.mrb[8].mxu1 %vm826_vm11, %v3707_v14  ;;  %v752_v12 = vor.u32 %v751_v24, %v748_v57  ;;  %v2518_v45 = vrot.slane %v3644_v27, 9  ;;  %v1177_v11 = vrot.slane %v3646_v5, 5  ;;  %v771_v39 = vrot.slane %v769_v54, 5 }
  0x6d   :  { %v766_v56 = vor.u32 %v765_v9, %v762_v43  ;;  %v3718_v55 = vsel %vm3446_vm14, %v2517_v62, %v1173_v30  ;;  %v2519_v18 = vrot.slane %v3654_v60, 9  ;;  %v1181_v48 = vrot.slane %v3656_v50, 5 }
  0x6e   :  { %v753_v19 = vrot.slane %v752_v12, 4  ;;  %v3723_v33 = vsel %vm3446_vm14, %v2518_v45, %v1177_v11  ;;  %v2520_v37 = vrot.slane %v3681_v29, 9  ;;  %v1185_v62 = vrot.slane %v562_v63, 5 }
  0x6f   :  { %v767_v57 = vrot.slane %v766_v56, 4  ;;  %v2578_v54 = vcombine.low %v3718_v55, %v3723_v33  ;;  %v1182_v63 = vsel %vm3446_vm14, %v2519_v18, %v1181_v48  ;;  %v2521_v18 = vrot.slane %v3685_v7, 9 }
  0x70   :  { %v3727_v58 = vld [vmem:[#allocation2 + $0x80] sm:$0xf]  ;;  %v566_v5 = vld [vmem:[#allocation2 + $0x84] sm:$0x1]  ;;  %v3733_v24 = vsel %vm3236_vm9, %v753_v19, %v757_v8  ;;  %v3750_v8 = vsel %vm3446_vm14, %v2520_v37, %v1185_v62  ;;  %v1189_v62 = vrot.slane %v3692_v22, 5 }
  0x71   :  { %4159 = vst [vmem:[#allocation9_spill] sm:$0xff] %v3733_v24  ;;  %v774_v43 = vshrl.u32 %v3727_v58, 16  ;;  %v777_v9 = vshll.u32 %v3727_v58, 16  ;;  %v783_v23 = vshll.u32 %v566_v5, 16  ;;  %v3739_v50 = vsel %vm3236_vm9, %v767_v57, %v771_v39  ;;  %v3743_v12 = vld [vmem:[#allocation2 + $0x88] sm:$0xf]  ;;  %2890 = vmatprep.mubr.msk.bf16.mxu0 %vm826_vm11, %v2578_v54 }
  0x72   :  { %v3754_v45 = vcombine.low %v3733_v24, %v3739_v50  ;;  %v174_v39 = vld [vmem:[#allocation2 + $0x90] sm:$0x1]  ;;  %v3756_v19 = vld [vmem:[#allocation2 + $0x8c] sm:$0x1]  ;;  %v788_v57 = vshrl.u32 %v3743_v12, 16  ;;  %v791_v54 = vshll.u32 %v3743_v12, 16  ;;  %v2579_v30 = vcombine.low %v1182_v63, %v3750_v8 }
  0x73   :  { %v776_v11 = vrot.slane %v774_v43, 4  ;;  %v779_v56 = vrot.slane %v777_v9, 5  ;;  %v797_v37 = vshll.u32 %v3756_v19, 16  ;;  %v2522_v43 = vrot.slane %v3727_v58, 9  ;;  %v224_v9 = vld [vmem:[#allocation2 + $0x94] sm:$0x1] }
  0x74   :  { %2804 = vmatprep.mubr.msk.bf16.mxu1 %vm826_vm11, %v3754_v45  ;;  %v785_v24 = vrot.slane %v783_v23, 5  ;;  %v790_v52 = vrot.slane %v788_v57, 4  ;;  %v793_v21 = vrot.slane %v791_v54, 5  ;;  %2891 = vmatmul.mubr.msk.bf16.gmra.mrb[8].mxu0 %vm826_vm11, %v2579_v30  ;;  %v1193_v6 = vrot.slane %v566_v5, 5  ;;  %v3101_v57 = vld [vmem:[%s4132_s2] ss:$0 sm:$0xff] }
  0x75   :  { %v780_v48 = vor.u32 %v779_v56, %v776_v11  ;;  %v799_v40 = vrot.slane %v797_v37, 5  ;;  %v3770_v28 = vsel %vm3446_vm14, %v2521_v18, %v1189_v62  ;;  %v2701_v11 = vunpack.c.h.bf16 %v3596_v1 }
  0x76   :  { %v794_v56 = vor.u32 %v793_v21, %v790_v52  ;;  %v3775_v22 = vsel %vm3446_vm14, %v2522_v43, %v1193_v6  ;;  %v175_v23 = vsel %vm3177_vm5, 0, %v174_v39  ;;  %v225_v30 = vsel %vm3189_vm7, 0, %v224_v9  ;;  %v3102_v21 = vld [vmem:[#allocation2 + $0x4] sm:$0x1] }
  0x77   :  { %v781_v14 = vrot.slane %v780_v48, 4  ;;  %v2580_v5 = vcombine.low %v3770_v28, %v3775_v22  ;;  %v74_v54 = vmul.f32 %v3101_v57, %v2701_v11  ;;  %176 = vst [vmem:[#allocation2 + $0x90] sm:$0x1] %v175_v23  ;;  %226 = vst [vmem:[#allocation2 + $0x94] sm:$0x1] %v225_v30  ;;  %v1137_v52 = vrot.slane %v3102_v21, 5 }
  0x78   :  { %v795_v1 = vrot.slane %v794_v56, 4  ;;  %v3104_v48 = vld [vmem:[#allocation2] sm:$0xf]  ;;  %v3805_v43 = vcombine.low %v3519_v51, %v3600_v47  ;;  %v3809_v9 = vcombine.low %v3618_v32, %v3669_v44  ;;  %v3818_v56 = vcombine.low %v3723_v33, %v1182_v63 }
  0x79   :  { %v3788_v6 = vsel %vm3236_vm9, %v781_v14, %v785_v24  ;;  %2894 = vmatprep.mubr.msk.bf16.mxu0 %vm826_vm11, %v2580_v5  ;;  %v97_v39 = vadd.f32 %v3103_v17, %v74_v54  ;;  %v2492_v37 = vcombine.low %v3104_v48, %v3298_v16  ;;  %v2508_v62 = vrot.slane %v3104_v48, 9 }
  0x7a   :  { %v3796_v18 = vsel %vm3236_vm9, %v795_v1, %v799_v40  ;;  %v2493_v32 = vcombine.low %v3314_v35, %v3319_v38  ;;  %v2494_v23 = vcombine.low %v3330_v46, %v3405_v41  ;;  %v1249_v57 = vsel %vm851_vm0, %v3389_v49, 0 }
  0x7b   :  { %v3801_v14 = vcombine.low %v3788_v6, %v3796_v18  ;;  %v113_v24 = vmax.f32 %v97_v39, 0.0  ;;  %v1138_v16 = vsel %vm3446_vm14, %v2508_v62, %v1137_v52  ;;  %v2544_v33 = vcombine.low %v3506_v31, %v3644_v27 }
  0x7c   :  { %v2524_v11 = vcombine.low %v1138_v16, %v3465_v42  ;;  %v1364_v42 = vld [vmem:[%s4130_s1 + $0xc] sm:$0xf]  ;;  %v2545_v35 = vcombine.low %v3654_v60, %v3681_v29  ;;  %v2546_v49 = vcombine.low %v3685_v7, %v3727_v58  ;;  %v2560_v63 = vcombine.low %v3563_v25, %v3679_v15 }
  0x7d   :  { %2805 = vmatmul.mubr.msk.bf16.gmra.mrb[12].mxu1 %vm826_vm11, %v3801_v14  ;;  %v2653_v40 = vpack.c.bf16 %v113_v24, %v113_v24  ;;  %v2562_v4 = vcombine.low %v3739_v50, %v3788_v6  ;;  %v2523_v21 = vrot.slane %v3743_v12, 9  ;;  %v1197_v52 = vrot.slane %v3756_v19, 5 }
  0x7e   :  { %2810 = vmatprep.mubr.msk.bf16.mxu1 %vm826_vm11, %v2492_v37  ;;  %v527_v30 = vld [vmem:[#allocation2 + $0x90] sm:$0xf]  ;;  %v530_v5 = vld [vmem:[#allocation2 + $0x94] sm:$0x1]  ;;  %v2496_v17 = vcombine.low %v3384_v2, %v3506_v31 }
  0x7f   :  { %v396_v51 = vshrl.u32 %v2653_v40, 16  ;;  %v399_v47 = vshll.u32 %v2653_v40, 16  ;;  %v1198_v37 = vsel %vm3446_vm14, %v2523_v21, %v1197_v52  ;;  %v3920_v21 = vld [vmem:[#allocation2 + $0x4c] sm:$0x1]  ;;  %v3924_v52 = vcombine.low %v3750_v8, %v3770_v28  ;;  %v3106_v8 = vld [vmem:[#allocation2 + $0x8] sm:$0xf] }
  0x80   :  { %v3936_v28 = vcombine.low %v3775_v22, %v1198_v37 }
  0x81   :  { %v398_v44 = vrot.slane %v396_v51, 7  ;;  %v2497_v51 = vcombine.low %v3644_v27, %v3654_v60  ;;  %v4165_v60 = vld [vmem:[#allocation7_spill] sm:$0xff] }
  0x83   :  { %v401_v54 = vor.u32 %v399_v47, %v398_v44  ;;  %v402_v1 = vrot.slane %v398_v44, 4  ;;  %v2498_v47 = vcombine.low %v3681_v29, %v3685_v7  ;;  %v2026_v44 = vsel %vm851_vm0, %v3610_v20, 0  ;;  %v4166_v29 = vld [vmem:[#allocation9_spill] sm:$0xff] }
  0x84   :  { %v4167_v7 = vcombine.low %v4165_v60, %v4166_v29 }
  0x85   :  { %2811 = vmatmul.mubr.msk.bf16.vlgmr.msra.gmra.mrb[0].mxu1 %vm826_vm11, %v2493_v32  ;;  %v528_v38 = vsel %vm3243_vm10, %v401_v54, %v527_v30  ;;  %v531_v46 = vsel %vm3177_vm5, %v402_v1, %v530_v5  ;;  %v2499_v30 = vcombine.low %v3727_v58, %v3743_v12  ;;  %v2151_v5 = vld [vmem:[%s4130_s1 + $0x20] sm:$0xf]  ;;  %v1169_v54 = vrot.slane %v3411_v36, 5  ;;  %v3105_v1 = vld [vmem:[%s4130_s1 + $0x10] sm:$0xf] }
  0x86   :  { %2827 = vmatpush3.bf16.msra.mxu1 %v1249_v57  ;;  %2814 = vmatprep.mubr.msk.bf16.mxu1 %vm826_vm11, %v2494_v23  ;;  %529 = vst [vmem:[#allocation2 + $0x90] sm:$0xf] %v528_v38  ;;  %532 = vst [vmem:[#allocation2 + $0x94] sm:$0x1] %v531_v46  ;;  %v1402_v57 = vsel %vm851_vm0, %v1364_v42, 0 }
  0x87   :  { %3085 = vmatprep.subr.msk.bf16.mxu1 %vm851_vm0, %v1364_v42  ;;  %v3913_v38 = vld [vmem:[#allocation2 + $0x98] sm:$0xf] }
  0x88   :  { %v2611_v25 = vrot.slane %v3913_v38, 9 }
  0x8d   :  { %2815 = vmatmul.mubr.msk.bf16.gmra.mrb[4].mxu1 %vm826_vm11, %v2495_v13  ;;  %v3853_v39 = vld [vmem:[#allocation2 + $0x90] sm:$0xf]  ;;  %v3855_v48 = vld [vmem:[#allocation2 + $0x94] sm:$0x1] }
  0x8e   :  { %v2573_v24 = vrot.slane %v3853_v39, 9  ;;  %v1704_v62 = vrot.slane %v3855_v48, 5  ;;  %2818 = vmatprep.mubr.msk.bf16.mxu1 %vm826_vm11, %v2496_v17  ;;  %v2547_v19 = vcombine.low %v3743_v12, %v3853_v39  ;;  %v2591_v46 = vcombine.low %v3853_v39, %v3913_v38 }
  0x8f   :  { %v1532_v22 = vshrl.u32 %v3853_v39, 16 }
  0x90   :  { %v3866_v40 = vsel %vm3446_vm14, %v2573_v24, %v1704_v62  ;;  %v1996_v24 = vshll.u32 %v3920_v21, 16 }
  0x91   :  { %v2581_v16 = vcombine.low %v1198_v37, %v3866_v40  ;;  %v1535_v37 = vshll.u32 %v3853_v39, 16 }
  0x93   :  { %2895 = vmatmul.mubr.msk.bf16.gmra.mrb[12].mxu0 %vm826_vm11, %v2581_v16  ;;  %v1998_v16 = vrot.slane %v1996_v24, 5  ;;  %v1541_v24 = vshll.u32 %v3855_v48, 16 }
  0x94   :  { %2900 = vmatprep.mubr.msk.bf16.mxu0 %vm826_vm11, %v2493_v32  ;;  %v3886_v32 = vld [vmem:[#allocation2 + $0x48] sm:$0xf] }
  0x95   :  { %2819 = vmatmul.mubr.msk.bf16.gmra.mrb[8].mxu1 %vm826_vm11, %v2497_v51  ;;  %v2590_v20 = vcombine.low %v3489_v3, %v3886_v32  ;;  %v1987_v36 = vshrl.u32 %v3886_v32, 16  ;;  %v1990_v42 = vshll.u32 %v3886_v32, 16  ;;  %v2610_v0 = vrot.slane %v3886_v32, 9 }
  0x96   :  { %2822 = vmatprep.mubr.msk.bf16.mxu1 %vm826_vm11, %v2498_v47 }
  0x9b   :  { %2901 = vmatmul.mubr.msk.bf16.vlgmr.msra.gmra.mrb[0].mxu0 %vm826_vm11, %v2494_v23  ;;  %v2516_v23 = vrot.slane %v3384_v2, 9 }
  0x9c   :  { %2917 = vmatpush3.bf16.msra.mxu0 %v2026_v44  ;;  %2904 = vmatprep.mubr.msk.bf16.mxu0 %vm826_vm11, %v2495_v13  ;;  %v1989_v13 = vrot.slane %v1987_v36, 4  ;;  %v3109_v36 = vld [vmem:[#allocation2 + $0x20] sm:$0xf] }
  0x9d   :  { %2823 = vmatmul.mubr.msk.bf16.gmra.mrb[12].mxu1 %vm826_vm11, %v2499_v30  ;;  %3091 = vmatprep.subr.msk.bf16.mxu0 %vm851_vm0, %v2151_v5 }
  0x9e   :  { %2828 = vmatprep.mubr.msk.bf16.mxu1 %vm826_vm11, %v2524_v11  ;;  %v1170_v11 = vsel %vm3446_vm14, %v2516_v23, %v1169_v54  ;;  %v1534_v23 = vrot.slane %v1532_v22, 4  ;;  %v1537_v54 = vrot.slane %v1535_v37, 5 }
  0x9f   :  { %v2528_v2 = vcombine.low %v1170_v11, %v3718_v55  ;;  %v1992_v55 = vrot.slane %v1990_v42, 5 }
  0xa1   :  { %v1993_v17 = vor.u32 %v1992_v55, %v1989_v13  ;;  %v2542_v13 = vcombine.low %v3405_v41, %v3435_v26  ;;  %v4162_v55 = vld [vmem:[#allocation8_spill] sm:$0xff]  ;;  %v2543_v26 = vcombine.low %v3476_v59, %v3489_v3  ;;  %v2145_v3 = vrot.slane %v3920_v21, 5 }
  0xa3   :  { %2905 = vmatmul.mubr.msk.bf16.gmra.mrb[4].mxu0 %vm826_vm11, %v2590_v20  ;;  %v1994_v62 = vrot.slane %v1993_v17, 4  ;;  %v4160_v20 = vld [vmem:[#allocation4_spill] sm:$0xff]  ;;  %v1538_v17 = vor.u32 %v1537_v54, %v1534_v23  ;;  %v2146_v31 = vsel %vm3446_vm14, %v2610_v0, %v2145_v3 }
  0xa4   :  { %2908 = vmatprep.mubr.msk.bf16.mxu0 %vm826_vm11, %v2497_v51  ;;  %v2163_v51 = vsel %vm851_vm0, %v2151_v5, 0 }
  0xa5   :  { %2829 = vmatmul.mubr.msk.bf16.vlgmr.msra.gmra.mrb[0].mxu1 %vm826_vm11, %v3524_v10  ;;  %v1999_v5 = vsel %vm3236_vm9, %v1994_v62, %v1998_v16 }
  0xa6   :  { %2845 = vmatpush3.bf16.msra.mxu1 %v1402_v57  ;;  %2832 = vmatprep.mubr.msk.bf16.mxu1 %vm826_vm11, %v3805_v43  ;;  %v4161_v57 = vld [vmem:[#allocation5_spill] sm:$0xff] }
  0xa7   :  { %3087 = vmatprep.subr.msk.bf16.mxu1 %vm851_vm0, %v3105_v1 }
  0xab   :  { %2909 = vmatmul.mubr.msk.bf16.gmra.mrb[8].mxu0 %vm826_vm11, %v2498_v47  ;;  %v3107_v47 = vld [vmem:[#allocation2 + $0x10] sm:$0xf] }
  0xac   :  { %2912 = vmatprep.mubr.msk.bf16.mxu0 %vm826_vm11, %v2499_v30  ;;  %v2540_v44 = vcombine.low %v3106_v8, %v3107_v47  ;;  %v2004_v30 = vshll.u32 %v3913_v38, 16  ;;  %v1539_v8 = vrot.slane %v1538_v17, 4  ;;  %v1543_v47 = vrot.slane %v1541_v24, 5 }
  0xad   :  { %2833 = vmatmul.mubr.msk.bf16.gmra.mrb[4].mxu1 %vm826_vm11, %v3809_v9 }
  0xae   :  { %2836 = vmatprep.mubr.msk.bf16.mxu1 %vm826_vm11, %v2528_v2  ;;  %v2006_v1 = vrot.slane %v2004_v30, 5  ;;  %v3108_v2 = vld [vmem:[#allocation2 + $0x18] sm:$0xf]  ;;  %v1544_v48 = vsel %vm3236_vm9, %v1539_v8, %v1543_v47 }
  0xaf   :  { %v2541_v42 = vcombine.low %v3108_v2, %v3109_v36  ;;  %v2563_v58 = vcombine.low %v3796_v18, %v1544_v48 }
  0xb3   :  { %2913 = vmatmul.mubr.msk.bf16.gmra.mrb[12].mxu0 %vm826_vm11, %v2591_v46  ;;  %v572_v46 = vld [vmem:[#allocation2 + $0x9c] sm:$0x1] }
  0xb4   :  { %2918 = vmatprep.mubr.msk.bf16.mxu0 %vm826_vm11, %v3369_v53  ;;  %v2001_v53 = vshrl.u32 %v3913_v38, 16  ;;  %v2010_v16 = vshll.u32 %v572_v46, 16  ;;  %v2149_v15 = vrot.slane %v572_v46, 5 }
  0xb5   :  { %2837 = vmatmul.mubr.msk.bf16.gmra.mrb[8].mxu1 %vm826_vm11, %v3818_v56 }
  0xb6   :  { %2840 = vmatprep.mubr.msk.bf16.mxu1 %vm826_vm11, %v3924_v52  ;;  %v2003_v11 = vrot.slane %v2001_v53, 4  ;;  %v2012_v41 = vrot.slane %v2010_v16, 5  ;;  %v2150_v12 = vsel %vm3446_vm14, %v2611_v25, %v2149_v15 }
  0xb7   :  { %v2613_v50 = vcombine.low %v3866_v40, %v2150_v12 }
  0xb8   :  { %v2007_v62 = vor.u32 %v2006_v1, %v2003_v11 }
  0xbb   :  { %2919 = vmatmul.mubr.msk.bf16.vlgmr.msra.gmra.mrb[0].mxu0 %vm826_vm11, %v3457_v61  ;;  %v2600_v61 = vcombine.low %v4161_v57, %v1999_v5 }
  0xbc   :  { %2935 = vmatpush3.bf16.msra.mxu0 %v2163_v51  ;;  %2922 = vmatprep.mubr.msk.bf16.mxu0 %vm826_vm11, %v4160_v20  ;;  %v4163_v51 = vld [vmem:[#allocation3_spill] sm:$0xff] }
  0xbd   :  { %2841 = vmatmul.mubr.msk.bf16.gmra.mrb[12].mxu1 %vm826_vm11, %v3936_v28 }
  0xbe   :  { %2846 = vmatprep.mubr.msk.bf16.mxu1 %vm826_vm11, %v2540_v44  ;;  %v2008_v44 = vrot.slane %v2007_v62, 4 }
  0xc0   :  { %v2013_v53 = vsel %vm3236_vm9, %v2008_v44, %v2012_v41 }
  0xc1   :  { %v2601_v59 = vcombine.low %v1544_v48, %v2013_v53 }
  0xc3   :  { %2923 = vmatmul.mubr.msk.bf16.gmra.mrb[4].mxu0 %vm826_vm11, %v2600_v61 }
  0xc4   :  { %2926 = vmatprep.mubr.msk.bf16.mxu0 %vm826_vm11, %v4162_v55 }
  0xc5   :  { %2847 = vmatmul.mubr.msk.bf16.vlgmr.msra.gmra.mrb[0].mxu1 %vm826_vm11, %v2541_v42 }
  0xc6   :  { %2953 = vmatpush3.bf16.msra.mxu1 %v4163_v51  ;;  %2850 = vmatprep.mubr.msk.bf16.mxu1 %vm826_vm11, %v2542_v13 }
  0xcb   :  { %2927 = vmatmul.mubr.msk.bf16.gmra.mrb[8].mxu0 %vm826_vm11, %v3754_v45 }
  0xcc   :  { %2930 = vmatprep.mubr.msk.bf16.mxu0 %vm826_vm11, %v3801_v14 }
  0xcd   :  { %2851 = vmatmul.mubr.msk.bf16.gmra.mrb[4].mxu1 %vm826_vm11, %v2543_v26 }
  0xce   :  { %2854 = vmatprep.mubr.msk.bf16.mxu1 %vm826_vm11, %v2544_v33 }
  0xd3   :  { %2931 = vmatmul.mubr.msk.bf16.gmra.mrb[12].mxu0 %vm826_vm11, %v2601_v59 }
  0xd4   :  { %2936 = vmatprep.mubr.msk.bf16.mxu0 %vm826_vm11, %v3524_v10  ;;  %v4164_v10 = vld [vmem:[#allocation6_spill] sm:$0xff] }
  0xd5   :  { %2855 = vmatmul.mubr.msk.bf16.gmra.mrb[8].mxu1 %vm826_vm11, %v2545_v35  ;;  %v2612_v27 = vcombine.low %v4164_v10, %v2146_v31 }
  0xd6   :  { %2858 = vmatprep.mubr.msk.bf16.mxu1 %vm826_vm11, %v2546_v49 }
  0xdb   :  { %2937 = vmatmul.mubr.msk.bf16.vlgmr.msra.gmra.mrb[0].mxu0 %vm826_vm11, %v3805_v43 }
  0xdc   :  { %2940 = vmatprep.mubr.msk.bf16.mxu0 %vm826_vm11, %v3809_v9 }
  0xdd   :  { %2859 = vmatmul.mubr.msk.bf16.gmra.mrb[12].mxu1 %vm826_vm11, %v2547_v19 }
  0xde   :  { %2872 = vmatprep.mubr.msk.bf16.mxu1 %vm826_vm11, %v2560_v63 }
  0xe3   :  { %2941 = vmatmul.mubr.msk.bf16.gmra.mrb[4].mxu0 %vm826_vm11, %v2612_v27 }
  0xe4   :  { %2944 = vmatprep.mubr.msk.bf16.mxu0 %vm826_vm11, %v3818_v56 }
  0xe5   :  { %2873 = vmatmul.mubr.msk.bf16.vlgmr.msra.gmra.mrb[8].mxu1 %vm826_vm11, %v4167_v7 }
  0xe6   :  { %2876 = vmatprep.mubr.msk.bf16.mxu1 %vm826_vm11, %v2562_v4 }
  0xeb   :  { %2945 = vmatmul.mubr.msk.bf16.gmra.mrb[8].mxu0 %vm826_vm11, %v3924_v52 }
  0xec   :  { %2948 = vmatprep.mubr.msk.bf16.mxu0 %vm826_vm11, %v3936_v28 }
  0xed   :  { %2877 = vmatmul.mubr.msk.bf16.gmra.mrb[12].mxu1 %vm826_vm11, %v2563_v58 }
  0xf3   :  { %2949 = vmatmul.mubr.msk.bf16.gmra.mrb[12].mxu0 %vm826_vm11, %v2613_v50 }
 0x198   :  { %v2848_v45 = vpop.f32.mrb[0].mxu1 }
 0x199   :  { %v1438_v6 = vpop.f32.mrb[1].mxu1 }
 0x19a   :  { %v2849_v14 = vpop.f32.mrb[2].mxu1 }
 0x19b   :  { %v1441_v43 = vpop.f32.mrb[3].mxu1 }
 0x1a0   :  { %v2852_v18 = vpop.f32.mrb[4].mxu1 }
 0x1a1   :  { %v1454_v9 = vpop.f32.mrb[5].mxu1 }
 0x1a2   :  { %v2853_v56 = vpop.f32.mrb[6].mxu1 }
 0x1a3   :  { %v1457_v33 = vpop.f32.mrb[7].mxu1 }
 0x1ae   :  { %v2938_v35 = vpop.f32.mrb[0].mxu0 }
 0x1af   :  { %v2954_v49 = vadd.f32 %v2938_v35, %v2848_v45  ;;  %v2199_v63 = vpop.f32.mrb[1].mxu0 }
 0x1b0   :  { %v2955_v4 = vadd.f32 %v2199_v63, %v1438_v6  ;;  %v2939_v34 = vpop.f32.mrb[2].mxu0 }
 0x1b1   :  { %v2656_v39 = vpack.c.bf16 %v2954_v49, %v2954_v49  ;;  %v2956_v19 = vadd.f32 %v2939_v34, %v2849_v14  ;;  %v2202_v32 = vpop.f32.mrb[3].mxu0  ;;  %v2398_v52 = vmul.f32 %v2954_v49, %v2954_v49  ;;  %v2361_v61 = vsel %vm826_vm11, %v2954_v49, 0.0 }
 0x1b2   :  { %v2654_v38 = vpack.c.bf16 %v2955_v4, %v2955_v4  ;;  %v2396_v40 = vmul.f32 %v2955_v4, %v2955_v4  ;;  %v2957_v21 = vadd.f32 %v2202_v32, %v1441_v43  ;;  %v2358_v30 = vsel %vm826_vm11, %v2955_v4, 0.0 }
 0x1b3   :  { %2344 = vst.msk [vmem:[%s4134_s4 + $0x8] sm:$0xf] %vm114_vm1, %v2656_v39  ;;  %v2657_v28 = vpack.c.bf16 %v2956_v19, %v2956_v19  ;;  %v2399_v37 = vmul.f32 %v2956_v19, %v2956_v19  ;;  %v2415_v46 = vsel %vm826_vm11, %v2398_v52, 0.0  ;;  %v2363_v24 = vsel %vm826_vm11, %v2956_v19, 0.0 }
 0x1b4   :  { %2342 = vst.msk [vmem:[%s4134_s4] sm:$0xf] %vm114_vm1, %v2654_v38  ;;  %v2655_v20 = vpack.c.bf16 %v2957_v21, %v2957_v21  ;;  %v2359_v5 = vsel %vm826_vm11, %v2957_v21, 0.0  ;;  %v2397_v22 = vmul.f32 %v2957_v21, %v2957_v21  ;;  %v2412_v23 = vsel %vm826_vm11, %v2396_v40, 0.0 }
 0x1b5   :  { %2345 = vst.msk [vmem:[%s4134_s4 + $0xc] sm:$0xf] %vm114_vm1, %v2657_v28  ;;  %v2360_v57 = vadd.f32 %v2359_v5, %v2358_v30  ;;  %v2417_v62 = vsel %vm826_vm11, %v2399_v37, 0.0 }
 0x1b6   :  { %2343 = vst.msk [vmem:[%s4134_s4 + $0x4] sm:$0xf] %vm114_vm1, %v2655_v20  ;;  %v2413_v54 = vsel %vm826_vm11, %v2397_v22, 0.0  ;;  %v2942_v11 = vpop.f32.mrb[4].mxu0 }
 0x1b7   :  { %v2362_v1 = vadd.f32 %v2361_v61, %v2360_v57  ;;  %v2414_v2 = vadd.f32 %v2413_v54, %v2412_v23  ;;  %v2958_v36 = vadd.f32 %v2942_v11, %v2852_v18  ;;  %v2215_v42 = vpop.f32.mrb[5].mxu0 }
 0x1b8   :  { %v2959_v13 = vadd.f32 %v2215_v42, %v1454_v9  ;;  %v2943_v55 = vpop.f32.mrb[6].mxu0  ;;  %v2874_v17 = vpop.f32.mrb[8].mxu1 }
 0x1b9   :  { %v2416_v16 = vadd.f32 %v2415_v46, %v2414_v2  ;;  %v2660_v51 = vpack.c.bf16 %v2958_v36, %v2958_v36  ;;  %v2218_v8 = vpop.f32.mrb[7].mxu0  ;;  %v1649_v47 = vpop.f32.mrb[9].mxu1  ;;  %v2364_v41 = vadd.f32 %v2363_v24, %v2362_v1  ;;  %v2960_v0 = vadd.f32 %v2943_v55, %v2853_v56 }
 0x1ba   :  { %v2658_v44 = vpack.c.bf16 %v2959_v13, %v2959_v13  ;;  %v2365_v26 = vsel %vm826_vm11, %v2959_v13, 0.0  ;;  %v2400_v48 = vmul.f32 %v2959_v13, %v2959_v13  ;;  %v2875_v53 = vpop.f32.mrb[10].mxu1  ;;  %v2961_v3 = vadd.f32 %v2218_v8, %v1457_v33 }
 0x1bb   :  { %2348 = vst.msk [vmem:[%s4134_s4 + $0x18] sm:$0xf] %vm114_vm1, %v2660_v51  ;;  %v2418_v59 = vadd.f32 %v2417_v62, %v2416_v16  ;;  %v1652_v31 = vpop.f32.mrb[11].mxu1  ;;  %v2366_v10 = vadd.f32 %v2365_v26, %v2364_v41  ;;  %v2402_v60 = vmul.f32 %v2958_v36, %v2958_v36  ;;  %v2661_v7 = vpack.c.bf16 %v2960_v0, %v2960_v0 }
 0x1bc   :  { %2346 = vst.msk [vmem:[%s4134_s4 + $0x10] sm:$0xf] %vm114_vm1, %v2658_v44  ;;  %v2419_v27 = vsel %vm826_vm11, %v2400_v48, 0.0  ;;  %v2659_v25 = vpack.c.bf16 %v2961_v3, %v2961_v3  ;;  %v2367_v15 = vsel %vm826_vm11, %v2961_v3, 0.0  ;;  %v2401_v58 = vmul.f32 %v2961_v3, %v2961_v3 }
 0x1bd   :  { %v2420_v29 = vadd.f32 %v2419_v27, %v2418_v59  ;;  %2349 = vst.msk [vmem:[%s4134_s4 + $0x1c] sm:$0xf] %vm114_vm1, %v2661_v7  ;;  %v2368_v50 = vadd.f32 %v2367_v15, %v2366_v10  ;;  %v2369_v14 = vsel %vm826_vm11, %v2958_v36, 0.0  ;;  %v2403_v43 = vmul.f32 %v2960_v0, %v2960_v0 }
 0x1be   :  { %v2946_v12 = vpop.f32.mrb[8].mxu0  ;;  %2347 = vst.msk [vmem:[%s4134_s4 + $0x14] sm:$0xf] %vm114_vm1, %v2659_v25  ;;  %v2421_v18 = vsel %vm826_vm11, %v2401_v58, 0.0  ;;  %v2423_v35 = vsel %vm826_vm11, %v2402_v60, 0.0  ;;  %v2371_v19 = vsel %vm826_vm11, %v2960_v0, 0.0 }
 0x1bf   :  { %v2962_v45 = vadd.f32 %v2946_v12, %v2874_v17  ;;  %v2231_v6 = vpop.f32.mrb[9].mxu0  ;;  %v2370_v49 = vadd.f32 %v2369_v14, %v2368_v50  ;;  %v2422_v63 = vadd.f32 %v2421_v18, %v2420_v29  ;;  %v2425_v22 = vsel %vm826_vm11, %v2403_v43, 0.0 }
 0x1c0   :  { %v2963_v9 = vadd.f32 %v2231_v6, %v1649_v47  ;;  %v2947_v56 = vpop.f32.mrb[10].mxu0  ;;  %v2878_v33 = vpop.f32.mrb[12].mxu1 }
 0x1c1   :  { %v2664_v4 = vpack.c.bf16 %v2962_v45, %v2962_v45  ;;  %v2234_v34 = vpop.f32.mrb[11].mxu0  ;;  %v1665_v39 = vpop.f32.mrb[13].mxu1  ;;  %v2424_v52 = vadd.f32 %v2423_v35, %v2422_v63  ;;  %v2372_v28 = vadd.f32 %v2371_v19, %v2370_v49  ;;  %v2964_v30 = vadd.f32 %v2947_v56, %v2875_v53 }
 0x1c2   :  { %v2662_v32 = vpack.c.bf16 %v2963_v9, %v2963_v9  ;;  %v2373_v38 = vsel %vm826_vm11, %v2963_v9, 0.0  ;;  %v2404_v40 = vmul.f32 %v2963_v9, %v2963_v9  ;;  %v2879_v21 = vpop.f32.mrb[14].mxu1  ;;  %v2965_v20 = vadd.f32 %v2234_v34, %v1652_v31 }
 0x1c3   :  { %2352 = vst.msk [vmem:[%s4134_s4 + $0x28] sm:$0xf] %vm114_vm1, %v2664_v4  ;;  %v1668_v5 = vpop.f32.mrb[15].mxu1  ;;  %v2406_v57 = vmul.f32 %v2962_v45, %v2962_v45  ;;  %v2374_v61 = vadd.f32 %v2373_v38, %v2372_v28  ;;  %v2426_v23 = vadd.f32 %v2425_v22, %v2424_v52  ;;  %v2665_v54 = vpack.c.bf16 %v2964_v30, %v2964_v30 }
 0x1c4   :  { %2350 = vst.msk [vmem:[%s4134_s4 + $0x20] sm:$0xf] %vm114_vm1, %v2662_v32  ;;  %v2427_v37 = vsel %vm826_vm11, %v2404_v40, 0.0  ;;  %v2663_v11 = vpack.c.bf16 %v2965_v20, %v2965_v20  ;;  %v2375_v1 = vsel %vm826_vm11, %v2965_v20, 0.0  ;;  %v2405_v2 = vmul.f32 %v2965_v20, %v2965_v20 }
 0x1c5   :  { %v2428_v42 = vadd.f32 %v2427_v37, %v2426_v23  ;;  %2353 = vst.msk [vmem:[%s4134_s4 + $0x2c] sm:$0xf] %vm114_vm1, %v2665_v54  ;;  %v2376_v46 = vadd.f32 %v2375_v1, %v2374_v61  ;;  %v2377_v17 = vsel %vm826_vm11, %v2962_v45, 0.0  ;;  %v2407_v24 = vmul.f32 %v2964_v30, %v2964_v30 }
 0x1c6   :  { %v2950_v36 = vpop.f32.mrb[12].mxu0  ;;  %2351 = vst.msk [vmem:[%s4134_s4 + $0x24] sm:$0xf] %vm114_vm1, %v2663_v11  ;;  %v2429_v62 = vsel %vm826_vm11, %v2405_v2, 0.0  ;;  %v2431_v8 = vsel %vm826_vm11, %v2406_v57, 0.0  ;;  %v2379_v48 = vsel %vm826_vm11, %v2964_v30, 0.0 }
 0x1c7   :  { %v2966_v13 = vadd.f32 %v2950_v36, %v2878_v33  ;;  %v2247_v55 = vpop.f32.mrb[13].mxu0  ;;  %v2378_v47 = vadd.f32 %v2377_v17, %v2376_v46  ;;  %v2430_v44 = vadd.f32 %v2429_v62, %v2428_v42  ;;  %v2433_v60 = vsel %vm826_vm11, %v2407_v24, 0.0 }
 0x1c8   :  { %v2967_v16 = vadd.f32 %v2247_v55, %v1665_v39  ;;  %v2951_v51 = vpop.f32.mrb[14].mxu0 }
 0x1c9   :  { %v2668_v41 = vpack.c.bf16 %v2966_v13, %v2966_v13  ;;  %v2250_v26 = vpop.f32.mrb[15].mxu0  ;;  %v2432_v3 = vadd.f32 %v2431_v8, %v2430_v44  ;;  %v2380_v31 = vadd.f32 %v2379_v48, %v2378_v47  ;;  %v2968_v10 = vadd.f32 %v2951_v51, %v2879_v21 }
 0x1ca   :  { %v2666_v53 = vpack.c.bf16 %v2967_v16, %v2967_v16  ;;  %v2381_v59 = vsel %vm826_vm11, %v2967_v16, 0.0  ;;  %v2408_v0 = vmul.f32 %v2967_v16, %v2967_v16  ;;  %v2969_v27 = vadd.f32 %v2250_v26, %v1668_v5 }
 0x1cb   :  { %2356 = vst.msk [vmem:[%s4134_s4 + $0x38] sm:$0xf] %vm114_vm1, %v2668_v41  ;;  %v2382_v7 = vadd.f32 %v2381_v59, %v2380_v31  ;;  %v2434_v25 = vadd.f32 %v2433_v60, %v2432_v3  ;;  %v2669_v15 = vpack.c.bf16 %v2968_v10, %v2968_v10  ;;  %v2410_v58 = vmul.f32 %v2966_v13, %v2966_v13 }
 0x1cc   :  { %2354 = vst.msk [vmem:[%s4134_s4 + $0x30] sm:$0xf] %vm114_vm1, %v2666_v53  ;;  %v2435_v29 = vsel %vm826_vm11, %v2408_v0, 0.0  ;;  %v2667_v12 = vpack.c.bf16 %v2969_v27, %v2969_v27  ;;  %v2383_v50 = vsel %vm826_vm11, %v2969_v27, 0.0  ;;  %v2409_v45 = vmul.f32 %v2969_v27, %v2969_v27 }
 0x1cd   :  { %v2436_v6 = vadd.f32 %v2435_v29, %v2434_v25  ;;  %2357 = vst.msk [vmem:[%s4134_s4 + $0x3c] sm:$0xf] %vm114_vm1, %v2669_v15  ;;  %v2384_v14 = vadd.f32 %v2383_v50, %v2382_v7  ;;  %v2385_v43 = vsel %vm826_vm11, %v2966_v13, 0.0  ;;  %v2411_v18 = vmul.f32 %v2968_v10, %v2968_v10 }
 0x1ce   :  { %2355 = vst.msk [vmem:[%s4134_s4 + $0x34] sm:$0xf] %vm114_vm1, %v2667_v12  ;;  %v2437_v9 = vsel %vm826_vm11, %v2409_v45, 0.0  ;;  %v2439_v35 = vsel %vm826_vm11, %v2410_v58, 0.0  ;;  %v2387_v49 = vsel %vm826_vm11, %v2968_v10, 0.0 }
 0x1cf   :  { %v2386_v56 = vadd.f32 %v2385_v43, %v2384_v14  ;;  %v2438_v33 = vadd.f32 %v2437_v9, %v2436_v6  ;;  %v2441_v34 = vsel %vm826_vm11, %v2411_v18, 0.0 }
 0x1d1   :  { %v2388_v63 = vadd.f32 %v2387_v49, %v2386_v56  ;;  %v2440_v4 = vadd.f32 %v2439_v35, %v2438_v33 }
 0x1d3   :  { %v2389_v39 = vrot.slane %v2388_v63, 4  ;;  %v2442_v19 = vadd.f32 %v2441_v34, %v2440_v4 }
 0x1d5   :  { %v2390_v32 = vadd.f32 %v2389_v39, %v2388_v63  ;;  %v2443_v38 = vrot.slane %v2442_v19, 4 }
 0x1d7   :  { %v2391_v40 = vrot.slane %v2390_v32, 2  ;;  %v2444_v21 = vadd.f32 %v2443_v38, %v2442_v19 }
 0x1d9   :  { %v2392_v52 = vadd.f32 %v2391_v40, %v2390_v32  ;;  %v2445_v28 = vrot.slane %v2444_v21, 2 }
 0x1db   :  { %v2393_v30 = vrot.slane %v2392_v52, 1  ;;  %v2446_v20 = vadd.f32 %v2445_v28, %v2444_v21 }
 0x1dd   :  { %v2394_v5 = vadd.f32 %v2393_v30, %v2392_v52  ;;  %v2447_v22 = vrot.slane %v2446_v20, 1 }
 0x1df   :  { %2395 = vst.msk [vmem:[%s4135_s5] sm:$0x1] %vm116_vm2, %v2394_v5  ;;  %v2448_v37 = vadd.f32 %v2447_v22, %v2446_v20 }
 0x1e1   :  { %2449 = vst.msk [vmem:[%s4135_s5 + $0x1] sm:$0x1] %vm116_vm2, %v2448_v37 }

</bundles_post_ra>
